<compile_context>
chip_gen: v7x
topology: tpu7x:2x2x1
jax: 0.10.0
libtpu: 0.0.40
codegen_flags: <defaults>
</compile_context>

<pallas_src>
import jax
import jax.numpy as jnp
from jax.experimental import pallas as pl
from jax.experimental.pallas import tpu as pltpu


# Layer-3 output width is padded to a multiple of this (must be a multiple of
# 128; also the column-tile width of the small-batch kernel).  2352 -> 2560.
LANE_TILE = 640


def _leaky_relu(x, slope=0.01):
    # nn.LeakyReLU() default negative_slope = 0.01
    return jnp.where(x > 0, x, slope * x)


# ----------------------------------------------------------------------------
# Kernel A: weight-resident, full layer-3 width per step (large-batch path).
# ----------------------------------------------------------------------------
def _decoder_kernel_full(z_ref, w1_ref, b1_ref, w2_ref, b2_ref, w3_ref, b3_ref,
                         o_ref):
    # Layer 1: (bm, z_dim) @ (z_dim, H) + (1, H)   -> LeakyReLU
    z = z_ref[...].astype(w1_ref.dtype)
    h1 = jnp.dot(z, w1_ref[...],
                 preferred_element_type=jnp.float32) + b1_ref[...]
    h1 = _leaky_relu(h1).astype(w2_ref.dtype)

    # Layer 2: (bm, H) @ (H, H*C) + (1, H*C)       -> LeakyReLU
    h2 = jnp.dot(h1, w2_ref[...],
                 preferred_element_type=jnp.float32) + b2_ref[...]
    h2 = _leaky_relu(h2).astype(w3_ref.dtype)

    # Layer 3: (bm, H*C) @ (H*C, Np) + (1, Np)     -> Sigmoid (Np lane-padded)
    h3 = jnp.dot(h2, w3_ref[...],
                 preferred_element_type=jnp.float32) + b3_ref[...]
    o_ref[...] = jax.nn.sigmoid(h3).astype(o_ref.dtype)


# ----------------------------------------------------------------------------
# Kernel B: layer-3 tiled over output columns (small-batch latency path).
# h2 is computed once per batch chunk (j == 0) into a VMEM scratch, then each
# column tile j does a (bm, H*C) @ (H*C, tn) dot against its own w3 slab, so
# the w3 DMA is pipelined against the layer-3 MXU work.
# ----------------------------------------------------------------------------
def _decoder_kernel_coltiled(z_ref, w1_ref, b1_ref, w2_ref, b2_ref, w3_ref,
                             b3_ref, o_ref, h2_scr):
    @pl.when(pl.program_id(1) == 0)
    def _():
        z = z_ref[...].astype(w1_ref.dtype)
        h1 = jnp.dot(z, w1_ref[...],
                     preferred_element_type=jnp.float32) + b1_ref[...]
        h1 = _leaky_relu(h1).astype(w2_ref.dtype)
        h2 = jnp.dot(h1, w2_ref[...],
                     preferred_element_type=jnp.float32) + b2_ref[...]
        h2_scr[...] = _leaky_relu(h2).astype(h2_scr.dtype)

    h3 = jnp.dot(h2_scr[...], w3_ref[...],
                 preferred_element_type=jnp.float32) + b3_ref[...]
    o_ref[...] = jax.nn.sigmoid(h3).astype(o_ref.dtype)


# ----------------------------------------------------------------------------
# Parameter construction / one-time preparation.
# ----------------------------------------------------------------------------
def init_params(key, z_dim=20, hidden_size=256, x_dim=28 * 28,
                num_out_channels=3):
    """PyTorch-default-style init (uniform +-1/sqrt(fan_in)).

    Weights are stored already transposed to (in, out) so the kernel computes
    x @ W + b (equivalent to PyTorch's x @ W^T + b with W of shape (out, in)).
    """
    dims = [(z_dim, hidden_size),
            (hidden_size, hidden_size * num_out_channels),
            (hidden_size * num_out_channels, x_dim * num_out_channels)]
    params = []
    for fan_in, fan_out in dims:
        key, kw, kb = jax.random.split(key, 3)
        bound = 1.0 / jnp.sqrt(jnp.float32(fan_in))
        w = jax.random.uniform(kw, (fan_in, fan_out), jnp.float32,
                               minval=-bound, maxval=bound)
        b = jax.random.uniform(kb, (1, fan_out), jnp.float32,
                               minval=-bound, maxval=bound)
        params += [w, b]
    return params


def prepare_decoder_params(params, weight_dtype=jnp.bfloat16,
                           lane_tile=LANE_TILE):
    """One-time setup: lane-pad layer 3 and cast weights.

    Doing this once (instead of inside the forward) removes the per-call
    pad/cast fusion that otherwise re-reads the full f32 w3 on every call.
    Biases stay f32 (added to the f32 accumulator in-kernel).
    """
    w1, b1, w2, b2, w3, b3 = params
    out_dim = int(w3.shape[1])                 # x_dim * num_out_channels
    pad = (-out_dim) % lane_tile
    if pad:
        w3 = jnp.pad(w3, ((0, 0), (0, pad)))
        b3 = jnp.pad(b3, ((0, 0), (0, pad)))
    prepared = {
        "w1": w1.astype(weight_dtype), "b1": b1.astype(jnp.float32),
        "w2": w2.astype(weight_dtype), "b2": b2.astype(jnp.float32),
        "w3": w3.astype(weight_dtype), "b3": b3.astype(jnp.float32),
    }
    # Materialize the casts now (eager) so they never run per forward call.
    prepared = jax.tree_util.tree_map(jax.block_until_ready, prepared)
    prepared["out_dim"] = out_dim
    return prepared


# ----------------------------------------------------------------------------
# Forward wrapper.
# ----------------------------------------------------------------------------
def vae_decoder_forward(z, prepared, num_out_channels=3,
                        out_dtype=jnp.bfloat16, col_tiled=None):
    w1, b1 = prepared["w1"], prepared["b1"]
    w2, b2 = prepared["w2"], prepared["b2"]
    w3, b3 = prepared["w3"], prepared["b3"]
    out_dim = prepared["out_dim"]

    B, z_dim = z.shape
    HC, Np = w3.shape                          # hidden*C, padded output width

    # --- Batch tiling: sublane-aligned chunks, cap raised to 512 (256 for
    #     f32 weights so the double-buffered f32 w3 + output fit in 32 MiB).
    bm_cap = 512 if jnp.dtype(w3.dtype).itemsize <= 2 else 256
    bm = min(bm_cap, ((B + 7) // 8) * 8)
    b_pad = (-B) % bm
    z_p = jnp.pad(z, ((0, b_pad), (0, 0))) if b_pad else z
    Bp = B + b_pad
    n_chunks = Bp // bm

    if col_tiled is None:
        # Column-tiled layer 3 only pays off when there is a single batch
        # chunk (nothing else to hide the big w3 DMA behind).
        col_tiled = (n_chunks == 1)

    if col_tiled:
        tn = LANE_TILE
        const3 = lambda i, j: (0, 0)           # layers 1/2: fetched once
        flat = pl.pallas_call(
            _decoder_kernel_coltiled,
            out_shape=jax.ShapeDtypeStruct((Bp, Np), out_dtype),
            grid=(n_chunks, Np // tn),
            in_specs=[
                pl.BlockSpec((bm, z_dim), lambda i, j: (i, 0)),
                pl.BlockSpec(w1.shape, const3),
                pl.BlockSpec(b1.shape, const3),
                pl.BlockSpec(w2.shape, const3),
                pl.BlockSpec(b2.shape, const3),
                pl.BlockSpec((HC, tn), lambda i, j: (0, j)),
                pl.BlockSpec((1, tn), lambda i, j: (0, j)),
            ],
            out_specs=pl.BlockSpec((bm, tn), lambda i, j: (i, j)),
            scratch_shapes=[pltpu.VMEM((bm, HC), w3.dtype)],
            compiler_params=pltpu.CompilerParams(
                # j carries the h2 scratch dependency -> must stay sequential.
                dimension_semantics=("arbitrary", "arbitrary"),
                vmem_limit_bytes=32 << 20,
            ),
        )(z_p, w1, b1, w2, b2, w3, b3)
    else:
        const2 = lambda i: (0, 0)              # weights: VMEM-resident
        flat = pl.pallas_call(
            _decoder_kernel_full,
            out_shape=jax.ShapeDtypeStruct((Bp, Np), out_dtype),
            grid=(n_chunks,),
            in_specs=[
                pl.BlockSpec((bm, z_dim), lambda i: (i, 0)),
                pl.BlockSpec(w1.shape, const2),
                pl.BlockSpec(b1.shape, const2),
                pl.BlockSpec(w2.shape, const2),
                pl.BlockSpec(b2.shape, const2),
                pl.BlockSpec(w3.shape, const2),
                pl.BlockSpec(b3.shape, const2),
            ],
            out_specs=pl.BlockSpec((bm, Np), lambda i: (i, 0)),
            compiler_params=pltpu.CompilerParams(
                # "parallel" lets v7x shard batch chunks across its 2 TCs
                # (one extra weight fetch per core, negligible at large B);
                # with a single chunk keep "arbitrary".
                dimension_semantics=("parallel",) if n_chunks > 1
                else ("arbitrary",),
                vmem_limit_bytes=32 << 20,
            ),
        )(z_p, w1, b1, w2, b2, w3, b3)

    # Drop batch/lane padding, then x.view(-1, C, 28, 28) (NCHW, as PyTorch).
    # NOTE: padded lanes hold sigmoid(0)=0.5 and padded rows hold garbage —
    # this slice must stay.
    flat = flat[:B, :out_dim]
    x_dim_img = 28
    return flat.reshape(-1, num_out_channels, x_dim_img, x_dim_img)


def vae_decoder_reference(z, params, num_out_channels=3):
    """Pure-JAX f32 reference of the same forward pass."""
    w1, b1, w2, b2, w3, b3 = params
    h = _leaky_relu(z @ w1 + b1)
    h = _leaky_relu(h @ w2 + b2)
    h = jax.nn.sigmoid(h @ w3 + b3)
    return h.reshape(-1, num_out_channels, 28, 28)


if __name__ == "__main__":
    key = jax.random.PRNGKey(0)
    key_params, key_z = jax.random.split(key)

    # Module defaults: x_dim=784, hidden_size=256, z_dim=20, num_out_channels=3
    # (the hard-coded 28x28 view in forward() requires x_dim = 784).
    Z_DIM, HIDDEN, X_DIM, C = 20, 256, 28 * 28, 3
    B = 2

    params = init_params(key_params, z_dim=Z_DIM, hidden_size=HIDDEN,
                         x_dim=X_DIM, num_out_channels=C)
    z = jax.random.normal(key_z, (B, Z_DIM), jnp.float32)

    ref = jax.block_until_ready(vae_decoder_reference(z, params, C))

    # --- Exact path (f32 weights, f32 output): both kernel variants. --------
    prep_f32 = prepare_decoder_params(params, weight_dtype=jnp.float32)
    out_ct = jax.block_until_ready(
        vae_decoder_forward(z, prep_f32, C, out_dtype=jnp.float32,
                            col_tiled=True))
    out_full = jax.block_until_ready(
        vae_decoder_forward(z, prep_f32, C, out_dtype=jnp.float32,
                            col_tiled=False))
    assert out_ct.shape == (B, C, 28, 28), out_ct.shape
    assert out_full.shape == (B, C, 28, 28), out_full.shape
    assert jnp.allclose(out_ct, ref, atol=1e-5, rtol=1e-5), \
        "f32 column-tiled path mismatch"
    assert jnp.allclose(out_full, ref, atol=1e-5, rtol=1e-5), \
        "f32 weight-resident path mismatch"

    # --- Fast path (bf16 weights/activations, bf16 output, auto tiling). ----
    prep_bf16 = prepare_decoder_params(params, weight_dtype=jnp.bfloat16)
    out_fast = jax.block_until_ready(vae_decoder_forward(z, prep_bf16, C))
    assert out_fast.shape == (B, C, 28, 28), out_fast.shape
    assert out_fast.dtype == jnp.bfloat16
    max_err = float(jnp.max(jnp.abs(out_fast.astype(jnp.float32) - ref)))
    assert max_err < 5e-2, f"bf16 path mismatch, max abs err {max_err}"

    print("KERNEL_OK")
</pallas_src>

<mosaic_0001>
module attributes {stable_mosaic.version = 11 : i64} {
  func.func @_decoder_kernel_coltiled(%arg0: i32, %arg1: i32, %arg2: memref<8x20xf32, #tpu.memory_space<vmem>>, %arg3: memref<20x256xf32, #tpu.memory_space<vmem>>, %arg4: memref<1x256xf32, #tpu.memory_space<vmem>>, %arg5: memref<256x768xf32, #tpu.memory_space<vmem>>, %arg6: memref<1x768xf32, #tpu.memory_space<vmem>>, %arg7: memref<768x640xf32, #tpu.memory_space<vmem>>, %arg8: memref<1x640xf32, #tpu.memory_space<vmem>>, %arg9: memref<8x640xf32, #tpu.memory_space<vmem>>, %arg10: memref<8x768xf32, #tpu.memory_space<vmem>>) attributes {dimension_semantics = [#tpu.dimension_semantics<arbitrary>, #tpu.dimension_semantics<arbitrary>], iteration_bounds = array<i64: 1, 4>, scalar_prefetch = 0 : i64, scratch_operands = 1 : i64, tpu.core_type = #tpu.core_type<tc>, window_params = [{transform_indices = @transform_0, window_bounds = array<i64: 8, 20>}, {pipeline_mode = #tpu.pipeline_mode<synchronous>, transform_indices = @transform_1, window_bounds = array<i64: 20, 256>}, {pipeline_mode = #tpu.pipeline_mode<synchronous>, transform_indices = @transform_2, window_bounds = array<i64: 1, 256>}, {pipeline_mode = #tpu.pipeline_mode<synchronous>, transform_indices = @transform_3, window_bounds = array<i64: 256, 768>}, {pipeline_mode = #tpu.pipeline_mode<synchronous>, transform_indices = @transform_4, window_bounds = array<i64: 1, 768>}, {transform_indices = @transform_5, window_bounds = array<i64: 768, 640>}, {transform_indices = @transform_6, window_bounds = array<i64: 1, 640>}, {transform_indices = @transform_7, window_bounds = array<i64: 8, 640>}]} {
    %c0_i32 = arith.constant 0 : i32
    %0 = arith.cmpi eq, %arg1, %c0_i32 : i32
    %1 = arith.extui %0 : i1 to i32
    %c0_i32_0 = arith.constant 0 : i32
    %2 = arith.cmpi ne, %1, %c0_i32_0 : i32
    scf.if %2 {
      %c0_9 = arith.constant 0 : index
      %c0_10 = arith.constant 0 : index
      %15 = vector.load %arg2[%c0_9, %c0_10] : memref<8x20xf32, #tpu.memory_space<vmem>>, vector<8x20xf32>
      %c0_11 = arith.constant 0 : index
      %c0_12 = arith.constant 0 : index
      %16 = vector.load %arg3[%c0_11, %c0_12] : memref<20x256xf32, #tpu.memory_space<vmem>>, vector<20x256xf32>
      %cst_13 = arith.constant dense<0.000000e+00> : vector<8x256xf32>
      %17 = tpu.matmul %15, %16, %cst_13 {dimension_numbers = #tpu.dot_dimension_numbers<[1], [0], [0], [1], [0, 0, 1, 1], [], []>} : vector<8x20xf32>, vector<20x256xf32>, vector<8x256xf32> -> vector<8x256xf32>
      %c0_14 = arith.constant 0 : index
      %c0_15 = arith.constant 0 : index
      %18 = vector.load %arg4[%c0_14, %c0_15] : memref<1x256xf32, #tpu.memory_space<vmem>>, vector<1x256xf32>
      %19 = vector.broadcast %18 : vector<1x256xf32> to vector<8x256xf32>
      %20 = arith.addf %17, %19 : vector<8x256xf32>
      %cst_16 = arith.constant 0.000000e+00 : f32
      %21 = vector.broadcast %cst_16 : f32 to vector<8x256xf32>
      %22 = arith.cmpf ogt, %20, %21 : vector<8x256xf32>
      %cst_17 = arith.constant 0.00999999977 : f32
      %23 = vector.broadcast %cst_17 : f32 to vector<8x256xf32>
      %24 = arith.mulf %23, %20 : vector<8x256xf32>
      %25 = arith.select %22, %20, %24 : vector<8x256xi1>, vector<8x256xf32>
      %c0_18 = arith.constant 0 : index
      %c0_19 = arith.constant 0 : index
      %26 = vector.load %arg5[%c0_18, %c0_19] : memref<256x768xf32, #tpu.memory_space<vmem>>, vector<256x768xf32>
      %cst_20 = arith.constant dense<0.000000e+00> : vector<8x768xf32>
      %27 = tpu.matmul %25, %26, %cst_20 {dimension_numbers = #tpu.dot_dimension_numbers<[1], [0], [0], [1], [0, 0, 1, 1], [], []>} : vector<8x256xf32>, vector<256x768xf32>, vector<8x768xf32> -> vector<8x768xf32>
      %c0_21 = arith.constant 0 : index
      %c0_22 = arith.constant 0 : index
      %28 = vector.load %arg6[%c0_21, %c0_22] : memref<1x768xf32, #tpu.memory_space<vmem>>, vector<1x768xf32>
      %29 = vector.broadcast %28 : vector<1x768xf32> to vector<8x768xf32>
      %30 = arith.addf %27, %29 : vector<8x768xf32>
      %cst_23 = arith.constant 0.000000e+00 : f32
      %31 = vector.broadcast %cst_23 : f32 to vector<8x768xf32>
      %32 = arith.cmpf ogt, %30, %31 : vector<8x768xf32>
      %cst_24 = arith.constant 0.00999999977 : f32
      %33 = vector.broadcast %cst_24 : f32 to vector<8x768xf32>
      %34 = arith.mulf %33, %30 : vector<8x768xf32>
      %35 = arith.select %32, %30, %34 : vector<8x768xi1>, vector<8x768xf32>
      %c0_25 = arith.constant 0 : index
      %c0_26 = arith.constant 0 : index
      %36 = vector.load %arg10[%c0_25, %c0_26] : memref<8x768xf32, #tpu.memory_space<vmem>>, vector<8x768xf32>
      tpu.vector_store %arg10[%c0_25, %c0_26], %35 {strides = array<i32>} : memref<8x768xf32, #tpu.memory_space<vmem>>, vector<8x768xf32>,
    } else {
    }
    %c0 = arith.constant 0 : index
    %c0_1 = arith.constant 0 : index
    %3 = vector.load %arg10[%c0, %c0_1] : memref<8x768xf32, #tpu.memory_space<vmem>>, vector<8x768xf32>
    %c0_2 = arith.constant 0 : index
    %c0_3 = arith.constant 0 : index
    %4 = vector.load %arg7[%c0_2, %c0_3] : memref<768x640xf32, #tpu.memory_space<vmem>>, vector<768x640xf32>
    %cst = arith.constant dense<0.000000e+00> : vector<8x640xf32>
    %5 = tpu.matmul %3, %4, %cst {dimension_numbers = #tpu.dot_dimension_numbers<[1], [0], [0], [1], [0, 0, 1, 1], [], []>} : vector<8x768xf32>, vector<768x640xf32>, vector<8x640xf32> -> vector<8x640xf32>
    %c0_4 = arith.constant 0 : index
    %c0_5 = arith.constant 0 : index
    %6 = vector.load %arg8[%c0_4, %c0_5] : memref<1x640xf32, #tpu.memory_space<vmem>>, vector<1x640xf32>
    %7 = vector.broadcast %6 : vector<1x640xf32> to vector<8x640xf32>
    %8 = arith.addf %5, %7 : vector<8x640xf32>
    %9 = arith.negf %8 : vector<8x640xf32>
    %10 = math.exp %9 : vector<8x640xf32>
    %cst_6 = arith.constant 1.000000e+00 : f32
    %11 = vector.broadcast %cst_6 : f32 to vector<8x640xf32>
    %12 = arith.addf %11, %10 : vector<8x640xf32>
    %13 = arith.divf %11, %12 : vector<8x640xf32>
    %c0_7 = arith.constant 0 : index
    %c0_8 = arith.constant 0 : index
    %14 = vector.load %arg9[%c0_7, %c0_8] : memref<8x640xf32, #tpu.memory_space<vmem>>, vector<8x640xf32>
    tpu.vector_store %arg9[%c0_7, %c0_8], %13 {strides = array<i32>} : memref<8x640xf32, #tpu.memory_space<vmem>>, vector<8x640xf32>,
    return
  }
  func.func @transform_0(%arg0: i32, %arg1: i32) -> (i32, i32) {
    %c0_i32 = arith.constant 0 : i32
    %c0_i32_0 = arith.constant 0 : i32
    return %arg0, %c0_i32 : i32, i32
  }
  func.func @transform_1(%arg0: i32, %arg1: i32) -> (i32, i32) {
    %c0_i32 = arith.constant 0 : i32
    %c0_i32_0 = arith.constant 0 : i32
    %c0_i32_1 = arith.constant 0 : i32
    return %c0_i32, %c0_i32_0 : i32, i32
  }
  func.func @transform_2(%arg0: i32, %arg1: i32) -> (i32, i32) {
    %c0_i32 = arith.constant 0 : i32
    %c0_i32_0 = arith.constant 0 : i32
    %c0_i32_1 = arith.constant 0 : i32
    return %c0_i32, %c0_i32_0 : i32, i32
  }
  func.func @transform_3(%arg0: i32, %arg1: i32) -> (i32, i32) {
    %c0_i32 = arith.constant 0 : i32
    %c0_i32_0 = arith.constant 0 : i32
    %c0_i32_1 = arith.constant 0 : i32
    return %c0_i32, %c0_i32_0 : i32, i32
  }
  func.func @transform_4(%arg0: i32, %arg1: i32) -> (i32, i32) {
    %c0_i32 = arith.constant 0 : i32
    %c0_i32_0 = arith.constant 0 : i32
    %c0_i32_1 = arith.constant 0 : i32
    return %c0_i32, %c0_i32_0 : i32, i32
  }
  func.func @transform_5(%arg0: i32, %arg1: i32) -> (i32, i32) {
    %c0_i32 = arith.constant 0 : i32
    %c0_i32_0 = arith.constant 0 : i32
    return %c0_i32, %arg1 : i32, i32
  }
  func.func @transform_6(%arg0: i32, %arg1: i32) -> (i32, i32) {
    %c0_i32 = arith.constant 0 : i32
    %c0_i32_0 = arith.constant 0 : i32
    return %c0_i32, %arg1 : i32, i32
  }
  func.func @transform_7(%arg0: i32, %arg1: i32) -> (i32, i32) {
    %c0_i32 = arith.constant 0 : i32
    return %arg0, %arg1 : i32, i32
  }
}

</mosaic_0001>

<bundles_post_ra>
// kernel: tpu_custom_call.1
= control target key start
LH: loop header
LB: loop body
LE: loop exit
PB: predicated region body
PF: predicated region fallthrough
CT: control target
= control target key end

     0   :  { %s4543_s0 = inlined_call_operand.hbm [shape: f32[8,20], index: 0, kind: input, shape index: {}]   ;;  %s4544_s1 = inlined_call_operand.hbm [shape: f32[20,256], index: 1, kind: input, shape index: {}]   ;;  %s4545_s2 = inlined_call_operand.hbm [shape: f32[1,256], index: 2, kind: input, shape index: {}]   ;;  %s4546_s3 = inlined_call_operand.hbm [shape: f32[256,768], index: 3, kind: input, shape index: {}]   ;;  %s4547_s4 = inlined_call_operand.hbm [shape: f32[1,768], index: 4, kind: input, shape index: {}]   ;;  %s4548_s5 = inlined_call_operand.hbm [shape: f32[768,2560], index: 5, kind: input, shape index: {}]   ;;  %s4549_s6 = inlined_call_operand.hbm [shape: f32[1,2560], index: 6, kind: input, shape index: {}]   ;;  %s4550_s7 = inlined_call_operand.hbm [shape: f32[8,2560], index: 7, kind: output, shape index: {}]  }
   0x1   :  { %4566 = sst [smem:[#allocation26_spill]] %s4544_s1 }
   0x2   :  { %4567 = sst [smem:[#allocation27_spill]] %s4546_s3 }
   0x3   :  { %4568 = sst [smem:[#allocation28_spill]] %s4548_s5 }
   0x4   :  { %12 = vsyncpa [#allocation4], 0 }
   0x5   :  { %13 = vsyncpa [#allocation7], 0 }
   0x6   :  { %14 = vsyncpa [#allocation10], 0 }
   0x7   :  { %15 = vsyncpa [#allocation13], 0 }
   0x8   :  { %17 = vsyncpa [#allocation13 + $0x1], 0 }
   0x9   :  { %18 = vsyncpa [#allocation5], 0 }
   0xa   :  { %20 = vsyncpa [#allocation5 + $0x1], 0  ;;  %s3679_s24 = smov 0   ;;  %s3681_s25 = smov 0  }
   0xb   :  { %s3683_s26 = smov 0   ;;  %s3685_s27 = smov 0  }
   0xc   :  { %s3687_s28 = smov 0   ;;  %s3689_s29 = smov 0  }
   0xd LB: > { %4569 = sst [smem:[#allocation21_spill]] %s3601_s24  ;;  %s3710_s30 = sadd.s32 4294967295, %s3621_s29   ;;  %s3621_s29 = sphi %s3689_s29, %s26_s29   ;;  %s3617_s28 = sphi %s3687_s28, %s4609_s28   ;;  %s3613_s27 = sphi %s3685_s27, %s4608_s27   ;;  %s3609_s26 = sphi %s3683_s26, %s4607_s26   ;;  %s3605_s25 = sphi %s3681_s25, %s4606_s25   ;;  %s3601_s24 = sphi %s3679_s24, %s4605_s24  }
   0xe   : > { %4570 = sst [smem:[#allocation22_spill]] %s3621_s29  ;;  %s2350_s8 = sadd.s32 4294967294, %s3621_s29  }
   0xf   : > { %p168_p0 = scmp.ne.s32.totalorder %s3605_s25, %s3601_s24  ;;  %p4551_p1 = scmp.eq.s32.totalorder %s3710_s30, 0 }
  0x10   : > { %p226_p3 = scmp.eq.s32.totalorder %s2350_s8, 3  ;;  %p2351_p5 = scmp.ge.s32.totalorder %s3621_s29, 1 }
  0x11   : > { %p3719_p4 = por %p4551_p1, %p168_p0  ;;  %p233_p7 = scmp.lt.s32.totalorder %s3621_s29, 5 }
  0x12   : > { %p3724_p6 = por %p226_p3, %p168_p0  ;;  %s3623_s12 = smov [#allocation6]  }
  0x13   : > { %s4571_s9 = scalar_select %p3719_p4, 1, 0 }
  0x14   : > { %s4572_s10 = scalar_select %p3724_p6, 1, 0 }
  0x15   : > { %p3729_p8 = pnand %p2351_p5, %p233_p7  ;;  %s258_s13 = sshll.u32 %s3623_s12, 4  ;;  %s259_s13 = int_to_ptr.vmem [resolvable:$true] %s258_s13 }
  0x16   : > { %4573 = sst [smem:[#allocation23_spill]] %s4572_s10  ;;  %s3624_s15 = smov [#allocation9]  }
  0x17   : > { %s4574_s11 = scalar_select %p3729_p8, 1, 0 }
  0x18   : > { %p3205_p9 = pneg %p3729_p8  ;;  %s282_s16 = sshll.u32 %s3624_s15, 4  ;;  %s3741_s16 = int_to_ptr.vmem [resolvable:$true] %s282_s16 }
  0x19   : > { %s4576_s1 = sld [smem:[#allocation26_spill]] }
  0x1a   : > { %p3737_p10 = pnand %p3205_p9, %p4551_p1 }
  0x1c   : > { %s4575_s14 = scalar_select %p3737_p10, 1, 0 }
  0x1d   : > { %p3751_p12 = pneg %p3737_p10 }
  0x1f   : > { %s3327_s19 = scalar_lea.hbm %s4576_s1, 768 }
  0x20   : > { %p3328_p11 = scmp.ne.s32.totalorder %s4576_s1, %s3327_s19  ;;  %p3334_p3 = scmp.lt.u32.totalorder %s3327_s19, %s4576_s1 }
  0x22   : > { %p3330_p13 = pnand %p3751_p12, %p3328_p11 }
  0x24   : > { %p3331_p0 = pneg %p3330_p13 }
  0x26   : > { %p3336_p5 = pnand %p3334_p3, %p3331_p0 }
  0x28   : > { %3339 = shalt.err (!%p3336_p5)
}
  0x29   : > { %s3340_s12 = scalar_lea.vmem %s259_s13, 768  ;;  %p3348_p2 = scmp.lt.s32.totalorder %s259_s13, %s259_s13 }
  0x2a   : > { %p3341_p7 = scmp.ne.s32.totalorder %s259_s13, %s3340_s12  ;;  %p3349_p6 = scmp.lt.s32.totalorder %s3340_s12, %s3340_s12 }
  0x2c   : > { %p3343_p9 = pnand %p3341_p7, %p3751_p12  ;;  %p3350_p4 = por %p3349_p6, %p3348_p2 }
  0x2e   : > { %p3344_p1 = pneg %p3343_p9 }
  0x30   : > { %p3351_p8 = pnand %p3350_p4, %p3344_p1 }
  0x32   : > { %3354 = shalt.err (!%p3351_p8)
}
  0x33   : > { %s3625_s15 = smov 256   ;;  %s3626_s17 = smov 16  }
  0x34   : > { %3211 = dma.hbm_to_vmem [thread:$0]  (!%p3737_p10), %s4576_s1, 768, %s259_s13, [#allocation7], %s3625_s15, %s3625_s15, %s3626_s17  }
  0x35   : > { %s4578_s3 = sld [smem:[#allocation27_spill]] }
  0x3b   : > { %s3355_s23 = scalar_lea.hbm %s4578_s3, 24576 }
  0x3c   : > { %p3356_p11 = scmp.ne.s32.totalorder %s4578_s3, %s3355_s23  ;;  %p3362_p4 = scmp.lt.u32.totalorder %s3355_s23, %s4578_s3 }
  0x3e   : > { %p3358_p1 = pnand %p3356_p11, %p3751_p12 }
  0x40   : > { %p3359_p2 = pneg %p3358_p1 }
  0x42   : > { %p3364_p6 = pnand %p3362_p4, %p3359_p2 }
  0x44   : > { %3367 = shalt.err (!%p3364_p6)
}
  0x45   : > { %s3368_s13 = scalar_lea.vmem %s3741_s16, 24576  ;;  %p3376_p3 = scmp.lt.s32.totalorder %s3741_s16, %s3741_s16 }
  0x46   : > { %p3369_p8 = scmp.ne.s32.totalorder %s3741_s16, %s3368_s13  ;;  %p3377_p5 = scmp.lt.s32.totalorder %s3368_s13, %s3368_s13 }
  0x48   : > { %p3371_p13 = pnand %p3369_p8, %p3751_p12  ;;  %p3378_p7 = por %p3377_p5, %p3376_p3 }
  0x4a   : > { %p3372_p0 = pneg %p3371_p13 }
  0x4c   : > { %p3379_p9 = pnand %p3378_p7, %p3372_p0 }
  0x4e   : > { %3382 = shalt.err (!%p3379_p9)
}
  0x4f   : > { %s3627_s10 = smov 768   ;;  %s3628_s24 = smov 48  }
  0x50   : > { %3217 = dma.hbm_to_vmem [thread:$0]  (!%p3737_p10), %s4578_s3, 24576, %s3741_s16, [#allocation10], %s3627_s10, %s3627_s10, %s3628_s24  }
  0x51   : > { %s35_s18 = sadd.s32 1, %s3617_s28  ;;  %s155_s19 = sadd.s32 1, %s3609_s26 }
  0x52   : > { %p36_p11 = scmp.ge.s32.totalorder %s35_s18, 4  ;;  %p162_p1 = scmp.ne.s32.totalorder %s3609_s26, %s3605_s25 }
  0x53   : > { %p163_p2 = scmp.eq.s32.totalorder %s3621_s29, 0  ;;  %p3237_p4 = scmp.lt.s32.totalorder %s3621_s29, 4 }
  0x54   : > { %s4611_s18 = smov (%p36_p11, %s35_s18), 0  ;;  %p4580_p8 = scmp.eq.s32.totalorder %s3710_s30, 3 }
  0x55   : > { %4579 = sst [smem:[#allocation24_spill]] %s4611_s18  ;;  %p164_p6 = por %p163_p2, %p162_p1 }
  0x56   : > { %p3800_p13 = por %p4580_p8, %p162_p1  ;;  %s152_s21 = ssub.s32 %s3617_s28, %s4611_s18 }
  0x57   : > { %s307_s23 = sand.u32 1, %s3621_s29   ;;  %p153_p0 = scmp.eq.s32.totalorder %s152_s21, 0 }
  0x58   : > { %s4581_s20 = scalar_select %p3800_p13, 1, 0 }
  0x59   : > { %s4556_s16 = sand.u32 1, %s3609_s26   ;;  %s2378_s8 = smul.u32 640, %s3617_s28 }
  0x5a   : > { %s3810_s12 = scalar_select %p153_p0, %s3609_s26, %s155_s19  }
  0x5b   : > { %s3174_s13 = smul.u32 3840, %s4556_s16  ;;  %s4583_s5 = sld [smem:[#allocation28_spill]] }
  0x5c   : > { %4582 = sst [smem:[#allocation25_spill]] %s3810_s12  ;;  %p3819_p3 = pnand %p3237_p4, %p164_p6 }
  0x5d   : > { %s311_s21 = scalar_lea.vmem [#allocation12], %s3174_s13  ;;  %s3825_s16 = scalar_lea.sflag [#allocation13], %s307_s23 }
  0x5e   : > { %s4584_s17 = scalar_select %p3819_p3, 1, 0 }
  0x5f   : > { %s318_s19 = sshll.u32 %s311_s21, 4  ;;  %p4563_p7 = pneg %p3819_p3  ;;  %s3823_s19 = int_to_ptr.vmem [resolvable:$true] %s318_s19 }
  0x61   : > { %s3817_s15 = scalar_lea.hbm %s4583_s5, %s2378_s8  ;;  %s3388_s24 = scalar_lea.hbm %s4583_s5, 245760 }
  0x62   : > { %s3383_s1 = scalar_lea.hbm %s3817_s15, 61440  ;;  %p3389_p1 = scmp.lt.u32.totalorder %s3817_s15, %s4583_s5 }
  0x63   : > { %p3384_p5 = scmp.ne.s32.totalorder %s3817_s15, %s3383_s1  ;;  %p3390_p2 = scmp.lt.u32.totalorder %s3388_s24, %s3383_s1 }
  0x64   : > { %p3392_p6 = scmp.lt.u32.totalorder %s3383_s1, %s3817_s15 }
  0x65   : > { %p3386_p9 = pnand %p4563_p7, %p3384_p5  ;;  %p3391_p4 = por %p3390_p2, %p3389_p1 }
  0x67   : > { %p3387_p11 = pneg %p3386_p9  ;;  %p3393_p8 = por %p3392_p6, %p3391_p4 }
  0x69   : > { %p3394_p0 = pnand %p3393_p8, %p3387_p11 }
  0x6b   : > { %3397 = shalt.err (!%p3394_p0)
}
  0x6c   : > { %s3398_s23 = scalar_lea.vmem %s3823_s19, 61440  ;;  %s3629_s13 = smov [#allocation12]  }
  0x6d   : > { %p3399_p5 = scmp.ne.s32.totalorder %s3823_s19, %s3398_s23  ;;  %s3403_s21 = sshll.u32 %s3629_s13, 4  ;;  %s3404_s21 = int_to_ptr.vmem [resolvable:$false] %s3403_s21 }
  0x6e   : > { %s3405_s3 = scalar_lea.vmem %s3404_s21, 122880  ;;  %p3406_p10 = scmp.lt.s32.totalorder %s3823_s19, %s3404_s21 }
  0x6f   : > { %p3401_p9 = pnand %p3399_p5, %p4563_p7  ;;  %p3407_p1 = scmp.lt.s32.totalorder %s3405_s3, %s3398_s23 }
  0x71   : > { %p3402_p13 = pneg %p3401_p9  ;;  %p3408_p2 = por %p3407_p1, %p3406_p10 }
  0x73   : > { %p3409_p4 = pnand %p3408_p2, %p3402_p13 }
  0x75   : > { %3412 = shalt.err (!%p3409_p4)
}
  0x76   : > { %s3630_s1 = smov 2560   ;;  %s3631_s18 = smov 640  }
  0x77   : > { %s3632_s8 = smov 40   ;;  %s3633_s10 = smov [#allocation3]  }
  0x78   : > { %3224 = dma.hbm_to_vmem [thread:$0]  (!%p3819_p3), %s3817_s15, 61440, %s3823_s19, %s3825_s16, %s3630_s1, %s3631_s18, %s3632_s8  }
  0x79   : > { %s248_s24 = sshll.u32 %s3633_s10, 4  ;;  %s3413_s23 = scalar_lea.hbm %s4543_s0, 128  ;;  %s249_s24 = int_to_ptr.vmem [resolvable:$true] %s248_s24 }
  0x7a   : > { %p3414_p10 = scmp.ne.s32.totalorder %s4543_s0, %s3413_s23  ;;  %p3420_p6 = scmp.lt.u32.totalorder %s3413_s23, %s4543_s0 }
  0x7c   : > { %p3416_p13 = pnand %p3414_p10, %p3751_p12 }
  0x7e   : > { %p3417_p11 = pneg %p3416_p13 }
  0x80   : > { %p3422_p8 = pnand %p3420_p6, %p3417_p11 }
  0x82   : > { %3425 = shalt.err (!%p3422_p8)
}
  0x83   : > { %s3426_s15 = scalar_lea.vmem %s249_s24, 128  ;;  %p3434_p1 = scmp.lt.s32.totalorder %s249_s24, %s249_s24 }
  0x84   : > { %p3427_p0 = scmp.ne.s32.totalorder %s249_s24, %s3426_s15  ;;  %p3435_p2 = scmp.lt.s32.totalorder %s3426_s15, %s3426_s15 }
  0x86   : > { %p3429_p5 = pnand %p3427_p0, %p3751_p12  ;;  %p3436_p4 = por %p3435_p2, %p3434_p1 }
  0x88   : > { %p3430_p9 = pneg %p3429_p5 }
  0x8a   : > { %p3437_p7 = pnand %p3436_p4, %p3430_p9 }
  0x8c   : > { %3440 = shalt.err (!%p3437_p7)
}
  0x8d   : > { %p4585_p10 = scmp.ne.s32.totalorder %s4575_s14, 0  ;;  %s3634_s29 = smov [#allocation8]  }
  0x8e   : > { %s272_s12 = sshll.u32 %s3634_s29, 4  ;;  %s3635_s1 = smov [#allocation11]   ;;  %s273_s12 = int_to_ptr.vmem [resolvable:$true] %s272_s12 }
  0x8f   : > { %3208 = dma.hbm_to_vmem [thread:$0]  (!%p4585_p10), %s4543_s0, 128, %s249_s24, [#allocation4]  }
  0x90   : > { %s296_s18 = sshll.u32 %s3635_s1, 4  ;;  %s3441_s13 = scalar_lea.hbm %s4545_s2, 32  ;;  %s297_s18 = int_to_ptr.vmem [resolvable:$true] %s296_s18 }
  0x91   : > { %p3442_p7 = scmp.ne.s32.totalorder %s4545_s2, %s3441_s13  ;;  %p3448_p6 = scmp.lt.u32.totalorder %s3441_s13, %s4545_s2 }
  0x93   : > { %p3444_p13 = pnand %p3442_p7, %p3751_p12 }
  0x95   : > { %p3445_p11 = pneg %p3444_p13 }
  0x97   : > { %p3450_p8 = pnand %p3448_p6, %p3445_p11 }
  0x99   : > { %3453 = shalt.err (!%p3450_p8)
}
  0x9a   : > { %s3454_s24 = scalar_lea.vmem %s273_s12, 32  ;;  %p3462_p1 = scmp.lt.s32.totalorder %s273_s12, %s273_s12 }
  0x9b   : > { %p3455_p0 = scmp.ne.s32.totalorder %s273_s12, %s3454_s24  ;;  %p3463_p2 = scmp.lt.s32.totalorder %s3454_s24, %s3454_s24 }
  0x9d   : > { %p3457_p5 = pnand %p3455_p0, %p3751_p12  ;;  %p3464_p4 = por %p3463_p2, %p3462_p1 }
  0x9f   : > { %p3458_p9 = pneg %p3457_p5 }
  0xa1   : > { %p3465_p3 = pnand %p3464_p4, %p3458_p9 }
  0xa3   : > { %3468 = shalt.err (!%p3465_p3)
}
  0xa4   : > { %3214 = dma.hbm_to_vmem [thread:$0]  (!%p4585_p10), %s4545_s2, 32, %s273_s12, [#allocation7]  }
  0xa5   : > { %s4586_s29 = sand.u32 1, %s3609_s26   ;;  %s3469_s13 = scalar_lea.hbm %s4547_s4, 96 }
  0xa6   : > { %s3175_s1 = smul.u32 5, %s4586_s29  ;;  %p3470_p7 = scmp.ne.s32.totalorder %s4547_s4, %s3469_s13 }
  0xa7   : > { %p3476_p11 = scmp.lt.u32.totalorder %s3469_s13, %s4547_s4 }
  0xa8   : > { %p3472_p3 = pnand %p3470_p7, %p3751_p12 }
  0xaa   : > { %p3473_p13 = pneg %p3472_p3 }
  0xac   : > { %p3478_p6 = pnand %p3476_p11, %p3473_p13 }
  0xae   : > { %3481 = shalt.err (!%p3478_p6)
}
  0xaf   : > { %s3482_s12 = scalar_lea.vmem %s297_s18, 96  ;;  %p3490_p9 = scmp.lt.s32.totalorder %s297_s18, %s297_s18 }
  0xb0   : > { %p3483_p8 = scmp.ne.s32.totalorder %s297_s18, %s3482_s12  ;;  %p3491_p1 = scmp.lt.s32.totalorder %s3482_s12, %s3482_s12 }
  0xb2   : > { %p3485_p0 = pnand %p3483_p8, %p3751_p12  ;;  %p3492_p2 = por %p3491_p1, %p3490_p9 }
  0xb4   : > { %p3486_p5 = pneg %p3485_p0 }
  0xb6   : > { %p3493_p4 = pnand %p3492_p2, %p3486_p5 }
  0xb8   : > { %3496 = shalt.err (!%p3493_p4)
}
  0xb9   : > { %3220 = dma.hbm_to_vmem [thread:$0]  (!%p4585_p10), %s4547_s4, 96, %s297_s18, [#allocation10]  }
  0xba   : > { %s2379_s19 = smul.u32 80, %s3617_s28  ;;  %s332_s29 = scalar_lea.vmem [#allocation14], %s3175_s1 }
  0xbb   : > { %s340_s8 = sshll.u32 %s332_s29, 4  ;;  %p4587_p7 = scmp.ne.s32.totalorder %s4584_s17, 0  ;;  %s341_s8 = int_to_ptr.vmem [resolvable:$true] %s340_s8 }
  0xbc   : > { %s338_s13 = scalar_lea.hbm %s4549_s6, %s2379_s19  ;;  %s3502_s3 = scalar_lea.hbm %s4549_s6, 320 }
  0xbd   : > { %s3497_s23 = scalar_lea.hbm %s338_s13, 80  ;;  %p4588_p3 = pneg %p4587_p7 }
  0xbe   : > { %p3498_p12 = scmp.ne.s32.totalorder %s338_s13, %s3497_s23  ;;  %p3503_p10 = scmp.lt.u32.totalorder %s338_s13, %s4549_s6 }
  0xbf   : > { %p3504_p6 = scmp.lt.u32.totalorder %s3502_s3, %s3497_s23  ;;  %p3506_p0 = scmp.lt.u32.totalorder %s3497_s23, %s338_s13 }
  0xc0   : > { %p3500_p13 = pnand %p3498_p12, %p4588_p3 }
  0xc1   : > { %p3505_p8 = por %p3504_p6, %p3503_p10 }
  0xc2   : > { %p3501_p11 = pneg %p3500_p13 }
  0xc3   : > { %p3507_p5 = por %p3506_p0, %p3505_p8 }
  0xc5   : > { %p3508_p9 = pnand %p3507_p5, %p3501_p11 }
  0xc7   : > { %3511 = shalt.err (!%p3508_p9)
}
  0xc8   : > { %s3512_s1 = scalar_lea.vmem %s341_s8, 80  ;;  %p4589_p2 = pmov %p4588_p3 }
  0xc9   : > { %p3513_p1 = scmp.ne.s32.totalorder %s341_s8, %s3512_s1  ;;  %s3636_s12 = smov [#allocation14]  }
  0xca   : > { %s3517_s24 = sshll.u32 %s3636_s12, 4  ;;  %s3518_s24 = int_to_ptr.vmem [resolvable:$false] %s3517_s24 }
  0xcb   : > { %p3515_p4 = pnand %p3513_p1, %p4589_p2  ;;  %s3519_s5 = scalar_lea.vmem %s3518_s24, 160 }
  0xcc   : > { %p3520_p3 = scmp.lt.s32.totalorder %s341_s8, %s3518_s24  ;;  %p3521_p13 = scmp.lt.s32.totalorder %s3519_s5, %s3512_s1 }
  0xcd   : > { %p3516_p12 = pneg %p3515_p4 }
  0xce   : > { %p3522_p6 = por %p3521_p13, %p3520_p3 }
  0xd0   : > { %p3523_p10 = pnand %p3522_p6, %p3516_p12 }
  0xd2   : > { %3526 = shalt.err (!%p3523_p10)
}
  0xd3   : > { %3227 = dma.hbm_to_vmem [thread:$0]  (!%p4587_p7), %s338_s13, 80, %s341_s8, %s3825_s16  }
  0xd4   : > { %p4590_p11 = scmp.ne.s32.totalorder %s4574_s11, 0 }
  0xd5   : > { %p4591_p8 = scmp.eq.s32.totalorder (!%p4590_p11), %s3710_s30, 0 }
  0xd6   : > { %349 = sbr.rel (%p4590_p11) target bundleno = 1263 (0x4ef), region = 48 }
  0xdd   : > { %3580 = dma.done.wait (%p4591_p8), [#allocation4], 128   ;;  %p4592_p0 = pmov %p4591_p8 }
  0xdf   : > { %3582 = vsyncadd (%p4592_p0), [#allocation4], 4294967168  ;;  %p4593_p5 = pmov %p4592_p0 }
  0xe0   : > { %p4594_p9 = pmov %p4592_p0 }
  0xe1   : > { %3584 = dma.done.wait (%p4593_p5), [#allocation7], 800  }
  0xe2   : > { %3586 = vsyncadd (%p4594_p9), [#allocation7], 4294966496  ;;  %p4595_p1 = pmov %p4592_p0 }
  0xe3   : > { %p4596_p7 = pmov %p4592_p0 }
  0xe4   : > { %3588 = dma.done.wait (%p4595_p1), [#allocation10], 24672  }
  0xe5   : > { %3590 = vsyncadd (%p4596_p7), [#allocation10], 4294942624  ;;  %s371_s11 = sand.u32 1, %s3710_s30   ;;  %s3944_s16 = sand.u32 1, %s3605_s25  }
  0xe6   : > { %s3176_s17 = smul.u32 3840, %s3944_s16  ;;  %s372_s19 = scalar_lea.sflag [#allocation13], %s371_s11 }
  0xe7   : > { %p4597_p2 = scmp.ne.s32.totalorder %s4571_s9, 0 }
  0xe8   : > { %s3947_s29 = scalar_lea.vmem [#allocation12], %s3176_s17 }
  0xe9   : > { %3592 = dma.done.wait (%p4597_p2), %s372_s19, 61520  }
  0xea   : > { %3594 = vsyncadd (%p4597_p2), %s372_s19, 4294905776  ;;  %s3177_s8 = smul.u32 5, %s3944_s16  ;;  %p2366_p4 = scmp.ne.s32.totalorder %s3613_s27, 0 }
  0xeb   : > { %s3178_s10 = smul.u32 40, %s3944_s16  ;;  %v429_v0 = vld [vmem:[#allocation6 + $0x8] sm:$0xff] (!%p2366_p4)  ;;  %v431_v1 = vld [vmem:[#allocation6 + $0x18] sm:$0xff] (!%p2366_p4)  ;;  %v428_v2 = vld [vmem:[#allocation6] sm:$0xff] (!%p2366_p4)  ;;  %v3637_v5 = vmov (!%p2366_p4), 0.0   ;;  %vm450_vm0 = vcmask (!%p2366_p4), 1043456  }
  0xec   : > { %s3955_s22 = scalar_lea.vmem [#allocation14], %s3177_s8  ;;  %426 = sbr.rel (%p2366_p4) target bundleno = 746 (0x2ea), region = 80  ;;  %v2486_v3 = vpack.c.bf16 (!%p2366_p4), %v431_v1, %v429_v0  ;;  %v430_v4 = vld [vmem:[#allocation6 + $0x10] sm:$0xff] (!%p2366_p4)  ;;  %521 = vmatprep.mubr.f32.mxu0 (!%p2366_p4), %v3637_v5  ;;  %v433_v7 = vld [vmem:[#allocation6 + $0x28] sm:$0xf] (!%p2366_p4)  ;;  %v535_v8 = vld [vmem:[#allocation9 + $0x8] sm:$0xff] (!%p2366_p4) }
  0xed   : > { %s3957_s13 = scalar_lea.vmem [#allocation15], %s3178_s10  ;;  %v2488_v6 = vpack.c.bf16 (!%p2366_p4), %v430_v4, %v428_v2  ;;  %v541_v9 = vld [vmem:[#allocation9 + $0x38] sm:$0xff] (!%p2366_p4)  ;;  %v432_v10 = vld [vmem:[#allocation6 + $0x20] sm:$0xf] (!%p2366_p4)  ;;  %v534_v12 = vld [vmem:[#allocation9] sm:$0xff] (!%p2366_p4)  ;;  %vm446_vm1 = vcmask (!%p2366_p4), 162816  }
  0xee   : > { %2487 = vmatprep.subr.bf16.mxu0 (!%p2366_p4), %v2486_v3  ;;  %v2490_v11 = vpack.c.bf16 (!%p2366_p4), %v541_v9, %v535_v8  ;;  %v540_v13 = vld [vmem:[#allocation9 + $0x30] sm:$0xff] (!%p2366_p4)  ;;  %v537_v14 = vld [vmem:[#allocation9 + $0x18] sm:$0xff] (!%p2366_p4)  ;;  %v427_v15 = vld [vmem:[#allocation3] sm:$0xff] (!%p2366_p4) }
  0xef   : > { %2489 = vmatpush1.bf16.msra.mxu0 (!%p2366_p4), %v2488_v6  ;;  %v2492_v16 = vpack.c.bf16 (!%p2366_p4), %v540_v13, %v534_v12  ;;  %v543_v17 = vld [vmem:[#allocation9 + $0x48] sm:$0xff] (!%p2366_p4)  ;;  %v536_v18 = vld [vmem:[#allocation9 + $0x10] sm:$0xff] (!%p2366_p4)  ;;  %v542_v19 = vld [vmem:[#allocation9 + $0x40] sm:$0xff] (!%p2366_p4) }
  0xf0   : > { %2367 = vmatprep.subr.msk.mxu0 (!%p2366_p4), %vm450_vm0, %v433_v7  ;;  %2491 = vmatprep.subr.bf16.mxu1 (!%p2366_p4), %v2490_v11  ;;  %v2554_v20 = vpack.c.bf16 (!%p2366_p4), %v543_v17, %v537_v14  ;;  %v547_v21 = vld [vmem:[#allocation9 + $0x68] sm:$0xff] (!%p2366_p4)  ;;  %v553_v22 = vld [vmem:[#allocation9 + $0x98] sm:$0xff] (!%p2366_p4)  ;;  %v546_v23 = vld [vmem:[#allocation9 + $0x60] sm:$0xff] (!%p2366_p4)  ;;  %v2556_v24 = vpack.c.bf16 (!%p2366_p4), %v542_v19, %v536_v18 }
  0xf1   : > { %2493 = vmatpush1.bf16.msra.mxu1 (!%p2366_p4), %v2492_v16  ;;  %v2494_v25 = vpack.c.bf16 (!%p2366_p4), %v553_v22, %v547_v21  ;;  %v552_v26 = vld [vmem:[#allocation9 + $0x90] sm:$0xff] (!%p2366_p4)  ;;  %v549_v27 = vld [vmem:[#allocation9 + $0x78] sm:$0xff] (!%p2366_p4)  ;;  %v555_v28 = vld [vmem:[#allocation9 + $0xa8] sm:$0xff] (!%p2366_p4) }
  0xf2   : > { %v2496_v29 = vpack.c.bf16 (!%p2366_p4), %v552_v26, %v546_v23  ;;  %v2558_v30 = vpack.c.bf16 (!%p2366_p4), %v555_v28, %v549_v27  ;;  %v548_v31 = vld [vmem:[#allocation9 + $0x70] sm:$0xff] (!%p2366_p4)  ;;  %v554_v32 = vld [vmem:[#allocation9 + $0xa0] sm:$0xff] (!%p2366_p4)  ;;  %v559_v33 = vld [vmem:[#allocation9 + $0xc8] sm:$0xff] (!%p2366_p4) }
  0xf3   : > { %2368 = vmatpush1.msk.msra.mxu0 %vm450_vm0, %v432_v10  ;;  %2495 = vmatprep.subr.bf16.mxu1 %v2494_v25  ;;  %v565_v34 = vld [vmem:[#allocation9 + $0xf8] sm:$0xff]  ;;  %v558_v35 = vld [vmem:[#allocation9 + $0xc0] sm:$0xff]  ;;  %v564_v36 = vld [vmem:[#allocation9 + $0xf0] sm:$0xff]  ;;  %v2560_v40 = vpack.c.bf16 %v554_v32, %v548_v31 }
  0xf4   : > { %2369 = vmatmul.mubr.msk.f32.vlgmr.msra.gmra.mrb[0].mxu0 %vm446_vm1, %v427_v15  ;;  %2555 = vmatprep.subr.bf16.mxu0 %v2554_v20  ;;  %v2498_v37 = vpack.c.bf16 %v565_v34, %v559_v33  ;;  %v561_v38 = vld [vmem:[#allocation9 + $0xd8] sm:$0xff]  ;;  %v567_v39 = vld [vmem:[#allocation9 + $0x108] sm:$0xff]  ;;  %v2500_v41 = vpack.c.bf16 %v564_v36, %v558_v35  ;;  %v560_v42 = vld [vmem:[#allocation9 + $0xd0] sm:$0xff] }
  0xf5   : > { %2557 = vmatpush1.bf16.msra.mxu0 %v2556_v24  ;;  %2497 = vmatpush1.bf16.msra.mxu1 %v2496_v29  ;;  %v571_v43 = vld [vmem:[#allocation9 + $0x128] sm:$0xff]  ;;  %v577_v44 = vld [vmem:[#allocation9 + $0x158] sm:$0xff]  ;;  %v2562_v45 = vpack.c.bf16 %v567_v39, %v561_v38  ;;  %v566_v46 = vld [vmem:[#allocation9 + $0x100] sm:$0xff] }
  0xf6   : > { %2559 = vmatprep.subr.bf16.mxu0 %v2558_v30  ;;  %2499 = vmatprep.subr.bf16.mxu1 %v2498_v37  ;;  %v2502_v47 = vpack.c.bf16 %v577_v44, %v571_v43  ;;  %v570_v48 = vld [vmem:[#allocation9 + $0x120] sm:$0xff]  ;;  %v576_v49 = vld [vmem:[#allocation9 + $0x150] sm:$0xff]  ;;  %v573_v50 = vld [vmem:[#allocation9 + $0x138] sm:$0xff]  ;;  %v2564_v54 = vpack.c.bf16 %v566_v46, %v560_v42 }
  0xf7   : > { %v579_v51 = vld [vmem:[#allocation9 + $0x168] sm:$0xff]  ;;  %v589_v53 = vld [vmem:[#allocation9 + $0x1b8] sm:$0xff]  ;;  %v2504_v55 = vpack.c.bf16 %v576_v49, %v570_v48  ;;  %v572_v56 = vld [vmem:[#allocation9 + $0x130] sm:$0xff] }
  0xf8   : > { %v583_v52 = vld [vmem:[#allocation9 + $0x188] sm:$0xff]  ;;  %v578_v57 = vld [vmem:[#allocation9 + $0x160] sm:$0xff]  ;;  %v2566_v58 = vpack.c.bf16 %v579_v51, %v573_v50  ;;  %v588_v61 = vld [vmem:[#allocation9 + $0x1b0] sm:$0xff] }
  0xf9   : > { %2561 = vmatpush1.bf16.msra.mxu0 %v2560_v40  ;;  %2501 = vmatpush1.bf16.msra.mxu1 %v2500_v41  ;;  %v2506_v59 = vpack.c.bf16 %v589_v53, %v583_v52  ;;  %v582_v60 = vld [vmem:[#allocation9 + $0x180] sm:$0xff]  ;;  %v585_v62 = vld [vmem:[#allocation9 + $0x198] sm:$0xff]  ;;  %v591_v63 = vld [vmem:[#allocation9 + $0x1c8] sm:$0xff]  ;;  %v2568_v2 = vpack.c.bf16 %v578_v57, %v572_v56 }
  0xfa   : > { %2563 = vmatprep.subr.bf16.mxu0 %v2562_v45  ;;  %2503 = vmatprep.subr.bf16.mxu1 %v2502_v47  ;;  %v595_v0 = vld [vmem:[#allocation9 + $0x1e8] sm:$0xff]  ;;  %v601_v1 = vld [vmem:[#allocation9 + $0x218] sm:$0xff]  ;;  %v2508_v3 = vpack.c.bf16 %v588_v61, %v582_v60  ;;  %v584_v4 = vld [vmem:[#allocation9 + $0x190] sm:$0xff]  ;;  %v2570_v6 = vpack.c.bf16 %v591_v63, %v585_v62 }
  0xfb   : > { %v590_v5 = vld [vmem:[#allocation9 + $0x1c0] sm:$0xff]  ;;  %v2510_v7 = vpack.c.bf16 %v601_v1, %v595_v0  ;;  %v600_v9 = vld [vmem:[#allocation9 + $0x210] sm:$0xff]  ;;  %v597_v10 = vld [vmem:[#allocation9 + $0x1f8] sm:$0xff] }
  0xfc   : > { %v594_v8 = vld [vmem:[#allocation9 + $0x1e0] sm:$0xff]  ;;  %v603_v11 = vld [vmem:[#allocation9 + $0x228] sm:$0xff]  ;;  %v613_v13 = vld [vmem:[#allocation9 + $0x278] sm:$0xff]  ;;  %v2572_v14 = vpack.c.bf16 %v590_v5, %v584_v4 }
  0xfd   : > { %2565 = vmatpush1.bf16.msra.mxu0 %v2564_v54  ;;  %2505 = vmatpush1.bf16.msra.mxu1 %v2504_v55  ;;  %v607_v12 = vld [vmem:[#allocation9 + $0x248] sm:$0xff]  ;;  %v2512_v15 = vpack.c.bf16 %v600_v9, %v594_v8  ;;  %v596_v16 = vld [vmem:[#allocation9 + $0x1f0] sm:$0xff]  ;;  %v602_v17 = vld [vmem:[#allocation9 + $0x220] sm:$0xff]  ;;  %v2574_v18 = vpack.c.bf16 %v603_v11, %v597_v10 }
  0xfe   : > { %2567 = vmatprep.subr.bf16.mxu0 %v2566_v58  ;;  %2507 = vmatprep.subr.bf16.mxu1 %v2506_v59  ;;  %v2514_v19 = vpack.c.bf16 %v613_v13, %v607_v12  ;;  %v606_v20 = vld [vmem:[#allocation9 + $0x240] sm:$0xff]  ;;  %v612_v21 = vld [vmem:[#allocation9 + $0x270] sm:$0xff]  ;;  %v609_v22 = vld [vmem:[#allocation9 + $0x258] sm:$0xff]  ;;  %v2576_v26 = vpack.c.bf16 %v602_v17, %v596_v16 }
  0xff   : > { %v615_v23 = vld [vmem:[#allocation9 + $0x288] sm:$0xff]  ;;  %v625_v25 = vld [vmem:[#allocation9 + $0x2d8] sm:$0xff]  ;;  %v2516_v27 = vpack.c.bf16 %v612_v21, %v606_v20  ;;  %v608_v28 = vld [vmem:[#allocation9 + $0x250] sm:$0xff] }
 0x100   : > { %v619_v24 = vld [vmem:[#allocation9 + $0x2a8] sm:$0xff]  ;;  %v614_v29 = vld [vmem:[#allocation9 + $0x280] sm:$0xff]  ;;  %v2578_v30 = vpack.c.bf16 %v615_v23, %v609_v22  ;;  %v624_v33 = vld [vmem:[#allocation9 + $0x2d0] sm:$0xff] }
 0x101   : > { %2569 = vmatpush1.bf16.msra.mxu0 %v2568_v2  ;;  %2509 = vmatpush1.bf16.msra.mxu1 %v2508_v3  ;;  %v2518_v31 = vpack.c.bf16 %v625_v25, %v619_v24  ;;  %v618_v32 = vld [vmem:[#allocation9 + $0x2a0] sm:$0xff]  ;;  %v621_v34 = vld [vmem:[#allocation9 + $0x2b8] sm:$0xff]  ;;  %v627_v35 = vld [vmem:[#allocation9 + $0x2e8] sm:$0xff]  ;;  %v2580_v38 = vpack.c.bf16 %v614_v29, %v608_v28 }
 0x102   : > { %2571 = vmatprep.subr.bf16.mxu0 %v2570_v6  ;;  %2511 = vmatprep.subr.bf16.mxu1 %v2510_v7  ;;  %v631_v36 = vld [vmem:[#allocation9 + $0x308] sm:$0xff]  ;;  %v637_v37 = vld [vmem:[#allocation9 + $0x338] sm:$0xff]  ;;  %v2520_v39 = vpack.c.bf16 %v624_v33, %v618_v32  ;;  %v620_v40 = vld [vmem:[#allocation9 + $0x2b0] sm:$0xff]  ;;  %v2582_v42 = vpack.c.bf16 %v627_v35, %v621_v34 }
 0x103   : > { %v626_v41 = vld [vmem:[#allocation9 + $0x2e0] sm:$0xff]  ;;  %v2522_v43 = vpack.c.bf16 %v637_v37, %v631_v36  ;;  %v636_v45 = vld [vmem:[#allocation9 + $0x330] sm:$0xff]  ;;  %v633_v46 = vld [vmem:[#allocation9 + $0x318] sm:$0xff] }
 0x104   : > { %v630_v44 = vld [vmem:[#allocation9 + $0x300] sm:$0xff]  ;;  %v639_v47 = vld [vmem:[#allocation9 + $0x348] sm:$0xff]  ;;  %v649_v49 = vld [vmem:[#allocation9 + $0x398] sm:$0xff]  ;;  %v2584_v50 = vpack.c.bf16 %v626_v41, %v620_v40 }
 0x105   : > { %2573 = vmatpush1.bf16.msra.mxu0 %v2572_v14  ;;  %2513 = vmatpush1.bf16.msra.mxu1 %v2512_v15  ;;  %v643_v48 = vld [vmem:[#allocation9 + $0x368] sm:$0xff]  ;;  %v2524_v51 = vpack.c.bf16 %v636_v45, %v630_v44  ;;  %v632_v52 = vld [vmem:[#allocation9 + $0x310] sm:$0xff]  ;;  %v638_v53 = vld [vmem:[#allocation9 + $0x340] sm:$0xff]  ;;  %v2586_v54 = vpack.c.bf16 %v639_v47, %v633_v46 }
 0x106   : > { %2575 = vmatprep.subr.bf16.mxu0 %v2574_v18  ;;  %2515 = vmatprep.subr.bf16.mxu1 %v2514_v19  ;;  %v2526_v55 = vpack.c.bf16 %v649_v49, %v643_v48  ;;  %v642_v56 = vld [vmem:[#allocation9 + $0x360] sm:$0xff]  ;;  %v648_v57 = vld [vmem:[#allocation9 + $0x390] sm:$0xff]  ;;  %v645_v58 = vld [vmem:[#allocation9 + $0x378] sm:$0xff]  ;;  %v2588_v62 = vpack.c.bf16 %v638_v53, %v632_v52 }
 0x107   : > { %v651_v59 = vld [vmem:[#allocation9 + $0x3a8] sm:$0xff]  ;;  %v661_v61 = vld [vmem:[#allocation9 + $0x3f8] sm:$0xff]  ;;  %v2528_v63 = vpack.c.bf16 %v648_v57, %v642_v56  ;;  %v644_v0 = vld [vmem:[#allocation9 + $0x370] sm:$0xff] }
 0x108   : > { %v655_v60 = vld [vmem:[#allocation9 + $0x3c8] sm:$0xff]  ;;  %v650_v1 = vld [vmem:[#allocation9 + $0x3a0] sm:$0xff]  ;;  %v2590_v2 = vpack.c.bf16 %v651_v59, %v645_v58  ;;  %v660_v5 = vld [vmem:[#allocation9 + $0x3f0] sm:$0xff] }
 0x109   : > { %2577 = vmatpush1.bf16.msra.mxu0 %v2576_v26  ;;  %2517 = vmatpush1.bf16.msra.mxu1 %v2516_v27  ;;  %v2530_v3 = vpack.c.bf16 %v661_v61, %v655_v60  ;;  %v654_v4 = vld [vmem:[#allocation9 + $0x3c0] sm:$0xff]  ;;  %v657_v6 = vld [vmem:[#allocation9 + $0x3d8] sm:$0xff]  ;;  %v663_v7 = vld [vmem:[#allocation9 + $0x408] sm:$0xff]  ;;  %v2592_v10 = vpack.c.bf16 %v650_v1, %v644_v0 }
 0x10a   : > { %2579 = vmatprep.subr.bf16.mxu0 %v2578_v30  ;;  %2519 = vmatprep.subr.bf16.mxu1 %v2518_v31  ;;  %v667_v8 = vld [vmem:[#allocation9 + $0x428] sm:$0xff]  ;;  %v673_v9 = vld [vmem:[#allocation9 + $0x458] sm:$0xff]  ;;  %v2532_v11 = vpack.c.bf16 %v660_v5, %v654_v4  ;;  %v656_v12 = vld [vmem:[#allocation9 + $0x3d0] sm:$0xff]  ;;  %v2594_v14 = vpack.c.bf16 %v663_v7, %v657_v6 }
 0x10b   : > { %v662_v13 = vld [vmem:[#allocation9 + $0x400] sm:$0xff]  ;;  %v2534_v15 = vpack.c.bf16 %v673_v9, %v667_v8  ;;  %v672_v17 = vld [vmem:[#allocation9 + $0x450] sm:$0xff]  ;;  %v669_v18 = vld [vmem:[#allocation9 + $0x438] sm:$0xff] }
 0x10c   : > { %v666_v16 = vld [vmem:[#allocation9 + $0x420] sm:$0xff]  ;;  %v675_v19 = vld [vmem:[#allocation9 + $0x468] sm:$0xff]  ;;  %v685_v21 = vld [vmem:[#allocation9 + $0x4b8] sm:$0xff]  ;;  %v2596_v22 = vpack.c.bf16 %v662_v13, %v656_v12  ;;  %v436_v13 = vlaneseq }
 0x10d   : > { %2581 = vmatpush1.bf16.msra.mxu0 %v2580_v38  ;;  %2521 = vmatpush1.bf16.msra.mxu1 %v2520_v39  ;;  %v679_v20 = vld [vmem:[#allocation9 + $0x488] sm:$0xff]  ;;  %v2536_v23 = vpack.c.bf16 %v672_v17, %v666_v16  ;;  %v668_v24 = vld [vmem:[#allocation9 + $0x430] sm:$0xff]  ;;  %v674_v25 = vld [vmem:[#allocation9 + $0x460] sm:$0xff]  ;;  %v2598_v26 = vpack.c.bf16 %v675_v19, %v669_v18 }
 0x10e   : > { %2583 = vmatprep.subr.bf16.mxu0 %v2582_v42  ;;  %2523 = vmatprep.subr.bf16.mxu1 %v2522_v43  ;;  %v2538_v27 = vpack.c.bf16 %v685_v21, %v679_v20  ;;  %v678_v28 = vld [vmem:[#allocation9 + $0x480] sm:$0xff]  ;;  %v684_v29 = vld [vmem:[#allocation9 + $0x4b0] sm:$0xff]  ;;  %v681_v30 = vld [vmem:[#allocation9 + $0x498] sm:$0xff]  ;;  %v2600_v34 = vpack.c.bf16 %v674_v25, %v668_v24 }
 0x10f   : > { %v687_v31 = vld [vmem:[#allocation9 + $0x4c8] sm:$0xff]  ;;  %v697_v33 = vld [vmem:[#allocation9 + $0x518] sm:$0xff]  ;;  %v2540_v35 = vpack.c.bf16 %v684_v29, %v678_v28  ;;  %v680_v36 = vld [vmem:[#allocation9 + $0x490] sm:$0xff] }
 0x110   : > { %v691_v32 = vld [vmem:[#allocation9 + $0x4e8] sm:$0xff]  ;;  %v686_v37 = vld [vmem:[#allocation9 + $0x4c0] sm:$0xff]  ;;  %v2602_v38 = vpack.c.bf16 %v687_v31, %v681_v30  ;;  %v696_v41 = vld [vmem:[#allocation9 + $0x510] sm:$0xff] }
 0x111   : > { %2585 = vmatpush1.bf16.msra.mxu0 %v2584_v50  ;;  %2525 = vmatpush1.bf16.msra.mxu1 %v2524_v51  ;;  %v2542_v39 = vpack.c.bf16 %v697_v33, %v691_v32  ;;  %v690_v40 = vld [vmem:[#allocation9 + $0x4e0] sm:$0xff]  ;;  %v693_v42 = vld [vmem:[#allocation9 + $0x4f8] sm:$0xff]  ;;  %v699_v43 = vld [vmem:[#allocation9 + $0x528] sm:$0xff]  ;;  %v2604_v46 = vpack.c.bf16 %v686_v37, %v680_v36 }
 0x112   : > { %2587 = vmatprep.subr.bf16.mxu0 %v2586_v54  ;;  %2527 = vmatprep.subr.bf16.mxu1 %v2526_v55  ;;  %v703_v44 = vld [vmem:[#allocation9 + $0x548] sm:$0xff]  ;;  %v709_v45 = vld [vmem:[#allocation9 + $0x578] sm:$0xff]  ;;  %v2544_v47 = vpack.c.bf16 %v696_v41, %v690_v40  ;;  %v2606_v48 = vpack.c.bf16 %v699_v43, %v693_v42  ;;  %v692_v49 = vld [vmem:[#allocation9 + $0x4f0] sm:$0xff] }
 0x113   : > { %v698_v50 = vld [vmem:[#allocation9 + $0x520] sm:$0xff]  ;;  %v2546_v51 = vpack.c.bf16 %v709_v45, %v703_v44  ;;  %v708_v54 = vld [vmem:[#allocation9 + $0x570] sm:$0xff]  ;;  %v705_v55 = vld [vmem:[#allocation9 + $0x558] sm:$0xff] }
 0x114   : > { %v2608_v52 = vpack.c.bf16 %v698_v50, %v692_v49  ;;  %v702_v53 = vld [vmem:[#allocation9 + $0x540] sm:$0xff]  ;;  %v711_v57 = vld [vmem:[#allocation9 + $0x588] sm:$0xff]  ;;  %v704_v58 = vld [vmem:[#allocation9 + $0x550] sm:$0xff] }
 0x115   : > { %2589 = vmatpush1.bf16.msra.mxu0 %v2588_v62  ;;  %2529 = vmatpush1.bf16.msra.mxu1 %v2528_v63  ;;  %v2548_v56 = vpack.c.bf16 %v708_v54, %v702_v53  ;;  %v710_v59 = vld [vmem:[#allocation9 + $0x580] sm:$0xff]  ;;  %v2610_v60 = vpack.c.bf16 %v711_v57, %v705_v55  ;;  %v715_v62 = vld [vmem:[#allocation9 + $0x5a8] sm:$0xff]  ;;  %v721_v63 = vld [vmem:[#allocation9 + $0x5d8] sm:$0xff] }
 0x116   : > { %2591 = vmatprep.subr.bf16.mxu0 %v2590_v2  ;;  %2531 = vmatprep.subr.bf16.mxu1 %v2530_v3  ;;  %v2612_v61 = vpack.c.bf16 %v710_v59, %v704_v58  ;;  %v2550_v0 = vpack.c.bf16 %v721_v63, %v715_v62  ;;  %v714_v1 = vld [vmem:[#allocation9 + $0x5a0] sm:$0xff]  ;;  %v720_v2 = vld [vmem:[#allocation9 + $0x5d0] sm:$0xff]  ;;  %v717_v3 = vld [vmem:[#allocation9 + $0x5b8] sm:$0xff] }
 0x117   : > { %v2552_v4 = vpack.c.bf16 %v720_v2, %v714_v1  ;;  %v723_v5 = vld [vmem:[#allocation9 + $0x5e8] sm:$0xff]  ;;  %v716_v6 = vld [vmem:[#allocation9 + $0x5b0] sm:$0xff]  ;;  %v722_v7 = vld [vmem:[#allocation9 + $0x5e0] sm:$0xff] }
 0x118   : > { %v2614_v8 = vpack.c.bf16 %v723_v5, %v717_v3  ;;  %v2616_v9 = vpack.c.bf16 %v722_v7, %v716_v6  ;;  %v434_v16 = vld [vmem:[#allocation8] sm:$0x3]  ;;  %v538_v24 = vld [vmem:[#allocation9 + $0x20] sm:$0xff]  ;;  %v544_v25 = vld [vmem:[#allocation9 + $0x50] sm:$0xff] }
 0x119   : > { %2593 = vmatpush1.bf16.msra.mxu0 %v2592_v10  ;;  %2533 = vmatpush1.bf16.msra.mxu1 %v2532_v11  ;;  %v539_v10 = vld [vmem:[#allocation9 + $0x28] sm:$0xff]  ;;  %v545_v11 = vld [vmem:[#allocation9 + $0x58] sm:$0xff]  ;;  %v2620_v30 = vpack.c.bf16 %v544_v25, %v538_v24  ;;  %v550_v33 = vld [vmem:[#allocation9 + $0x80] sm:$0xff] }
 0x11a   : > { %2595 = vmatprep.subr.bf16.mxu0 %v2594_v14  ;;  %2535 = vmatprep.subr.bf16.mxu1 %v2534_v15  ;;  %v2618_v12 = vpack.c.bf16 %v545_v11, %v539_v10  ;;  %v3963_v14 = vshrl.u32 %v436_v13, 7  ;;  %v557_v28 = vld [vmem:[#allocation9 + $0xb8] sm:$0xff]  ;;  %v563_v36 = vld [vmem:[#allocation9 + $0xe8] sm:$0xff]  ;;  %v562_v40 = vld [vmem:[#allocation9 + $0xe0] sm:$0xff] }
 0x11b   : > { %v569_v37 = vld [vmem:[#allocation9 + $0x118] sm:$0xff]  ;;  %v568_v41 = vld [vmem:[#allocation9 + $0x110] sm:$0xff]  ;;  %v575_v42 = vld [vmem:[#allocation9 + $0x148] sm:$0xff] }
 0x11c   : > { %v438_v15 = vsub.s32 0, %v3963_v14  ;;  %v442_v17 = vsub.s32 1, %v3963_v14  ;;  %v581_v43 = vld [vmem:[#allocation9 + $0x178] sm:$0xff]  ;;  %v2628_v44 = vpack.c.bf16 %v568_v41, %v562_v40  ;;  %v592_v53 = vld [vmem:[#allocation9 + $0x1d0] sm:$0xff]  ;;  %v599_v54 = vld [vmem:[#allocation9 + $0x208] sm:$0xff] }
 0x11d   : > { %2597 = vmatpush1.bf16.msra.mxu0 %v2596_v22  ;;  %2537 = vmatpush1.bf16.msra.mxu1 %v2536_v23  ;;  %v2630_v45 = vpack.c.bf16 %v581_v43, %v575_v42  ;;  %v593_v49 = vld [vmem:[#allocation9 + $0x1d8] sm:$0xff]  ;;  %v598_v58 = vld [vmem:[#allocation9 + $0x200] sm:$0xff]  ;;  %v604_v59 = vld [vmem:[#allocation9 + $0x230] sm:$0xff] }
 0x11e   : > { %2599 = vmatprep.subr.bf16.mxu0 %v2598_v26  ;;  %2539 = vmatprep.subr.bf16.mxu1 %v2538_v27  ;;  %v439_v18 = vrot.slane %v434_v16, %v438_v15  ;;  %v443_v19 = vrot.slane %v434_v16, %v442_v17  ;;  %v551_v27 = vld [vmem:[#allocation9 + $0x88] sm:$0xff]  ;;  %v605_v55 = vld [vmem:[#allocation9 + $0x238] sm:$0xff]  ;;  %v2640_v62 = vpack.c.bf16 %v604_v59, %v598_v58  ;;  %v616_v1 = vld [vmem:[#allocation9 + $0x290] sm:$0xff] }
 0x11f   : > { %v2622_v32 = vpack.c.bf16 %v557_v28, %v551_v27  ;;  %v2638_v57 = vpack.c.bf16 %v605_v55, %v599_v54  ;;  %v623_v2 = vld [vmem:[#allocation9 + $0x2c8] sm:$0xff]  ;;  %v629_v3 = vld [vmem:[#allocation9 + $0x2f8] sm:$0xff]  ;;  %v622_v6 = vld [vmem:[#allocation9 + $0x2c0] sm:$0xff] }
 0x120   : > { %v2646_v5 = vpack.c.bf16 %v629_v3, %v623_v2  ;;  %v628_v7 = vld [vmem:[#allocation9 + $0x2f0] sm:$0xff]  ;;  %v647_v16 = vld [vmem:[#allocation9 + $0x388] sm:$0xff]  ;;  %v665_v24 = vld [vmem:[#allocation9 + $0x418] sm:$0xff] }
 0x121   : > { %2601 = vmatpush1.bf16.msra.mxu0 %v2600_v34  ;;  %2541 = vmatpush1.bf16.msra.mxu1 %v2540_v35  ;;  %v556_v34 = vld [vmem:[#allocation9 + $0xb0] sm:$0xff]  ;;  %v2648_v10 = vpack.c.bf16 %v628_v7, %v622_v6  ;;  %v658_v27 = vld [vmem:[#allocation9 + $0x3e0] sm:$0xff]  ;;  %v695_v42 = vld [vmem:[#allocation9 + $0x508] sm:$0xff] }
 0x122   : > { %2603 = vmatprep.subr.bf16.mxu0 %v2602_v38  ;;  %2543 = vmatprep.subr.bf16.mxu1 %v2542_v39  ;;  %v2624_v38 = vpack.c.bf16 %v556_v34, %v550_v33  ;;  %v2626_v39 = vpack.c.bf16 %v569_v37, %v563_v36  ;;  %v640_v13 = vld [vmem:[#allocation9 + $0x350] sm:$0xff]  ;;  %v670_v33 = vld [vmem:[#allocation9 + $0x440] sm:$0xff]  ;;  %v683_v36 = vld [vmem:[#allocation9 + $0x4a8] sm:$0xff] }
 0x123   : > { %v664_v28 = vld [vmem:[#allocation9 + $0x410] sm:$0xff]  ;;  %v689_v37 = vld [vmem:[#allocation9 + $0x4d8] sm:$0xff]  ;;  %v682_v40 = vld [vmem:[#allocation9 + $0x4a0] sm:$0xff] }
 0x124   : > { %v676_v34 = vld [vmem:[#allocation9 + $0x470] sm:$0xff]  ;;  %v701_v43 = vld [vmem:[#allocation9 + $0x538] sm:$0xff]  ;;  %v719_v54 = vld [vmem:[#allocation9 + $0x5c8] sm:$0xff] }
 0x125   : > { %2605 = vmatpush1.bf16.msra.mxu0 %v2604_v46  ;;  %2545 = vmatpush1.bf16.msra.mxu1 %v2544_v47  ;;  %v574_v46 = vld [vmem:[#allocation9 + $0x140] sm:$0xff]  ;;  %v580_v47 = vld [vmem:[#allocation9 + $0x170] sm:$0xff]  ;;  %v725_v55 = vld [vmem:[#allocation9 + $0x5f8] sm:$0xff] }
 0x126   : > { %2607 = vmatprep.subr.bf16.mxu0 %v2606_v48  ;;  %2547 = vmatprep.subr.bf16.mxu1 %v2546_v51  ;;  %v587_v48 = vld [vmem:[#allocation9 + $0x1a8] sm:$0xff]  ;;  %v2632_v50 = vpack.c.bf16 %v580_v47, %v574_v46  ;;  %v688_v41 = vld [vmem:[#allocation9 + $0x4d0] sm:$0xff]  ;;  %v694_v46 = vld [vmem:[#allocation9 + $0x500] sm:$0xff] }
 0x127   : > { %v2634_v51 = vpack.c.bf16 %v593_v49, %v587_v48  ;;  %v700_v47 = vld [vmem:[#allocation9 + $0x530] sm:$0xff]  ;;  %v707_v48 = vld [vmem:[#allocation9 + $0x568] sm:$0xff]  ;;  %v713_v49 = vld [vmem:[#allocation9 + $0x598] sm:$0xff] }
 0x128   : > { %v718_v58 = vld [vmem:[#allocation9 + $0x5c0] sm:$0xff]  ;;  %v724_v59 = vld [vmem:[#allocation9 + $0x5f0] sm:$0xff] }
 0x129   : > { %2609 = vmatpush1.bf16.msra.mxu0 %v2608_v52  ;;  %2549 = vmatpush1.bf16.msra.mxu1 %v2548_v56  ;;  %v586_v52 = vld [vmem:[#allocation9 + $0x1a0] sm:$0xff] }
 0x12a   : > { %2611 = vmatprep.subr.bf16.mxu0 %v2610_v60  ;;  %2551 = vmatprep.subr.bf16.mxu1 %v2550_v0  ;;  %v2636_v56 = vpack.c.bf16 %v592_v53, %v586_v52  ;;  %v611_v60 = vld [vmem:[#allocation9 + $0x268] sm:$0xff]  ;;  %v610_v0 = vld [vmem:[#allocation9 + $0x260] sm:$0xff]  ;;  %v712_v53 = vld [vmem:[#allocation9 + $0x590] sm:$0xff] }
 0x12b   : > { %v706_v52 = vld [vmem:[#allocation9 + $0x560] sm:$0xff] }
 0x12d   : > { %2613 = vmatpush1.bf16.msra.mxu0 %v2612_v61  ;;  %2553 = vmatpush1.bf16.msra.mxu1 %v2552_v4  ;;  %v617_v61 = vld [vmem:[#allocation9 + $0x298] sm:$0xff]  ;;  %v2644_v4 = vpack.c.bf16 %v616_v1, %v610_v0 }
 0x12e   : > { %2615 = vmatprep.subr.bf16.mxu0 %v2614_v8  ;;  %2619 = vmatprep.subr.bf16.mxu1 %v2618_v12  ;;  %v2642_v63 = vpack.c.bf16 %v617_v61, %v611_v60  ;;  %v635_v8 = vld [vmem:[#allocation9 + $0x328] sm:$0xff]  ;;  %v634_v12 = vld [vmem:[#allocation9 + $0x320] sm:$0xff]  ;;  %v2680_v60 = vpack.c.bf16 %v724_v59, %v718_v58  ;;  %v738_v61 = vsub.s32 2, %v3963_v14 }
 0x131   : > { %2617 = vmatpush1.bf16.msra.mxu0 %v2616_v9  ;;  %v641_v9 = vld [vmem:[#allocation9 + $0x358] sm:$0xff] }
 0x132   : > { %v2650_v11 = vpack.c.bf16 %v641_v9, %v635_v8 }
 0x1c7   : > { %v523_v20 = vpop.f32.mrb[0].mxu0 }
 0x1c8   : > { %v524_v21 = vadd.f32 %v523_v20, %v439_v18  ;;  %v525_v22 = vpop.f32.mrb[1].mxu0  ;;  %v653_v18 = vld [vmem:[#allocation9 + $0x3b8] sm:$0xff] }
 0x1c9   : > { %v526_v23 = vadd.f32 %v525_v22, %v443_v19  ;;  %v2652_v19 = vpack.c.bf16 %v640_v13, %v634_v12  ;;  %v2654_v20 = vpack.c.bf16 %v653_v18, %v647_v16  ;;  %v652_v22 = vld [vmem:[#allocation9 + $0x3b0] sm:$0xff] }
 0x1ca   : > { %v530_v26 = vmul.f32 0.01, %v524_v21  ;;  %vm528_vm3 = vcmp.gt.f32.partialorder %v524_v21, 0.0 }
 0x1cb   : > { %v531_v29 = vmul.f32 0.01, %v526_v23  ;;  %vm529_vm2 = vcmp.gt.f32.partialorder %v526_v23, 0.0 }
 0x1cc   : > { %v3971_v35 = vsel %vm528_vm3, %v524_v21, %v530_v26  ;;  %v646_v21 = vld [vmem:[#allocation9 + $0x380] sm:$0xff] }
 0x1cd   : > { %v533_v31 = vsel %vm529_vm2, %v526_v23, %v531_v29  ;;  %v659_v23 = vld [vmem:[#allocation9 + $0x3e8] sm:$0xff]  ;;  %v2656_v25 = vpack.c.bf16 %v652_v22, %v646_v21  ;;  %v750_v21 = vsub.s32 5, %v3963_v14 }
 0x1ce   : > { %822 = vmatprep.mubr.f32.mxu1 %v533_v31  ;;  %893 = vmatprep.mubr.f32.mxu0 %v533_v31  ;;  %v2658_v26 = vpack.c.bf16 %v665_v24, %v659_v23  ;;  %v671_v29 = vld [vmem:[#allocation9 + $0x448] sm:$0xff] }
 0x1cf   : > { %823 = vmatmul.mubr.f32.vlgmr.msra.gmra.mrb[0].mxu1 %v3971_v35  ;;  %894 = vmatmul.mubr.f32.vlgmr.msra.gmra.mrb[2].mxu0 %v3971_v35 }
 0x1d0   : > { %2621 = vmatpush1.bf16.msra.mxu1 %v2620_v30  ;;  %964 = vmatprep.mubr.f32.mxu1 %v533_v31  ;;  %v677_v30 = vld [vmem:[#allocation9 + $0x478] sm:$0xff]  ;;  %v2660_v31 = vpack.c.bf16 %v664_v28, %v658_v27 }
 0x1d1   : > { %2623 = vmatprep.subr.bf16.mxu1 %v2622_v32  ;;  %v2662_v32 = vpack.c.bf16 %v677_v30, %v671_v29 }
 0x1d4   : > { %2625 = vmatpush1.bf16.msra.mxu1 %v2624_v38  ;;  %v2664_v38 = vpack.c.bf16 %v676_v34, %v670_v33 }
 0x1d5   : > { %2627 = vmatprep.subr.bf16.mxu1 %v2626_v39  ;;  %v2666_v39 = vpack.c.bf16 %v689_v37, %v683_v36 }
 0x1d8   : > { %2629 = vmatpush1.bf16.msra.mxu1 %v2628_v44  ;;  %v2668_v44 = vpack.c.bf16 %v688_v41, %v682_v40 }
 0x1d9   : > { %2631 = vmatprep.subr.bf16.mxu1 %v2630_v45  ;;  %v2670_v45 = vpack.c.bf16 %v701_v43, %v695_v42 }
 0x1dc   : > { %2633 = vmatpush1.bf16.msra.mxu1 %v2632_v50  ;;  %v2672_v50 = vpack.c.bf16 %v700_v47, %v694_v46 }
 0x1dd   : > { %2635 = vmatprep.subr.bf16.mxu1 %v2634_v51  ;;  %v2674_v51 = vpack.c.bf16 %v713_v49, %v707_v48 }
 0x1e0   : > { %2637 = vmatpush1.bf16.msra.mxu1 %v2636_v56  ;;  %v2676_v56 = vpack.c.bf16 %v712_v53, %v706_v52 }
 0x1e1   : > { %2639 = vmatprep.subr.bf16.mxu1 %v2638_v57  ;;  %v2678_v57 = vpack.c.bf16 %v725_v55, %v719_v54 }
 0x1e4   : > { %2641 = vmatpush1.bf16.msra.mxu1 %v2640_v62  ;;  %v726_v62 = vld [vmem:[#allocation11] sm:$0x3f] }
 0x1e5   : > { %2643 = vmatprep.subr.bf16.mxu1 %v2642_v63  ;;  %v742_v63 = vsub.s32 3, %v3963_v14  ;;  %v731_v0 = vrot.slane %v726_v62, %v438_v15  ;;  %v739_v1 = vrot.slane %v726_v62, %v738_v61  ;;  %v735_v2 = vrot.slane %v726_v62, %v442_v17 }
 0x1e6   : > { %v751_v23 = vrot.slane %v726_v62, %v750_v21 }
 0x1e7   : > { %v743_v3 = vrot.slane %v726_v62, %v742_v63 }
 0x1e8   : > { %2645 = vmatpush1.bf16.msra.mxu1 %v2644_v4 }
 0x1e9   : > { %2647 = vmatprep.subr.bf16.mxu1 %v2646_v5 }
 0x1ec   : > { %2649 = vmatpush1.bf16.msra.mxu1 %v2648_v10 }
 0x1ed   : > { %2651 = vmatprep.subr.bf16.mxu1 %v2650_v11 }
 0x1f0   : > { %2653 = vmatpush1.bf16.msra.mxu1 %v2652_v19 }
 0x1f1   : > { %2655 = vmatprep.subr.bf16.mxu1 %v2654_v20  ;;  %v746_v20 = vsub.s32 4, %v3963_v14 }
 0x1f3   : > { %v747_v22 = vrot.slane %v726_v62, %v746_v20 }
 0x1f4   : > { %2657 = vmatpush1.bf16.msra.mxu1 %v2656_v25 }
 0x1f5   : > { %2659 = vmatprep.subr.bf16.mxu1 %v2658_v26 }
 0x1f8   : > { %2661 = vmatpush1.bf16.msra.mxu1 %v2660_v31 }
 0x1f9   : > { %2663 = vmatprep.subr.bf16.mxu1 %v2662_v32 }
 0x1fc   : > { %2665 = vmatpush1.bf16.msra.mxu1 %v2664_v38 }
 0x1fd   : > { %2667 = vmatprep.subr.bf16.mxu1 %v2666_v39 }
 0x200   : > { %2669 = vmatpush1.bf16.msra.mxu1 %v2668_v44 }
 0x201   : > { %2671 = vmatprep.subr.bf16.mxu1 %v2670_v45 }
 0x204   : > { %2673 = vmatpush1.bf16.msra.mxu1 %v2672_v50 }
 0x205   : > { %2675 = vmatprep.subr.bf16.mxu1 %v2674_v51 }
 0x208   : > { %2677 = vmatpush1.bf16.msra.mxu1 %v2676_v56 }
 0x209   : > { %2679 = vmatprep.subr.bf16.mxu1 %v2678_v57 }
 0x20c   : > { %2681 = vmatpush1.bf16.msra.mxu1 %v2680_v60 }
 0x20f   : > { %965 = vmatmul.mubr.f32.vlgmr.msra.gmra.mrb[2].mxu1 %v3971_v35 }
 0x2a2   : > { %v824_v4 = vpop.f32.mrb[0].mxu1  ;;  %v895_v5 = vpop.f32.mrb[2].mxu0 }
 0x2a3   : > { %v825_v6 = vadd.f32 %v824_v4, %v731_v0  ;;  %v896_v7 = vadd.f32 %v895_v5, %v739_v1  ;;  %v826_v8 = vpop.f32.mrb[1].mxu1  ;;  %v897_v9 = vpop.f32.mrb[3].mxu0 }
 0x2a4   : > { %v827_v35 = vadd.f32 %v826_v8, %v735_v2  ;;  %v898_v10 = vadd.f32 %v897_v9, %v743_v3 }
 0x2a5   : > { %vm971_vm4 = vcmp.gt.f32.partialorder %v825_v6, 0.0  ;;  %v977_v11 = vmul.f32 0.01, %v825_v6  ;;  %vm973_vm5 = vcmp.gt.f32.partialorder %v896_v7, 0.0  ;;  %v979_v12 = vmul.f32 0.01, %v896_v7 }
 0x2a6   : > { %vm972_vm6 = vcmp.gt.f32.partialorder %v827_v35, 0.0  ;;  %v978_v13 = vmul.f32 0.01, %v827_v35  ;;  %vm974_vm7 = vcmp.gt.f32.partialorder %v898_v10, 0.0  ;;  %v980_v15 = vmul.f32 0.01, %v898_v10 }
 0x2a7   : > { %v983_v16 = vsel %vm971_vm4, %v825_v6, %v977_v11  ;;  %v985_v18 = vsel %vm973_vm5, %v896_v7, %v979_v12 }
 0x2a8   : > { %989 = vst [vmem:[#allocation2] sm:$0xff] %v983_v16  ;;  %991 = vst [vmem:[#allocation2 + $0x10] sm:$0xff] %v985_v18  ;;  %v984_v17 = vsel %vm972_vm6, %v827_v35, %v978_v13  ;;  %v986_v19 = vsel %vm974_vm7, %v898_v10, %v980_v15 }
 0x2a9   : > { %990 = vst [vmem:[#allocation2 + $0x8] sm:$0xff] %v984_v17  ;;  %992 = vst [vmem:[#allocation2 + $0x18] sm:$0xff] %v986_v19 }
 0x2e2   : > { %v966_v24 = vpop.f32.mrb[2].mxu1 }
 0x2e3   : > { %v967_v25 = vadd.f32 %v966_v24, %v747_v22  ;;  %v968_v26 = vpop.f32.mrb[3].mxu1 }
 0x2e4   : > { %v969_v27 = vadd.f32 %v968_v26, %v751_v23 }
 0x2e5   : > { %vm975_vm8 = vcmp.gt.f32.partialorder %v967_v25, 0.0  ;;  %v981_v28 = vmul.f32 0.01, %v967_v25 }
 0x2e6   : > { %vm976_vm9 = vcmp.gt.f32.partialorder %v969_v27, 0.0  ;;  %v982_v29 = vmul.f32 0.01, %v969_v27 }
 0x2e7   : > { %v987_v30 = vsel %vm975_vm8, %v967_v25, %v981_v28 }
 0x2e8   : > { %993 = vst [vmem:[#allocation2 + $0x20] sm:$0xff] %v987_v30  ;;  %v988_v31 = vsel %vm976_vm9, %v969_v27, %v982_v29 }
 0x2e9   : > { %994 = vst [vmem:[#allocation2 + $0x28] sm:$0xff] %v988_v31 }
 0x2ea PF: > { %v1002_v14 = vld [vmem:[%s3947_s29 + $0x8] sm:$0xff]  ;;  %v1007_v32 = vld [vmem:[%s3947_s29 + $0x30] sm:$0xff]  ;;  %v1004_v33 = vld [vmem:[%s3947_s29 + $0x18] sm:$0xff]  ;;  %s2380_s30 = smul.u32 640, %s3613_s27  ;;  %s2196_s9 = sshll.u32 %s3957_s13, 4  ;;  %s4496_s9 = int_to_ptr.vmem [resolvable:$true] %s2196_s9 }
 0x2eb   : > { %v2682_v34 = vpack.c.bf16 %v1007_v32, %v1002_v14  ;;  %v1009_v36 = vld [vmem:[%s3947_s29 + $0x40] sm:$0xff]  ;;  %v1006_v38 = vld [vmem:[%s3947_s29 + $0x28] sm:$0xff]  ;;  %v1003_v41 = vld [vmem:[%s3947_s29 + $0x10] sm:$0xff]  ;;  %s2180_s3 = scalar_lea.sflag [#allocation5], %s3944_s16  ;;  %s3527_s15 = scalar_lea.vmem %s4496_s9, 640 }
 0x2ec   : > { %v1001_v37 = vld [vmem:[%s3947_s29] sm:$0xff]  ;;  %v2874_v39 = vpack.c.bf16 %v1009_v36, %v1004_v33  ;;  %v1008_v42 = vld [vmem:[%s3947_s29 + $0x38] sm:$0xff]  ;;  %v1014_v46 = vld [vmem:[%s3947_s29 + $0x68] sm:$0xff]  ;;  %s4494_s21 = scalar_lea.hbm %s4550_s7, %s2380_s30  ;;  %p3528_p12 = scmp.ne.s32.totalorder %s4496_s9, %s3527_s15 }
 0x2ed   : > { %v2684_v40 = vpack.c.bf16 %v1006_v38, %v1001_v37  ;;  %v1012_v43 = vld [vmem:[%s3947_s29 + $0x58] sm:$0xff]  ;;  %2683 = vmatprep.subr.bf16.mxu0 %v2682_v34  ;;  %v2876_v44 = vpack.c.bf16 %v1008_v42, %v1003_v41  ;;  %v1017_v45 = vld [vmem:[%s3947_s29 + $0x80] sm:$0xff]  ;;  %v1019_v47 = vld [vmem:[%s3947_s29 + $0x90] sm:$0xff]  ;;  %p4598_p3 = scmp.ne.s32.totalorder %s4581_s20, 0  ;;  %s3638_s27 = smov [#allocation15]  }
 0x2ee   : > { %2875 = vmatprep.subr.bf16.mxu1 %v2874_v39  ;;  %v2686_v48 = vpack.c.bf16 %v1017_v45, %v1012_v43  ;;  %v2878_v49 = vpack.c.bf16 %v1019_v47, %v1014_v46  ;;  %v1011_v50 = vld [vmem:[%s3947_s29 + $0x50] sm:$0xff]  ;;  %v1016_v51 = vld [vmem:[%s3947_s29 + $0x78] sm:$0xff]  ;;  %v1013_v52 = vld [vmem:[%s3947_s29 + $0x60] sm:$0xff]  ;;  %s3531_s18 = sshll.u32 %s3638_s27, 4  ;;  %s3532_s18 = int_to_ptr.vmem [resolvable:$false] %s3531_s18 }
 0x2ef   : > { %2685 = vmatpush1.bf16.msra.mxu0 %v2684_v40  ;;  %2877 = vmatpush1.bf16.msra.mxu1 %v2876_v44  ;;  %v2688_v53 = vpack.c.bf16 %v1016_v51, %v1011_v50  ;;  %v1018_v54 = vld [vmem:[%s3947_s29 + $0x88] sm:$0xff]  ;;  %v1027_v56 = vld [vmem:[%s3947_s29 + $0xd0] sm:$0xff]  ;;  %v1024_v59 = vld [vmem:[%s3947_s29 + $0xb8] sm:$0xff]  ;;  %p3529_p13 = pnand %p3528_p12, %p4598_p3  ;;  %s3533_s1 = scalar_lea.vmem %s3532_s18, 1280 }
 0x2f0   : > { %v1022_v55 = vld [vmem:[%s3947_s29 + $0xa8] sm:$0xff]  ;;  %2687 = vmatprep.subr.bf16.mxu0 %v2686_v48  ;;  %2879 = vmatprep.subr.bf16.mxu1 %v2878_v49  ;;  %v2880_v57 = vpack.c.bf16 %v1018_v54, %v1013_v52  ;;  %v1029_v60 = vld [vmem:[%s3947_s29 + $0xe0] sm:$0xff]  ;;  %v1023_v0 = vld [vmem:[%s3947_s29 + $0xb0] sm:$0xff]  ;;  %p3534_p10 = scmp.lt.s32.totalorder %s4496_s9, %s3532_s18  ;;  %p3535_p11 = scmp.lt.s32.totalorder %s3533_s1, %s3527_s15 }
 0x2f1   : > { %v2690_v58 = vpack.c.bf16 %v1027_v56, %v1022_v55  ;;  %v1021_v61 = vld [vmem:[%s3947_s29 + $0xa0] sm:$0xff]  ;;  %v2882_v62 = vpack.c.bf16 %v1029_v60, %v1024_v59  ;;  %v1026_v63 = vld [vmem:[%s3947_s29 + $0xc8] sm:$0xff]  ;;  %v1028_v1 = vld [vmem:[%s3947_s29 + $0xd8] sm:$0xff]  ;;  %p3530_p6 = pneg %p3529_p13 }
 0x2f2   : > { %v2692_v2 = vpack.c.bf16 %v1026_v63, %v1021_v61  ;;  %v1032_v3 = vld [vmem:[%s3947_s29 + $0xf8] sm:$0xff]  ;;  %v1037_v4 = vld [vmem:[%s3947_s29 + $0x120] sm:$0xff]  ;;  %v1034_v5 = vld [vmem:[%s3947_s29 + $0x108] sm:$0xff]  ;;  %v2884_v6 = vpack.c.bf16 %v1028_v1, %v1023_v0  ;;  %p3536_p8 = por %p3535_p11, %p3534_p10 }
 0x2f3   : > { %2689 = vmatpush1.bf16.msra.mxu0 %v2688_v53  ;;  %2881 = vmatpush1.bf16.msra.mxu1 %v2880_v57  ;;  %v2694_v7 = vpack.c.bf16 %v1037_v4, %v1032_v3  ;;  %v1039_v8 = vld [vmem:[%s3947_s29 + $0x130] sm:$0xff]  ;;  %v1036_v35 = vld [vmem:[%s3947_s29 + $0x118] sm:$0xff]  ;;  %v1033_v11 = vld [vmem:[%s3947_s29 + $0x100] sm:$0xff] }
 0x2f4   : > { %2691 = vmatprep.subr.bf16.mxu0 %v2690_v58  ;;  %v1031_v9 = vld [vmem:[%s3947_s29 + $0xf0] sm:$0xff]  ;;  %2883 = vmatprep.subr.bf16.mxu1 %v2882_v62  ;;  %v2886_v10 = vpack.c.bf16 %v1039_v8, %v1034_v5  ;;  %v1038_v12 = vld [vmem:[%s3947_s29 + $0x128] sm:$0xff]  ;;  %v1044_v16 = vld [vmem:[%s3947_s29 + $0x158] sm:$0xff]  ;;  %p3537_p0 = pnand %p3536_p8, %p3530_p6 }
 0x2f5   : > { %v1042_v13 = vld [vmem:[%s3947_s29 + $0x148] sm:$0xff]  ;;  %v1047_v15 = vld [vmem:[%s3947_s29 + $0x170] sm:$0xff]  ;;  %v1049_v18 = vld [vmem:[%s3947_s29 + $0x180] sm:$0xff]  ;;  %v2696_v17 = vpack.c.bf16 %v1036_v35, %v1031_v9  ;;  %v2888_v19 = vpack.c.bf16 %v1038_v12, %v1033_v11 }
 0x2f6   : > { %v2698_v20 = vpack.c.bf16 %v1047_v15, %v1042_v13  ;;  %v1041_v21 = vld [vmem:[%s3947_s29 + $0x140] sm:$0xff]  ;;  %v1046_v22 = vld [vmem:[%s3947_s29 + $0x168] sm:$0xff]  ;;  %v1043_v23 = vld [vmem:[%s3947_s29 + $0x150] sm:$0xff]  ;;  %v2890_v24 = vpack.c.bf16 %v1049_v18, %v1044_v16 }
 0x2f7   : > { %2693 = vmatpush1.bf16.msra.mxu0 %v2692_v2  ;;  %2885 = vmatpush1.bf16.msra.mxu1 %v2884_v6  ;;  %v1048_v25 = vld [vmem:[%s3947_s29 + $0x178] sm:$0xff]  ;;  %v1057_v27 = vld [vmem:[%s3947_s29 + $0x1c0] sm:$0xff]  ;;  %v1054_v28 = vld [vmem:[%s3947_s29 + $0x1a8] sm:$0xff]  ;;  %v2700_v30 = vpack.c.bf16 %v1046_v22, %v1041_v21 }
 0x2f8   : > { %2695 = vmatprep.subr.bf16.mxu0 %v2694_v7  ;;  %2887 = vmatprep.subr.bf16.mxu1 %v2886_v10  ;;  %v1052_v26 = vld [vmem:[%s3947_s29 + $0x198] sm:$0xff]  ;;  %v1059_v29 = vld [vmem:[%s3947_s29 + $0x1d0] sm:$0xff]  ;;  %v2892_v31 = vpack.c.bf16 %v1048_v25, %v1043_v23  ;;  %v1053_v34 = vld [vmem:[%s3947_s29 + $0x1a0] sm:$0xff] }
 0x2f9   : > { %v2702_v14 = vpack.c.bf16 %v1057_v27, %v1052_v26  ;;  %v1051_v32 = vld [vmem:[%s3947_s29 + $0x190] sm:$0xff]  ;;  %v1056_v33 = vld [vmem:[%s3947_s29 + $0x1b8] sm:$0xff]  ;;  %v2894_v36 = vpack.c.bf16 %v1059_v29, %v1054_v28  ;;  %v1058_v37 = vld [vmem:[%s3947_s29 + $0x1c8] sm:$0xff] }
 0x2fa   : > { %v1062_v38 = vld [vmem:[%s3947_s29 + $0x1e8] sm:$0xff]  ;;  %v1067_v39 = vld [vmem:[%s3947_s29 + $0x210] sm:$0xff]  ;;  %v1064_v40 = vld [vmem:[%s3947_s29 + $0x1f8] sm:$0xff]  ;;  %v2704_v42 = vpack.c.bf16 %v1056_v33, %v1051_v32  ;;  %v2896_v43 = vpack.c.bf16 %v1058_v37, %v1053_v34 }
 0x2fb   : > { %2697 = vmatpush1.bf16.msra.mxu0 %v2696_v17  ;;  %2889 = vmatpush1.bf16.msra.mxu1 %v2888_v19  ;;  %v1069_v41 = vld [vmem:[%s3947_s29 + $0x220] sm:$0xff]  ;;  %v2706_v44 = vpack.c.bf16 %v1067_v39, %v1062_v38  ;;  %v1066_v46 = vld [vmem:[%s3947_s29 + $0x208] sm:$0xff]  ;;  %v1063_v47 = vld [vmem:[%s3947_s29 + $0x1f0] sm:$0xff] }
 0x2fc   : > { %2699 = vmatprep.subr.bf16.mxu0 %v2698_v20  ;;  %2891 = vmatprep.subr.bf16.mxu1 %v2890_v24  ;;  %v1061_v45 = vld [vmem:[%s3947_s29 + $0x1e0] sm:$0xff]  ;;  %v2898_v48 = vpack.c.bf16 %v1069_v41, %v1064_v40  ;;  %v1068_v49 = vld [vmem:[%s3947_s29 + $0x218] sm:$0xff]  ;;  %v1074_v52 = vld [vmem:[%s3947_s29 + $0x248] sm:$0xff] }
 0x2fd   : > { %v1072_v50 = vld [vmem:[%s3947_s29 + $0x238] sm:$0xff]  ;;  %v1077_v51 = vld [vmem:[%s3947_s29 + $0x260] sm:$0xff]  ;;  %v1079_v53 = vld [vmem:[%s3947_s29 + $0x270] sm:$0xff]  ;;  %v2708_v54 = vpack.c.bf16 %v1066_v46, %v1061_v45  ;;  %v2900_v55 = vpack.c.bf16 %v1068_v49, %v1063_v47 }
 0x2fe   : > { %v2710_v56 = vpack.c.bf16 %v1077_v51, %v1072_v50  ;;  %v1071_v57 = vld [vmem:[%s3947_s29 + $0x230] sm:$0xff]  ;;  %v1076_v58 = vld [vmem:[%s3947_s29 + $0x258] sm:$0xff]  ;;  %v1073_v59 = vld [vmem:[%s3947_s29 + $0x240] sm:$0xff]  ;;  %v2902_v60 = vpack.c.bf16 %v1079_v53, %v1074_v52 }
 0x2ff   : > { %2701 = vmatpush1.bf16.msra.mxu0 %v2700_v30  ;;  %2893 = vmatpush1.bf16.msra.mxu1 %v2892_v31  ;;  %v1078_v61 = vld [vmem:[%s3947_s29 + $0x268] sm:$0xff]  ;;  %v1087_v63 = vld [vmem:[%s3947_s29 + $0x2b0] sm:$0xff]  ;;  %v1084_v0 = vld [vmem:[%s3947_s29 + $0x298] sm:$0xff]  ;;  %v2712_v2 = vpack.c.bf16 %v1076_v58, %v1071_v57 }
 0x300   : > { %2703 = vmatprep.subr.bf16.mxu0 %v2702_v14  ;;  %2895 = vmatprep.subr.bf16.mxu1 %v2894_v36  ;;  %v1082_v62 = vld [vmem:[%s3947_s29 + $0x288] sm:$0xff]  ;;  %v1089_v1 = vld [vmem:[%s3947_s29 + $0x2c0] sm:$0xff]  ;;  %v2904_v3 = vpack.c.bf16 %v1078_v61, %v1073_v59  ;;  %v1083_v7 = vld [vmem:[%s3947_s29 + $0x290] sm:$0xff] }
 0x301   : > { %v2714_v4 = vpack.c.bf16 %v1087_v63, %v1082_v62  ;;  %v1081_v5 = vld [vmem:[%s3947_s29 + $0x280] sm:$0xff]  ;;  %v1086_v6 = vld [vmem:[%s3947_s29 + $0x2a8] sm:$0xff]  ;;  %v2906_v8 = vpack.c.bf16 %v1089_v1, %v1084_v0  ;;  %v1088_v9 = vld [vmem:[%s3947_s29 + $0x2b8] sm:$0xff] }
 0x302   : > { %v1092_v35 = vld [vmem:[%s3947_s29 + $0x2d8] sm:$0xff]  ;;  %v1097_v10 = vld [vmem:[%s3947_s29 + $0x300] sm:$0xff]  ;;  %v1094_v11 = vld [vmem:[%s3947_s29 + $0x2e8] sm:$0xff]  ;;  %v2716_v13 = vpack.c.bf16 %v1086_v6, %v1081_v5  ;;  %v2908_v15 = vpack.c.bf16 %v1088_v9, %v1083_v7 }
 0x303   : > { %2705 = vmatpush1.bf16.msra.mxu0 %v2704_v42  ;;  %2897 = vmatpush1.bf16.msra.mxu1 %v2896_v43  ;;  %v1099_v12 = vld [vmem:[%s3947_s29 + $0x310] sm:$0xff]  ;;  %v2718_v16 = vpack.c.bf16 %v1097_v10, %v1092_v35  ;;  %v1096_v17 = vld [vmem:[%s3947_s29 + $0x2f8] sm:$0xff]  ;;  %v1093_v19 = vld [vmem:[%s3947_s29 + $0x2e0] sm:$0xff] }
 0x304   : > { %2707 = vmatprep.subr.bf16.mxu0 %v2706_v44  ;;  %2899 = vmatprep.subr.bf16.mxu1 %v2898_v48  ;;  %v1091_v18 = vld [vmem:[%s3947_s29 + $0x2d0] sm:$0xff]  ;;  %v2910_v20 = vpack.c.bf16 %v1099_v12, %v1094_v11  ;;  %v1098_v21 = vld [vmem:[%s3947_s29 + $0x308] sm:$0xff]  ;;  %v1104_v24 = vld [vmem:[%s3947_s29 + $0x338] sm:$0xff] }
 0x305   : > { %v1102_v22 = vld [vmem:[%s3947_s29 + $0x328] sm:$0xff]  ;;  %v1107_v23 = vld [vmem:[%s3947_s29 + $0x350] sm:$0xff]  ;;  %v1109_v25 = vld [vmem:[%s3947_s29 + $0x360] sm:$0xff]  ;;  %v2720_v26 = vpack.c.bf16 %v1096_v17, %v1091_v18  ;;  %v2912_v27 = vpack.c.bf16 %v1098_v21, %v1093_v19 }
 0x306   : > { %v2722_v28 = vpack.c.bf16 %v1107_v23, %v1102_v22  ;;  %v1101_v29 = vld [vmem:[%s3947_s29 + $0x320] sm:$0xff]  ;;  %v1106_v30 = vld [vmem:[%s3947_s29 + $0x348] sm:$0xff]  ;;  %v1103_v31 = vld [vmem:[%s3947_s29 + $0x330] sm:$0xff]  ;;  %v2914_v14 = vpack.c.bf16 %v1109_v25, %v1104_v24 }
 0x307   : > { %2709 = vmatpush1.bf16.msra.mxu0 %v2708_v54  ;;  %2901 = vmatpush1.bf16.msra.mxu1 %v2900_v55  ;;  %v1108_v32 = vld [vmem:[%s3947_s29 + $0x358] sm:$0xff]  ;;  %v1117_v34 = vld [vmem:[%s3947_s29 + $0x3a0] sm:$0xff]  ;;  %v1114_v36 = vld [vmem:[%s3947_s29 + $0x388] sm:$0xff]  ;;  %v2724_v38 = vpack.c.bf16 %v1106_v30, %v1101_v29 }
 0x308   : > { %2711 = vmatprep.subr.bf16.mxu0 %v2710_v56  ;;  %2903 = vmatprep.subr.bf16.mxu1 %v2902_v60  ;;  %v1112_v33 = vld [vmem:[%s3947_s29 + $0x378] sm:$0xff]  ;;  %v1119_v37 = vld [vmem:[%s3947_s29 + $0x3b0] sm:$0xff]  ;;  %v2916_v40 = vpack.c.bf16 %v1108_v32, %v1103_v31  ;;  %v1113_v43 = vld [vmem:[%s3947_s29 + $0x380] sm:$0xff] }
 0x309   : > { %v1111_v39 = vld [vmem:[%s3947_s29 + $0x370] sm:$0xff]  ;;  %v2726_v41 = vpack.c.bf16 %v1117_v34, %v1112_v33  ;;  %v1116_v42 = vld [vmem:[%s3947_s29 + $0x398] sm:$0xff]  ;;  %v1118_v44 = vld [vmem:[%s3947_s29 + $0x3a8] sm:$0xff]  ;;  %v2918_v45 = vpack.c.bf16 %v1119_v37, %v1114_v36 }
 0x30a   : > { %v1122_v46 = vld [vmem:[%s3947_s29 + $0x3c8] sm:$0xff]  ;;  %v1127_v47 = vld [vmem:[%s3947_s29 + $0x3f0] sm:$0xff]  ;;  %v996_v48 = vld [vmem:[#allocation2 + $0x8] sm:$0xff]  ;;  %v2728_v51 = vpack.c.bf16 %v1116_v42, %v1111_v39  ;;  %v2920_v52 = vpack.c.bf16 %v1118_v44, %v1113_v43 }
 0x30b   : > { %2713 = vmatpush1.bf16.msra.mxu0 %v2712_v2  ;;  %2905 = vmatpush1.bf16.msra.mxu1 %v2904_v3  ;;  %v1124_v49 = vld [vmem:[%s3947_s29 + $0x3d8] sm:$0xff]  ;;  %v1129_v50 = vld [vmem:[%s3947_s29 + $0x400] sm:$0xff]  ;;  %v2730_v53 = vpack.c.bf16 %v1127_v47, %v1122_v46  ;;  %v1126_v55 = vld [vmem:[%s3947_s29 + $0x3e8] sm:$0xff] }
 0x30c   : > { %2715 = vmatprep.subr.bf16.mxu0 %v2714_v4  ;;  %2907 = vmatprep.subr.bf16.mxu1 %v2906_v8  ;;  %v1121_v54 = vld [vmem:[%s3947_s29 + $0x3c0] sm:$0xff]  ;;  %v1123_v56 = vld [vmem:[%s3947_s29 + $0x3d0] sm:$0xff]  ;;  %v2922_v57 = vpack.c.bf16 %v1129_v50, %v1124_v49  ;;  %v1128_v58 = vld [vmem:[%s3947_s29 + $0x3f8] sm:$0xff] }
 0x30d   : > { %1572 = vmatprep.mubr.f32.mxu0 %v996_v48  ;;  %1785 = vmatprep.mubr.f32.mxu1 %v996_v48  ;;  %v1132_v59 = vld [vmem:[%s3947_s29 + $0x418] sm:$0xff]  ;;  %v1137_v60 = vld [vmem:[%s3947_s29 + $0x440] sm:$0xff]  ;;  %v1134_v61 = vld [vmem:[%s3947_s29 + $0x428] sm:$0xff]  ;;  %v2732_v63 = vpack.c.bf16 %v1126_v55, %v1121_v54  ;;  %v2924_v0 = vpack.c.bf16 %v1128_v58, %v1123_v56 }
 0x30e   : > { %v1139_v62 = vld [vmem:[%s3947_s29 + $0x450] sm:$0xff]  ;;  %v2734_v1 = vpack.c.bf16 %v1137_v60, %v1132_v59  ;;  %v1136_v3 = vld [vmem:[%s3947_s29 + $0x438] sm:$0xff]  ;;  %v1133_v4 = vld [vmem:[%s3947_s29 + $0x420] sm:$0xff] }
 0x30f   : > { %2717 = vmatpush1.bf16.msra.mxu0 %v2716_v13  ;;  %2909 = vmatpush1.bf16.msra.mxu1 %v2908_v15  ;;  %v1131_v2 = vld [vmem:[%s3947_s29 + $0x410] sm:$0xff]  ;;  %v2926_v5 = vpack.c.bf16 %v1139_v62, %v1134_v61  ;;  %v1138_v6 = vld [vmem:[%s3947_s29 + $0x448] sm:$0xff]  ;;  %v1144_v9 = vld [vmem:[%s3947_s29 + $0x478] sm:$0xff] }
 0x310   : > { %2719 = vmatprep.subr.bf16.mxu0 %v2718_v16  ;;  %2911 = vmatprep.subr.bf16.mxu1 %v2910_v20  ;;  %v1142_v7 = vld [vmem:[%s3947_s29 + $0x468] sm:$0xff]  ;;  %v1147_v8 = vld [vmem:[%s3947_s29 + $0x490] sm:$0xff]  ;;  %v1149_v35 = vld [vmem:[%s3947_s29 + $0x4a0] sm:$0xff]  ;;  %v2736_v10 = vpack.c.bf16 %v1136_v3, %v1131_v2  ;;  %v2928_v11 = vpack.c.bf16 %v1138_v6, %v1133_v4 }
 0x311   : > { %v2738_v12 = vpack.c.bf16 %v1147_v8, %v1142_v7  ;;  %v1141_v13 = vld [vmem:[%s3947_s29 + $0x460] sm:$0xff]  ;;  %v1146_v15 = vld [vmem:[%s3947_s29 + $0x488] sm:$0xff]  ;;  %v1143_v16 = vld [vmem:[%s3947_s29 + $0x470] sm:$0xff]  ;;  %v2930_v18 = vpack.c.bf16 %v1149_v35, %v1144_v9 }
 0x312   : > { %v1148_v17 = vld [vmem:[%s3947_s29 + $0x498] sm:$0xff]  ;;  %v1157_v20 = vld [vmem:[%s3947_s29 + $0x4e0] sm:$0xff]  ;;  %v1154_v21 = vld [vmem:[%s3947_s29 + $0x4c8] sm:$0xff]  ;;  %v2740_v23 = vpack.c.bf16 %v1146_v15, %v1141_v13 }
 0x313   : > { %2721 = vmatpush1.bf16.msra.mxu0 %v2720_v26  ;;  %2913 = vmatpush1.bf16.msra.mxu1 %v2912_v27  ;;  %v1152_v19 = vld [vmem:[%s3947_s29 + $0x4b8] sm:$0xff]  ;;  %v1159_v22 = vld [vmem:[%s3947_s29 + $0x4f0] sm:$0xff]  ;;  %v2932_v24 = vpack.c.bf16 %v1148_v17, %v1143_v16  ;;  %v1158_v30 = vld [vmem:[%s3947_s29 + $0x4e8] sm:$0xff] }
 0x314   : > { %2723 = vmatprep.subr.bf16.mxu0 %v2722_v28  ;;  %2915 = vmatprep.subr.bf16.mxu1 %v2914_v14  ;;  %v2742_v25 = vpack.c.bf16 %v1157_v20, %v1152_v19  ;;  %v1151_v26 = vld [vmem:[%s3947_s29 + $0x4b0] sm:$0xff]  ;;  %v1156_v27 = vld [vmem:[%s3947_s29 + $0x4d8] sm:$0xff]  ;;  %v1153_v28 = vld [vmem:[%s3947_s29 + $0x4c0] sm:$0xff]  ;;  %v2934_v29 = vpack.c.bf16 %v1159_v22, %v1154_v21 }
 0x315   : > { %v1162_v31 = vld [vmem:[%s3947_s29 + $0x508] sm:$0xff]  ;;  %v1167_v14 = vld [vmem:[%s3947_s29 + $0x530] sm:$0xff]  ;;  %v1164_v32 = vld [vmem:[%s3947_s29 + $0x518] sm:$0xff]  ;;  %v2744_v34 = vpack.c.bf16 %v1156_v27, %v1151_v26  ;;  %v2936_v36 = vpack.c.bf16 %v1158_v30, %v1153_v28 }
 0x316   : > { %v1169_v33 = vld [vmem:[%s3947_s29 + $0x540] sm:$0xff]  ;;  %v2746_v37 = vpack.c.bf16 %v1167_v14, %v1162_v31  ;;  %v1166_v39 = vld [vmem:[%s3947_s29 + $0x528] sm:$0xff]  ;;  %v1168_v42 = vld [vmem:[%s3947_s29 + $0x538] sm:$0xff] }
 0x317   : > { %2725 = vmatpush1.bf16.msra.mxu0 %v2724_v38  ;;  %2917 = vmatpush1.bf16.msra.mxu1 %v2916_v40  ;;  %v1161_v38 = vld [vmem:[%s3947_s29 + $0x500] sm:$0xff]  ;;  %v1163_v40 = vld [vmem:[%s3947_s29 + $0x510] sm:$0xff]  ;;  %v1172_v43 = vld [vmem:[%s3947_s29 + $0x558] sm:$0xff] }
 0x318   : > { %2727 = vmatprep.subr.bf16.mxu0 %v2726_v41  ;;  %2919 = vmatprep.subr.bf16.mxu1 %v2918_v45  ;;  %v2938_v41 = vpack.c.bf16 %v1169_v33, %v1164_v32  ;;  %v1177_v44 = vld [vmem:[%s3947_s29 + $0x580] sm:$0xff]  ;;  %v1174_v45 = vld [vmem:[%s3947_s29 + $0x568] sm:$0xff]  ;;  %v1179_v46 = vld [vmem:[%s3947_s29 + $0x590] sm:$0xff]  ;;  %v2748_v48 = vpack.c.bf16 %v1166_v39, %v1161_v38  ;;  %v2940_v49 = vpack.c.bf16 %v1168_v42, %v1163_v40 }
 0x319   : > { %v995_v47 = vld [vmem:[#allocation2] sm:$0xff]  ;;  %v2750_v50 = vpack.c.bf16 %v1177_v44, %v1172_v43  ;;  %v2942_v54 = vpack.c.bf16 %v1179_v46, %v1174_v45  ;;  %v1178_v55 = vld [vmem:[%s3947_s29 + $0x588] sm:$0xff]  ;;  %v1184_v58 = vld [vmem:[%s3947_s29 + $0x5b8] sm:$0xff] }
 0x31a   : > { %v1182_v56 = vld [vmem:[%s3947_s29 + $0x5a8] sm:$0xff]  ;;  %v1189_v59 = vld [vmem:[%s3947_s29 + $0x5e0] sm:$0xff]  ;;  %v1188_v3 = vld [vmem:[%s3947_s29 + $0x5d8] sm:$0xff] }
 0x31b   : > { %2729 = vmatpush1.bf16.msra.mxu0 %v2728_v51  ;;  %2921 = vmatpush1.bf16.msra.mxu1 %v2920_v52  ;;  %v1171_v51 = vld [vmem:[%s3947_s29 + $0x550] sm:$0xff]  ;;  %v1176_v52 = vld [vmem:[%s3947_s29 + $0x578] sm:$0xff]  ;;  %v2946_v2 = vpack.c.bf16 %v1189_v59, %v1184_v58  ;;  %v1194_v6 = vld [vmem:[%s3947_s29 + $0x608] sm:$0xff] }
 0x31c   : > { %2731 = vmatprep.subr.bf16.mxu0 %v2730_v53  ;;  %2923 = vmatprep.subr.bf16.mxu1 %v2922_v57  ;;  %v1173_v53 = vld [vmem:[%s3947_s29 + $0x560] sm:$0xff]  ;;  %v1187_v57 = vld [vmem:[%s3947_s29 + $0x5d0] sm:$0xff]  ;;  %v2752_v60 = vpack.c.bf16 %v1176_v52, %v1171_v51  ;;  %v1192_v4 = vld [vmem:[%s3947_s29 + $0x5f8] sm:$0xff] }
 0x31d   : > { %v2944_v61 = vpack.c.bf16 %v1178_v55, %v1173_v53  ;;  %v2754_v62 = vpack.c.bf16 %v1187_v57, %v1182_v56  ;;  %v1199_v7 = vld [vmem:[%s3947_s29 + $0x630] sm:$0xff]  ;;  %v1198_v15 = vld [vmem:[%s3947_s29 + $0x628] sm:$0xff]  ;;  %v1204_v17 = vld [vmem:[%s3947_s29 + $0x658] sm:$0xff] }
 0x31e   : > { %v2950_v13 = vpack.c.bf16 %v1199_v7, %v1194_v6  ;;  %v1202_v16 = vld [vmem:[%s3947_s29 + $0x648] sm:$0xff]  ;;  %v1209_v19 = vld [vmem:[%s3947_s29 + $0x680] sm:$0xff]  ;;  %v1208_v27 = vld [vmem:[%s3947_s29 + $0x678] sm:$0xff] }
 0x31f   : > { %2733 = vmatpush1.bf16.msra.mxu0 %v2732_v63  ;;  %2925 = vmatpush1.bf16.msra.mxu1 %v2924_v0  ;;  %v1181_v63 = vld [vmem:[%s3947_s29 + $0x5a0] sm:$0xff]  ;;  %v1186_v0 = vld [vmem:[%s3947_s29 + $0x5c8] sm:$0xff]  ;;  %v2954_v26 = vpack.c.bf16 %v1209_v19, %v1204_v17  ;;  %v1212_v28 = vld [vmem:[%s3947_s29 + $0x698] sm:$0xff] }
 0x320   : > { %2735 = vmatprep.subr.bf16.mxu0 %v2734_v1  ;;  %2927 = vmatprep.subr.bf16.mxu1 %v2926_v5  ;;  %v1183_v1 = vld [vmem:[%s3947_s29 + $0x5b0] sm:$0xff]  ;;  %v1197_v5 = vld [vmem:[%s3947_s29 + $0x620] sm:$0xff]  ;;  %v2756_v8 = vpack.c.bf16 %v1186_v0, %v1181_v63  ;;  %v1214_v30 = vld [vmem:[%s3947_s29 + $0x6a8] sm:$0xff] }
 0x321   : > { %v2948_v9 = vpack.c.bf16 %v1188_v3, %v1183_v1  ;;  %v2758_v35 = vpack.c.bf16 %v1197_v5, %v1192_v4  ;;  %v1219_v31 = vld [vmem:[%s3947_s29 + $0x6d0] sm:$0xff]  ;;  %v1218_v39 = vld [vmem:[%s3947_s29 + $0x6c8] sm:$0xff]  ;;  %v1224_v42 = vld [vmem:[%s3947_s29 + $0x6f8] sm:$0xff] }
 0x322   : > { %v2958_v38 = vpack.c.bf16 %v1219_v31, %v1214_v30  ;;  %v1222_v40 = vld [vmem:[%s3947_s29 + $0x6e8] sm:$0xff]  ;;  %v1229_v43 = vld [vmem:[%s3947_s29 + $0x720] sm:$0xff]  ;;  %v1232_v52 = vld [vmem:[%s3947_s29 + $0x738] sm:$0xff] }
 0x323   : > { %2737 = vmatpush1.bf16.msra.mxu0 %v2736_v10  ;;  %2929 = vmatpush1.bf16.msra.mxu1 %v2928_v11  ;;  %v1191_v10 = vld [vmem:[%s3947_s29 + $0x5f0] sm:$0xff]  ;;  %v1196_v11 = vld [vmem:[%s3947_s29 + $0x618] sm:$0xff]  ;;  %v1221_v45 = vld [vmem:[%s3947_s29 + $0x6e0] sm:$0xff]  ;;  %v2962_v51 = vpack.c.bf16 %v1229_v43, %v1224_v42 }
 0x324   : > { %2739 = vmatprep.subr.bf16.mxu0 %v2738_v12  ;;  %2931 = vmatprep.subr.bf16.mxu1 %v2930_v18  ;;  %v1193_v12 = vld [vmem:[%s3947_s29 + $0x600] sm:$0xff]  ;;  %v1207_v18 = vld [vmem:[%s3947_s29 + $0x670] sm:$0xff]  ;;  %v2760_v20 = vpack.c.bf16 %v1196_v11, %v1191_v10  ;;  %v1234_v55 = vld [vmem:[%s3947_s29 + $0x748] sm:$0xff] }
 0x325   : > { %v2952_v21 = vpack.c.bf16 %v1198_v15, %v1193_v12  ;;  %v2762_v22 = vpack.c.bf16 %v1207_v18, %v1202_v16  ;;  %v1237_v53 = vld [vmem:[%s3947_s29 + $0x760] sm:$0xff]  ;;  %v1239_v56 = vld [vmem:[%s3947_s29 + $0x770] sm:$0xff]  ;;  %v1238_v0 = vld [vmem:[%s3947_s29 + $0x768] sm:$0xff] }
 0x326   : > { %v2774_v59 = vpack.c.bf16 %v1237_v53, %v1232_v52  ;;  %v2966_v63 = vpack.c.bf16 %v1239_v56, %v1234_v55  ;;  %v1242_v1 = vld [vmem:[%s3947_s29 + $0x788] sm:$0xff]  ;;  %v1244_v3 = vld [vmem:[%s3947_s29 + $0x798] sm:$0xff]  ;;  %v1249_v4 = vld [vmem:[%s3947_s29 + $0x7c0] sm:$0xff] }
 0x327   : > { %2741 = vmatpush1.bf16.msra.mxu0 %v2740_v23  ;;  %2933 = vmatpush1.bf16.msra.mxu1 %v2932_v24  ;;  %v1201_v23 = vld [vmem:[%s3947_s29 + $0x640] sm:$0xff]  ;;  %v1206_v24 = vld [vmem:[%s3947_s29 + $0x668] sm:$0xff]  ;;  %v2970_v10 = vpack.c.bf16 %v1249_v4, %v1244_v3  ;;  %v1248_v11 = vld [vmem:[%s3947_s29 + $0x7b8] sm:$0xff] }
 0x328   : > { %2743 = vmatprep.subr.bf16.mxu0 %v2742_v25  ;;  %2935 = vmatprep.subr.bf16.mxu1 %v2934_v29  ;;  %v1203_v25 = vld [vmem:[%s3947_s29 + $0x650] sm:$0xff]  ;;  %v1217_v29 = vld [vmem:[%s3947_s29 + $0x6c0] sm:$0xff]  ;;  %v2764_v14 = vpack.c.bf16 %v1206_v24, %v1201_v23  ;;  %v1252_v12 = vld [vmem:[%s3947_s29 + $0x7d8] sm:$0xff] }
 0x329   : > { %v2956_v32 = vpack.c.bf16 %v1208_v27, %v1203_v25  ;;  %v2766_v33 = vpack.c.bf16 %v1217_v29, %v1212_v28  ;;  %v1254_v15 = vld [vmem:[%s3947_s29 + $0x7e8] sm:$0xff]  ;;  %v1259_v16 = vld [vmem:[%s3947_s29 + $0x810] sm:$0xff]  ;;  %v1264_v27 = vld [vmem:[%s3947_s29 + $0x838] sm:$0xff] }
 0x32a   : > { %v2974_v23 = vpack.c.bf16 %v1259_v16, %v1254_v15  ;;  %v1258_v24 = vld [vmem:[%s3947_s29 + $0x808] sm:$0xff]  ;;  %v1269_v28 = vld [vmem:[%s3947_s29 + $0x860] sm:$0xff] }
 0x32b   : > { %2745 = vmatpush1.bf16.msra.mxu0 %v2744_v34  ;;  %2937 = vmatpush1.bf16.msra.mxu1 %v2936_v36  ;;  %v1211_v34 = vld [vmem:[%s3947_s29 + $0x690] sm:$0xff]  ;;  %v1216_v36 = vld [vmem:[%s3947_s29 + $0x6b8] sm:$0xff]  ;;  %v1262_v25 = vld [vmem:[%s3947_s29 + $0x828] sm:$0xff] }
 0x32c   : > { %2747 = vmatprep.subr.bf16.mxu0 %v2746_v37  ;;  %2939 = vmatprep.subr.bf16.mxu1 %v2938_v41  ;;  %v1213_v37 = vld [vmem:[%s3947_s29 + $0x6a0] sm:$0xff]  ;;  %v1227_v41 = vld [vmem:[%s3947_s29 + $0x710] sm:$0xff]  ;;  %v2768_v44 = vpack.c.bf16 %v1216_v36, %v1211_v34  ;;  %v2978_v34 = vpack.c.bf16 %v1269_v28, %v1264_v27  ;;  %v1268_v36 = vld [vmem:[%s3947_s29 + $0x858] sm:$0xff] }
 0x32d   : > { %v2960_v46 = vpack.c.bf16 %v1218_v39, %v1213_v37  ;;  %v1272_v37 = vld [vmem:[%s3947_s29 + $0x878] sm:$0xff]  ;;  %v1274_v39 = vld [vmem:[%s3947_s29 + $0x888] sm:$0xff]  ;;  %v1289_v52 = vld [vmem:[%s3947_s29 + $0x900] sm:$0xff] }
 0x32e   : > { %1573 = vmatmul.mubr.f32.vlgmr.msra.gmra.mrb[0].mxu0 %v995_v47  ;;  %1786 = vmatmul.mubr.f32.vlgmr.msra.gmra.mrb[0].mxu1 %v995_v47  ;;  %v2770_v47 = vpack.c.bf16 %v1227_v41, %v1222_v40  ;;  %v1279_v40 = vld [vmem:[%s3947_s29 + $0x8b0] sm:$0xff] }
 0x32f   : > { %2749 = vmatpush1.bf16.msra.mxu0 %v2748_v48  ;;  %2941 = vmatpush1.bf16.msra.mxu1 %v2940_v49  ;;  %v1226_v48 = vld [vmem:[%s3947_s29 + $0x708] sm:$0xff]  ;;  %v1223_v49 = vld [vmem:[%s3947_s29 + $0x6f0] sm:$0xff] }
 0x330   : > { %2751 = vmatprep.subr.bf16.mxu0 %v2750_v50  ;;  %2943 = vmatprep.subr.bf16.mxu1 %v2942_v54  ;;  %v1228_v50 = vld [vmem:[%s3947_s29 + $0x718] sm:$0xff]  ;;  %v4170_v54 = vld [vmem:[#allocation2 + $0x18] sm:$0xff]  ;;  %v2772_v57 = vpack.c.bf16 %v1226_v48, %v1221_v45 }
 0x331   : > { %1643 = vmatprep.mubr.f32.mxu0 %v4170_v54  ;;  %1856 = vmatprep.mubr.f32.mxu1 %v4170_v54  ;;  %v2964_v58 = vpack.c.bf16 %v1228_v50, %v1223_v49  ;;  %v1276_v45 = vld [vmem:[%s3947_s29 + $0x898] sm:$0xff]  ;;  %v1278_v48 = vld [vmem:[%s3947_s29 + $0x8a8] sm:$0xff]  ;;  %v1287_v50 = vld [vmem:[%s3947_s29 + $0x8f0] sm:$0xff] }
 0x332   : > { %v1282_v49 = vld [vmem:[%s3947_s29 + $0x8c8] sm:$0xff] }
 0x333   : > { %2753 = vmatpush1.bf16.msra.mxu0 %v2752_v60  ;;  %2945 = vmatpush1.bf16.msra.mxu1 %v2944_v61  ;;  %v1231_v60 = vld [vmem:[%s3947_s29 + $0x730] sm:$0xff]  ;;  %v1236_v61 = vld [vmem:[%s3947_s29 + $0x758] sm:$0xff]  ;;  %v2794_v56 = vpack.c.bf16 %v1287_v50, %v1282_v49  ;;  %v4256_v50 = vld [vmem:[#allocation2 + $0x10] sm:$0xff] }
 0x334   : > { %2755 = vmatprep.subr.bf16.mxu0 %v2754_v62  ;;  %2947 = vmatprep.subr.bf16.mxu1 %v2946_v2  ;;  %v1233_v62 = vld [vmem:[%s3947_s29 + $0x740] sm:$0xff]  ;;  %v1247_v2 = vld [vmem:[%s3947_s29 + $0x7b0] sm:$0xff]  ;;  %v2776_v5 = vpack.c.bf16 %v1236_v61, %v1231_v60  ;;  %v1288_v61 = vld [vmem:[%s3947_s29 + $0x8f8] sm:$0xff] }
 0x335   : > { %v2968_v6 = vpack.c.bf16 %v1238_v0, %v1233_v62  ;;  %v2778_v7 = vpack.c.bf16 %v1247_v2, %v1242_v1  ;;  %v1292_v62 = vld [vmem:[%s3947_s29 + $0x918] sm:$0xff]  ;;  %v1294_v0 = vld [vmem:[%s3947_s29 + $0x928] sm:$0xff]  ;;  %v1299_v1 = vld [vmem:[%s3947_s29 + $0x950] sm:$0xff] }
 0x336   : > { %v1339_v49 = vld [vmem:[%s3947_s29 + $0xa90] sm:$0xff] }
 0x337   : > { %2757 = vmatpush1.bf16.msra.mxu0 %v2756_v8  ;;  %2949 = vmatpush1.bf16.msra.mxu1 %v2948_v9  ;;  %v1241_v8 = vld [vmem:[%s3947_s29 + $0x780] sm:$0xff]  ;;  %v1246_v9 = vld [vmem:[%s3947_s29 + $0x7a8] sm:$0xff] }
 0x338   : > { %2759 = vmatprep.subr.bf16.mxu0 %v2758_v35  ;;  %2951 = vmatprep.subr.bf16.mxu1 %v2950_v13  ;;  %v1243_v35 = vld [vmem:[%s3947_s29 + $0x790] sm:$0xff]  ;;  %v1257_v13 = vld [vmem:[%s3947_s29 + $0x800] sm:$0xff]  ;;  %v2780_v18 = vpack.c.bf16 %v1246_v9, %v1241_v8  ;;  %v2990_v8 = vpack.c.bf16 %v1299_v1, %v1294_v0  ;;  %v1298_v9 = vld [vmem:[%s3947_s29 + $0x948] sm:$0xff] }
 0x339   : > { %v2972_v17 = vpack.c.bf16 %v1248_v11, %v1243_v35  ;;  %v2782_v19 = vpack.c.bf16 %v1257_v13, %v1252_v12  ;;  %v1302_v35 = vld [vmem:[%s3947_s29 + $0x968] sm:$0xff]  ;;  %v1304_v11 = vld [vmem:[%s3947_s29 + $0x978] sm:$0xff]  ;;  %v1309_v12 = vld [vmem:[%s3947_s29 + $0x9a0] sm:$0xff] }
 0x33a   : > { %v4267_v0 = vld [vmem:[#allocation2 + $0x28] sm:$0xff] }
 0x33b   : > { %2761 = vmatpush1.bf16.msra.mxu0 %v2760_v20  ;;  %2953 = vmatpush1.bf16.msra.mxu1 %v2952_v21  ;;  %v1251_v20 = vld [vmem:[%s3947_s29 + $0x7d0] sm:$0xff]  ;;  %v1256_v21 = vld [vmem:[%s3947_s29 + $0x7f8] sm:$0xff] }
 0x33c   : > { %2763 = vmatprep.subr.bf16.mxu0 %v2762_v22  ;;  %2955 = vmatprep.subr.bf16.mxu1 %v2954_v26  ;;  %v1253_v22 = vld [vmem:[%s3947_s29 + $0x7e0] sm:$0xff]  ;;  %v1267_v26 = vld [vmem:[%s3947_s29 + $0x850] sm:$0xff]  ;;  %v2784_v29 = vpack.c.bf16 %v1256_v21, %v1251_v20  ;;  %v2994_v20 = vpack.c.bf16 %v1309_v12, %v1304_v11  ;;  %v1308_v21 = vld [vmem:[%s3947_s29 + $0x998] sm:$0xff] }
 0x33d   : > { %v2976_v30 = vpack.c.bf16 %v1258_v24, %v1253_v22  ;;  %v2786_v31 = vpack.c.bf16 %v1267_v26, %v1262_v25  ;;  %v1312_v22 = vld [vmem:[%s3947_s29 + $0x9b8] sm:$0xff]  ;;  %v1314_v24 = vld [vmem:[%s3947_s29 + $0x9c8] sm:$0xff]  ;;  %v1319_v25 = vld [vmem:[%s3947_s29 + $0x9f0] sm:$0xff] }
 0x33e   : > { %v1359_v11 = vld [vmem:[%s3947_s29 + $0xb30] sm:$0xff] }
 0x33f   : > { %2765 = vmatpush1.bf16.msra.mxu0 %v2764_v14  ;;  %2957 = vmatpush1.bf16.msra.mxu1 %v2956_v32  ;;  %v1261_v14 = vld [vmem:[%s3947_s29 + $0x820] sm:$0xff]  ;;  %v1266_v32 = vld [vmem:[%s3947_s29 + $0x848] sm:$0xff] }
 0x340   : > { %2767 = vmatprep.subr.bf16.mxu0 %v2766_v33  ;;  %2959 = vmatprep.subr.bf16.mxu1 %v2958_v38  ;;  %v1263_v33 = vld [vmem:[%s3947_s29 + $0x830] sm:$0xff]  ;;  %v1277_v38 = vld [vmem:[%s3947_s29 + $0x8a0] sm:$0xff]  ;;  %v2788_v41 = vpack.c.bf16 %v1266_v32, %v1261_v14  ;;  %v2998_v14 = vpack.c.bf16 %v1319_v25, %v1314_v24  ;;  %v1318_v32 = vld [vmem:[%s3947_s29 + $0x9e8] sm:$0xff] }
 0x341   : > { %v2980_v42 = vpack.c.bf16 %v1268_v36, %v1263_v33  ;;  %v2790_v43 = vpack.c.bf16 %v1277_v38, %v1272_v37  ;;  %v1322_v33 = vld [vmem:[%s3947_s29 + $0xa08] sm:$0xff]  ;;  %v1324_v36 = vld [vmem:[%s3947_s29 + $0xa18] sm:$0xff]  ;;  %v1329_v37 = vld [vmem:[%s3947_s29 + $0xa40] sm:$0xff] }
 0x342   : > { %v1369_v24 = vld [vmem:[%s3947_s29 + $0xb80] sm:$0xff] }
 0x343   : > { %2769 = vmatpush1.bf16.msra.mxu0 %v2768_v44  ;;  %2961 = vmatpush1.bf16.msra.mxu1 %v2960_v46  ;;  %v1271_v44 = vld [vmem:[%s3947_s29 + $0x870] sm:$0xff]  ;;  %v1273_v46 = vld [vmem:[%s3947_s29 + $0x880] sm:$0xff] }
 0x344   : > { %2771 = vmatprep.subr.bf16.mxu0 %v2770_v47  ;;  %2963 = vmatprep.subr.bf16.mxu1 %v2962_v51  ;;  %v2982_v47 = vpack.c.bf16 %v1279_v40, %v1274_v39  ;;  %v1284_v51 = vld [vmem:[%s3947_s29 + $0x8d8] sm:$0xff]  ;;  %v2792_v53 = vpack.c.bf16 %v1276_v45, %v1271_v44  ;;  %v2984_v55 = vpack.c.bf16 %v1278_v48, %v1273_v46  ;;  %v1334_v48 = vld [vmem:[%s3947_s29 + $0xa68] sm:$0xff] }
 0x345   : > { %v2986_v60 = vpack.c.bf16 %v1289_v52, %v1284_v51  ;;  %v3002_v44 = vpack.c.bf16 %v1329_v37, %v1324_v36  ;;  %v1328_v45 = vld [vmem:[%s3947_s29 + $0xa38] sm:$0xff]  ;;  %v1379_v36 = vld [vmem:[%s3947_s29 + $0xbd0] sm:$0xff] }
 0x346   : > { %v1332_v46 = vld [vmem:[%s3947_s29 + $0xa58] sm:$0xff] }
 0x347   : > { %2773 = vmatpush1.bf16.msra.mxu0 %v2772_v57  ;;  %2965 = vmatpush1.bf16.msra.mxu1 %v2964_v58  ;;  %v1281_v57 = vld [vmem:[%s3947_s29 + $0x8c0] sm:$0xff]  ;;  %v1286_v58 = vld [vmem:[%s3947_s29 + $0x8e8] sm:$0xff] }
 0x348   : > { %2775 = vmatprep.subr.bf16.mxu0 %v2774_v59  ;;  %2967 = vmatprep.subr.bf16.mxu1 %v2966_v63  ;;  %v1283_v59 = vld [vmem:[%s3947_s29 + $0x8d0] sm:$0xff]  ;;  %v1297_v63 = vld [vmem:[%s3947_s29 + $0x940] sm:$0xff]  ;;  %v2796_v2 = vpack.c.bf16 %v1286_v58, %v1281_v57  ;;  %v3006_v58 = vpack.c.bf16 %v1339_v49, %v1334_v48 }
 0x349   : > { %v2988_v3 = vpack.c.bf16 %v1288_v61, %v1283_v59  ;;  %v2798_v4 = vpack.c.bf16 %v1297_v63, %v1292_v62  ;;  %v1333_v57 = vld [vmem:[%s3947_s29 + $0xa60] sm:$0xff]  ;;  %v1338_v59 = vld [vmem:[%s3947_s29 + $0xa88] sm:$0xff]  ;;  %v1347_v61 = vld [vmem:[%s3947_s29 + $0xad0] sm:$0xff] }
 0x34a   : > { %v1344_v62 = vld [vmem:[%s3947_s29 + $0xab8] sm:$0xff]  ;;  %v1349_v63 = vld [vmem:[%s3947_s29 + $0xae0] sm:$0xff] }
 0x34b   : > { %2777 = vmatpush1.bf16.msra.mxu0 %v2776_v5  ;;  %2969 = vmatpush1.bf16.msra.mxu1 %v2968_v6  ;;  %v1291_v5 = vld [vmem:[%s3947_s29 + $0x910] sm:$0xff]  ;;  %v1296_v6 = vld [vmem:[%s3947_s29 + $0x938] sm:$0xff]  ;;  %v1389_v48 = vld [vmem:[%s3947_s29 + $0xc20] sm:$0xff] }
 0x34c   : > { %2779 = vmatprep.subr.bf16.mxu0 %v2778_v7  ;;  %2971 = vmatprep.subr.bf16.mxu1 %v2970_v10  ;;  %v1293_v7 = vld [vmem:[%s3947_s29 + $0x920] sm:$0xff]  ;;  %v1307_v10 = vld [vmem:[%s3947_s29 + $0x990] sm:$0xff]  ;;  %v2800_v13 = vpack.c.bf16 %v1296_v6, %v1291_v5  ;;  %v1346_v5 = vld [vmem:[%s3947_s29 + $0xac8] sm:$0xff] }
 0x34d   : > { %v2992_v15 = vpack.c.bf16 %v1298_v9, %v1293_v7  ;;  %v2802_v16 = vpack.c.bf16 %v1307_v10, %v1302_v35  ;;  %v1343_v6 = vld [vmem:[%s3947_s29 + $0xab0] sm:$0xff]  ;;  %v3010_v7 = vpack.c.bf16 %v1349_v63, %v1344_v62  ;;  %v1352_v9 = vld [vmem:[%s3947_s29 + $0xaf8] sm:$0xff]  ;;  %v1357_v35 = vld [vmem:[%s3947_s29 + $0xb20] sm:$0xff] }
 0x34e   : > { %v1354_v10 = vld [vmem:[%s3947_s29 + $0xb08] sm:$0xff]  ;;  %v1399_v62 = vld [vmem:[%s3947_s29 + $0xc70] sm:$0xff] }
 0x34f   : > { %2781 = vmatpush1.bf16.msra.mxu0 %v2780_v18  ;;  %2973 = vmatpush1.bf16.msra.mxu1 %v2972_v17  ;;  %v1301_v18 = vld [vmem:[%s3947_s29 + $0x960] sm:$0xff]  ;;  %v1306_v17 = vld [vmem:[%s3947_s29 + $0x988] sm:$0xff] }
 0x350   : > { %2783 = vmatprep.subr.bf16.mxu0 %v2782_v19  ;;  %2975 = vmatprep.subr.bf16.mxu1 %v2974_v23  ;;  %v1303_v19 = vld [vmem:[%s3947_s29 + $0x970] sm:$0xff]  ;;  %v1317_v23 = vld [vmem:[%s3947_s29 + $0x9e0] sm:$0xff]  ;;  %v2804_v26 = vpack.c.bf16 %v1306_v17, %v1301_v18  ;;  %v1356_v18 = vld [vmem:[%s3947_s29 + $0xb18] sm:$0xff] }
 0x351   : > { %v2996_v27 = vpack.c.bf16 %v1308_v21, %v1303_v19  ;;  %v2806_v28 = vpack.c.bf16 %v1317_v23, %v1312_v22  ;;  %v1353_v17 = vld [vmem:[%s3947_s29 + $0xb00] sm:$0xff]  ;;  %v3014_v19 = vpack.c.bf16 %v1359_v11, %v1354_v10  ;;  %v1362_v21 = vld [vmem:[%s3947_s29 + $0xb48] sm:$0xff]  ;;  %v1367_v22 = vld [vmem:[%s3947_s29 + $0xb70] sm:$0xff] }
 0x352   : > { %v1364_v23 = vld [vmem:[%s3947_s29 + $0xb58] sm:$0xff]  ;;  %v1409_v10 = vld [vmem:[%s3947_s29 + $0xcc0] sm:$0xff] }
 0x353   : > { %2785 = vmatpush1.bf16.msra.mxu0 %v2784_v29  ;;  %2977 = vmatpush1.bf16.msra.mxu1 %v2976_v30  ;;  %v1311_v29 = vld [vmem:[%s3947_s29 + $0x9b0] sm:$0xff]  ;;  %v1316_v30 = vld [vmem:[%s3947_s29 + $0x9d8] sm:$0xff] }
 0x354   : > { %2787 = vmatprep.subr.bf16.mxu0 %v2786_v31  ;;  %2979 = vmatprep.subr.bf16.mxu1 %v2978_v34  ;;  %v1313_v31 = vld [vmem:[%s3947_s29 + $0x9c0] sm:$0xff]  ;;  %v1327_v34 = vld [vmem:[%s3947_s29 + $0xa30] sm:$0xff]  ;;  %v2808_v38 = vpack.c.bf16 %v1316_v30, %v1311_v29  ;;  %v1366_v29 = vld [vmem:[%s3947_s29 + $0xb68] sm:$0xff] }
 0x355   : > { %v3000_v39 = vpack.c.bf16 %v1318_v32, %v1313_v31  ;;  %v2810_v40 = vpack.c.bf16 %v1327_v34, %v1322_v33  ;;  %v1363_v30 = vld [vmem:[%s3947_s29 + $0xb50] sm:$0xff]  ;;  %v3018_v31 = vpack.c.bf16 %v1369_v24, %v1364_v23  ;;  %v1372_v32 = vld [vmem:[%s3947_s29 + $0xb98] sm:$0xff]  ;;  %v1377_v33 = vld [vmem:[%s3947_s29 + $0xbc0] sm:$0xff] }
 0x356   : > { %v1374_v34 = vld [vmem:[%s3947_s29 + $0xba8] sm:$0xff]  ;;  %v1419_v23 = vld [vmem:[%s3947_s29 + $0xd10] sm:$0xff] }
 0x357   : > { %2789 = vmatpush1.bf16.msra.mxu0 %v2788_v41  ;;  %2981 = vmatpush1.bf16.msra.mxu1 %v2980_v42  ;;  %v1321_v41 = vld [vmem:[%s3947_s29 + $0xa00] sm:$0xff]  ;;  %v1326_v42 = vld [vmem:[%s3947_s29 + $0xa28] sm:$0xff] }
 0x358   : > { %2791 = vmatprep.subr.bf16.mxu0 %v2790_v43  ;;  %2983 = vmatprep.subr.bf16.mxu1 %v2982_v47  ;;  %v1323_v43 = vld [vmem:[%s3947_s29 + $0xa10] sm:$0xff]  ;;  %v1337_v47 = vld [vmem:[%s3947_s29 + $0xa80] sm:$0xff]  ;;  %v2812_v51 = vpack.c.bf16 %v1326_v42, %v1321_v41  ;;  %v1376_v41 = vld [vmem:[%s3947_s29 + $0xbb8] sm:$0xff] }
 0x359   : > { %v3004_v52 = vpack.c.bf16 %v1328_v45, %v1323_v43  ;;  %v1373_v42 = vld [vmem:[%s3947_s29 + $0xba0] sm:$0xff]  ;;  %v3022_v43 = vpack.c.bf16 %v1379_v36, %v1374_v34  ;;  %v1382_v45 = vld [vmem:[%s3947_s29 + $0xbe8] sm:$0xff] }
 0x35a   : > { %v1429_v34 = vld [vmem:[%s3947_s29 + $0xd60] sm:$0xff] }
 0x35b   : > { %2793 = vmatpush1.bf16.msra.mxu0 %v2792_v53  ;;  %2985 = vmatpush1.bf16.msra.mxu1 %v2984_v55  ;;  %v2814_v53 = vpack.c.bf16 %v1337_v47, %v1332_v46  ;;  %v1331_v55 = vld [vmem:[%s3947_s29 + $0xa50] sm:$0xff]  ;;  %v1384_v47 = vld [vmem:[%s3947_s29 + $0xbf8] sm:$0xff] }
 0x35c   : > { %2795 = vmatprep.subr.bf16.mxu0 %v2794_v56  ;;  %2987 = vmatprep.subr.bf16.mxu1 %v2986_v60  ;;  %v1336_v56 = vld [vmem:[%s3947_s29 + $0xa78] sm:$0xff]  ;;  %v1342_v60 = vld [vmem:[%s3947_s29 + $0xaa8] sm:$0xff]  ;;  %v1387_v46 = vld [vmem:[%s3947_s29 + $0xc10] sm:$0xff] }
 0x35d   : > { %v2816_v1 = vpack.c.bf16 %v1336_v56, %v1331_v55  ;;  %v1386_v55 = vld [vmem:[%s3947_s29 + $0xc08] sm:$0xff]  ;;  %v1383_v56 = vld [vmem:[%s3947_s29 + $0xbf0] sm:$0xff] }
 0x35f   : > { %2797 = vmatpush1.bf16.msra.mxu0 %v2796_v2  ;;  %2989 = vmatpush1.bf16.msra.mxu1 %v2988_v3  ;;  %v3008_v2 = vpack.c.bf16 %v1338_v59, %v1333_v57  ;;  %v2818_v3 = vpack.c.bf16 %v1347_v61, %v1342_v60  ;;  %v3026_v57 = vpack.c.bf16 %v1389_v48, %v1384_v47  ;;  %v1392_v59 = vld [vmem:[%s3947_s29 + $0xc38] sm:$0xff]  ;;  %v1397_v60 = vld [vmem:[%s3947_s29 + $0xc60] sm:$0xff]  ;;  %v1394_v61 = vld [vmem:[%s3947_s29 + $0xc48] sm:$0xff] }
 0x360   : > { %2799 = vmatprep.subr.bf16.mxu0 %v2798_v4  ;;  %2991 = vmatprep.subr.bf16.mxu1 %v2990_v8  ;;  %v1341_v4 = vld [vmem:[%s3947_s29 + $0xaa0] sm:$0xff]  ;;  %v1348_v8 = vld [vmem:[%s3947_s29 + $0xad8] sm:$0xff]  ;;  %v1439_v47 = vld [vmem:[%s3947_s29 + $0xdb0] sm:$0xff] }
 0x361   : > { %v2820_v12 = vpack.c.bf16 %v1346_v5, %v1341_v4  ;;  %v1396_v4 = vld [vmem:[%s3947_s29 + $0xc58] sm:$0xff]  ;;  %v1393_v5 = vld [vmem:[%s3947_s29 + $0xc40] sm:$0xff] }
 0x363   : > { %2801 = vmatpush1.bf16.msra.mxu0 %v2800_v13  ;;  %2993 = vmatpush1.bf16.msra.mxu1 %v2992_v15  ;;  %v3012_v13 = vpack.c.bf16 %v1348_v8, %v1343_v6  ;;  %v2822_v15 = vpack.c.bf16 %v1357_v35, %v1352_v9  ;;  %v3030_v6 = vpack.c.bf16 %v1399_v62, %v1394_v61  ;;  %v1402_v8 = vld [vmem:[%s3947_s29 + $0xc88] sm:$0xff]  ;;  %v1407_v9 = vld [vmem:[%s3947_s29 + $0xcb0] sm:$0xff]  ;;  %v1404_v35 = vld [vmem:[%s3947_s29 + $0xc98] sm:$0xff] }
 0x364   : > { %2803 = vmatprep.subr.bf16.mxu0 %v2802_v16  ;;  %2995 = vmatprep.subr.bf16.mxu1 %v2994_v20  ;;  %v1351_v16 = vld [vmem:[%s3947_s29 + $0xaf0] sm:$0xff]  ;;  %v1358_v20 = vld [vmem:[%s3947_s29 + $0xb28] sm:$0xff]  ;;  %v1449_v61 = vld [vmem:[%s3947_s29 + $0xe00] sm:$0xff] }
 0x365   : > { %v2824_v25 = vpack.c.bf16 %v1356_v18, %v1351_v16  ;;  %v1406_v16 = vld [vmem:[%s3947_s29 + $0xca8] sm:$0xff]  ;;  %v1403_v18 = vld [vmem:[%s3947_s29 + $0xc90] sm:$0xff] }
 0x367   : > { %2805 = vmatpush1.bf16.msra.mxu0 %v2804_v26  ;;  %2997 = vmatpush1.bf16.msra.mxu1 %v2996_v27  ;;  %v3016_v26 = vpack.c.bf16 %v1358_v20, %v1353_v17  ;;  %v2826_v27 = vpack.c.bf16 %v1367_v22, %v1362_v21  ;;  %v3034_v17 = vpack.c.bf16 %v1409_v10, %v1404_v35  ;;  %v1412_v20 = vld [vmem:[%s3947_s29 + $0xcd8] sm:$0xff]  ;;  %v1417_v21 = vld [vmem:[%s3947_s29 + $0xd00] sm:$0xff]  ;;  %v1414_v22 = vld [vmem:[%s3947_s29 + $0xce8] sm:$0xff] }
 0x368   : > { %2807 = vmatprep.subr.bf16.mxu0 %v2806_v28  ;;  %2999 = vmatprep.subr.bf16.mxu1 %v2998_v14  ;;  %v1361_v28 = vld [vmem:[%s3947_s29 + $0xb40] sm:$0xff]  ;;  %v1368_v14 = vld [vmem:[%s3947_s29 + $0xb78] sm:$0xff]  ;;  %v1459_v35 = vld [vmem:[%s3947_s29 + $0xe50] sm:$0xff] }
 0x369   : > { %v2828_v37 = vpack.c.bf16 %v1366_v29, %v1361_v28  ;;  %v1416_v28 = vld [vmem:[%s3947_s29 + $0xcf8] sm:$0xff]  ;;  %v1413_v29 = vld [vmem:[%s3947_s29 + $0xce0] sm:$0xff] }
 0x36b   : > { %2809 = vmatpush1.bf16.msra.mxu0 %v2808_v38  ;;  %3001 = vmatpush1.bf16.msra.mxu1 %v3000_v39  ;;  %v3020_v38 = vpack.c.bf16 %v1368_v14, %v1363_v30  ;;  %v2830_v39 = vpack.c.bf16 %v1377_v33, %v1372_v32  ;;  %v3038_v30 = vpack.c.bf16 %v1419_v23, %v1414_v22  ;;  %v1422_v14 = vld [vmem:[%s3947_s29 + $0xd28] sm:$0xff]  ;;  %v1427_v32 = vld [vmem:[%s3947_s29 + $0xd50] sm:$0xff]  ;;  %v1424_v33 = vld [vmem:[%s3947_s29 + $0xd38] sm:$0xff] }
 0x36c   : > { %2811 = vmatprep.subr.bf16.mxu0 %v2810_v40  ;;  %3003 = vmatprep.subr.bf16.mxu1 %v3002_v44  ;;  %v1371_v40 = vld [vmem:[%s3947_s29 + $0xb90] sm:$0xff]  ;;  %v1378_v44 = vld [vmem:[%s3947_s29 + $0xbc8] sm:$0xff]  ;;  %v1469_v22 = vld [vmem:[%s3947_s29 + $0xea0] sm:$0xff] }
 0x36d   : > { %v2832_v49 = vpack.c.bf16 %v1376_v41, %v1371_v40  ;;  %v1426_v40 = vld [vmem:[%s3947_s29 + $0xd48] sm:$0xff]  ;;  %v1423_v41 = vld [vmem:[%s3947_s29 + $0xd30] sm:$0xff] }
 0x36e   : > { %1644 = vmatmul.mubr.f32.vlgmr.msra.gmra.mrb[0].mxu0 %v4256_v50  ;;  %1857 = vmatmul.mubr.f32.vlgmr.msra.gmra.mrb[0].mxu1 %v4256_v50 }
 0x36f   : > { %2813 = vmatpush1.bf16.msra.mxu0 %v2812_v51  ;;  %3005 = vmatpush1.bf16.msra.mxu1 %v3004_v52  ;;  %v3024_v51 = vpack.c.bf16 %v1378_v44, %v1373_v42  ;;  %v2834_v52 = vpack.c.bf16 %v1387_v46, %v1382_v45  ;;  %v3042_v42 = vpack.c.bf16 %v1429_v34, %v1424_v33  ;;  %v1432_v44 = vld [vmem:[%s3947_s29 + $0xd78] sm:$0xff]  ;;  %v1437_v45 = vld [vmem:[%s3947_s29 + $0xda0] sm:$0xff]  ;;  %v1434_v46 = vld [vmem:[%s3947_s29 + $0xd88] sm:$0xff] }
 0x370   : > { %2815 = vmatprep.subr.bf16.mxu0 %v2814_v53  ;;  %3007 = vmatprep.subr.bf16.mxu1 %v3006_v58  ;;  %v1381_v53 = vld [vmem:[%s3947_s29 + $0xbe0] sm:$0xff]  ;;  %v1388_v58 = vld [vmem:[%s3947_s29 + $0xc18] sm:$0xff]  ;;  %v1479_v33 = vld [vmem:[%s3947_s29 + $0xef0] sm:$0xff] }
 0x371   : > { %1714 = vmatprep.mubr.f32.mxu0 %v4267_v0  ;;  %1927 = vmatprep.mubr.f32.mxu1 %v4267_v0  ;;  %v2836_v63 = vpack.c.bf16 %v1386_v55, %v1381_v53  ;;  %v1436_v53 = vld [vmem:[%s3947_s29 + $0xd98] sm:$0xff]  ;;  %v1433_v55 = vld [vmem:[%s3947_s29 + $0xd80] sm:$0xff] }
 0x373   : > { %2817 = vmatpush1.bf16.msra.mxu0 %v2816_v1  ;;  %3009 = vmatpush1.bf16.msra.mxu1 %v3008_v2  ;;  %v3028_v1 = vpack.c.bf16 %v1388_v58, %v1383_v56  ;;  %v2838_v2 = vpack.c.bf16 %v1397_v60, %v1392_v59  ;;  %v3046_v56 = vpack.c.bf16 %v1439_v47, %v1434_v46  ;;  %v1442_v58 = vld [vmem:[%s3947_s29 + $0xdc8] sm:$0xff]  ;;  %v1447_v59 = vld [vmem:[%s3947_s29 + $0xdf0] sm:$0xff]  ;;  %v1444_v60 = vld [vmem:[%s3947_s29 + $0xdd8] sm:$0xff] }
 0x374   : > { %2819 = vmatprep.subr.bf16.mxu0 %v2818_v3  ;;  %3011 = vmatprep.subr.bf16.mxu1 %v3010_v7  ;;  %v1391_v3 = vld [vmem:[%s3947_s29 + $0xc30] sm:$0xff]  ;;  %v1398_v7 = vld [vmem:[%s3947_s29 + $0xc68] sm:$0xff] }
 0x375   : > { %v2840_v11 = vpack.c.bf16 %v1396_v4, %v1391_v3  ;;  %v1446_v3 = vld [vmem:[%s3947_s29 + $0xde8] sm:$0xff]  ;;  %v1443_v4 = vld [vmem:[%s3947_s29 + $0xdd0] sm:$0xff] }
 0x376   : > { %v1250_v46 = vld [vmem:[%s3947_s29 + $0x7c8] sm:$0xff] }
 0x377   : > { %2821 = vmatpush1.bf16.msra.mxu0 %v2820_v12  ;;  %3013 = vmatpush1.bf16.msra.mxu1 %v3012_v13  ;;  %v3032_v12 = vpack.c.bf16 %v1398_v7, %v1393_v5  ;;  %v2842_v13 = vpack.c.bf16 %v1407_v9, %v1402_v8  ;;  %v3050_v5 = vpack.c.bf16 %v1449_v61, %v1444_v60  ;;  %v1452_v7 = vld [vmem:[%s3947_s29 + $0xe18] sm:$0xff]  ;;  %v1457_v8 = vld [vmem:[%s3947_s29 + $0xe40] sm:$0xff]  ;;  %v1454_v9 = vld [vmem:[%s3947_s29 + $0xe28] sm:$0xff] }
 0x378   : > { %2823 = vmatprep.subr.bf16.mxu0 %v2822_v15  ;;  %3015 = vmatprep.subr.bf16.mxu1 %v3014_v19  ;;  %v1401_v15 = vld [vmem:[%s3947_s29 + $0xc80] sm:$0xff]  ;;  %v1408_v19 = vld [vmem:[%s3947_s29 + $0xcb8] sm:$0xff]  ;;  %v4392_v61 = vld [vmem:[#allocation2 + $0x20] sm:$0xff] }
 0x379   : > { %v2844_v24 = vpack.c.bf16 %v1406_v16, %v1401_v15  ;;  %v1456_v15 = vld [vmem:[%s3947_s29 + $0xe38] sm:$0xff]  ;;  %v1453_v16 = vld [vmem:[%s3947_s29 + $0xe20] sm:$0xff] }
 0x37a   : > { %v1260_v60 = vld [vmem:[%s3947_s29 + $0x818] sm:$0xff] }
 0x37b   : > { %2825 = vmatpush1.bf16.msra.mxu0 %v2824_v25  ;;  %3017 = vmatpush1.bf16.msra.mxu1 %v3016_v26  ;;  %v3036_v25 = vpack.c.bf16 %v1408_v19, %v1403_v18  ;;  %v2846_v26 = vpack.c.bf16 %v1417_v21, %v1412_v20  ;;  %v3054_v18 = vpack.c.bf16 %v1459_v35, %v1454_v9  ;;  %v1462_v19 = vld [vmem:[%s3947_s29 + $0xe68] sm:$0xff]  ;;  %v1467_v20 = vld [vmem:[%s3947_s29 + $0xe90] sm:$0xff]  ;;  %v1464_v21 = vld [vmem:[%s3947_s29 + $0xe78] sm:$0xff] }
 0x37c   : > { %2827 = vmatprep.subr.bf16.mxu0 %v2826_v27  ;;  %3019 = vmatprep.subr.bf16.mxu1 %v3018_v31  ;;  %v1411_v27 = vld [vmem:[%s3947_s29 + $0xcd0] sm:$0xff]  ;;  %v1418_v31 = vld [vmem:[%s3947_s29 + $0xd08] sm:$0xff]  ;;  %v1265_v9 = vld [vmem:[%s3947_s29 + $0x840] sm:$0xff] }
 0x37d   : > { %v2848_v36 = vpack.c.bf16 %v1416_v28, %v1411_v27  ;;  %v1466_v27 = vld [vmem:[%s3947_s29 + $0xe88] sm:$0xff]  ;;  %v1463_v28 = vld [vmem:[%s3947_s29 + $0xe70] sm:$0xff] }
 0x37e   : > { %v1270_v35 = vld [vmem:[%s3947_s29 + $0x868] sm:$0xff] }
 0x37f   : > { %2829 = vmatpush1.bf16.msra.mxu0 %v2828_v37  ;;  %3021 = vmatpush1.bf16.msra.mxu1 %v3020_v38  ;;  %v3040_v37 = vpack.c.bf16 %v1418_v31, %v1413_v29  ;;  %v2850_v38 = vpack.c.bf16 %v1427_v32, %v1422_v14  ;;  %v3058_v29 = vpack.c.bf16 %v1469_v22, %v1464_v21  ;;  %v1472_v31 = vld [vmem:[%s3947_s29 + $0xeb8] sm:$0xff]  ;;  %v1477_v14 = vld [vmem:[%s3947_s29 + $0xee0] sm:$0xff]  ;;  %v1474_v32 = vld [vmem:[%s3947_s29 + $0xec8] sm:$0xff] }
 0x380   : > { %2831 = vmatprep.subr.bf16.mxu0 %v2830_v39  ;;  %3023 = vmatprep.subr.bf16.mxu1 %v3022_v43  ;;  %v1421_v39 = vld [vmem:[%s3947_s29 + $0xd20] sm:$0xff]  ;;  %v1428_v43 = vld [vmem:[%s3947_s29 + $0xd58] sm:$0xff]  ;;  %v1275_v22 = vld [vmem:[%s3947_s29 + $0x890] sm:$0xff] }
 0x381   : > { %v2852_v48 = vpack.c.bf16 %v1426_v40, %v1421_v39  ;;  %v1476_v39 = vld [vmem:[%s3947_s29 + $0xed8] sm:$0xff]  ;;  %v1473_v40 = vld [vmem:[%s3947_s29 + $0xec0] sm:$0xff] }
 0x382   : > { %v3325_v21 = vld [vmem:[#allocation2 + $0x8] sm:$0xff] }
 0x383   : > { %2833 = vmatpush1.bf16.msra.mxu0 %v2832_v49  ;;  %3025 = vmatpush1.bf16.msra.mxu1 %v3024_v51  ;;  %v3044_v49 = vpack.c.bf16 %v1428_v43, %v1423_v41  ;;  %v2854_v51 = vpack.c.bf16 %v1437_v45, %v1432_v44  ;;  %v3062_v41 = vpack.c.bf16 %v1479_v33, %v1474_v32  ;;  %v1085_v43 = vld [vmem:[%s3947_s29 + $0x2a0] sm:$0xff]  ;;  %v1090_v44 = vld [vmem:[%s3947_s29 + $0x2c8] sm:$0xff] }
 0x384   : > { %2835 = vmatprep.subr.bf16.mxu0 %v2834_v52  ;;  %3027 = vmatprep.subr.bf16.mxu1 %v3026_v57  ;;  %v1431_v52 = vld [vmem:[%s3947_s29 + $0xd70] sm:$0xff]  ;;  %v1438_v57 = vld [vmem:[%s3947_s29 + $0xda8] sm:$0xff]  ;;  %v1245_v45 = vld [vmem:[%s3947_s29 + $0x7a0] sm:$0xff] }
 0x385   : > { %v2856_v62 = vpack.c.bf16 %v1436_v53, %v1431_v52  ;;  %v1010_v52 = vld [vmem:[%s3947_s29 + $0x48] sm:$0xff]  ;;  %v1165_v53 = vld [vmem:[%s3947_s29 + $0x520] sm:$0xff] }
 0x386   : > { %v1285_v32 = vld [vmem:[%s3947_s29 + $0x8e0] sm:$0xff]  ;;  %v1290_v33 = vld [vmem:[%s3947_s29 + $0x908] sm:$0xff] }
 0x387   : > { %2837 = vmatpush1.bf16.msra.mxu0 %v2836_v63  ;;  %3029 = vmatpush1.bf16.msra.mxu1 %v3028_v1  ;;  %v3048_v63 = vpack.c.bf16 %v1438_v57, %v1433_v55  ;;  %v2858_v1 = vpack.c.bf16 %v1447_v59, %v1442_v58  ;;  %v3098_v55 = vpack.c.bf16 %v1250_v46, %v1245_v45  ;;  %v1095_v57 = vld [vmem:[%s3947_s29 + $0x2f0] sm:$0xff]  ;;  %v1100_v58 = vld [vmem:[%s3947_s29 + $0x318] sm:$0xff] }
 0x388   : > { %2839 = vmatprep.subr.bf16.mxu0 %v2838_v2  ;;  %3031 = vmatprep.subr.bf16.mxu1 %v3030_v6  ;;  %v1441_v2 = vld [vmem:[%s3947_s29 + $0xdc0] sm:$0xff]  ;;  %v1448_v6 = vld [vmem:[%s3947_s29 + $0xdf8] sm:$0xff]  ;;  %v1255_v59 = vld [vmem:[%s3947_s29 + $0x7f0] sm:$0xff] }
 0x389   : > { %v2860_v10 = vpack.c.bf16 %v1446_v3, %v1441_v2  ;;  %v1015_v2 = vld [vmem:[%s3947_s29 + $0x70] sm:$0xff]  ;;  %v1020_v3 = vld [vmem:[%s3947_s29 + $0x98] sm:$0xff] }
 0x38a   : > { %v1295_v45 = vld [vmem:[%s3947_s29 + $0x930] sm:$0xff]  ;;  %v1300_v46 = vld [vmem:[%s3947_s29 + $0x958] sm:$0xff] }
 0x38b   : > { %2841 = vmatpush1.bf16.msra.mxu0 %v2840_v11  ;;  %3033 = vmatpush1.bf16.msra.mxu1 %v3032_v12  ;;  %v3052_v11 = vpack.c.bf16 %v1448_v6, %v1443_v4  ;;  %v2862_v12 = vpack.c.bf16 %v1457_v8, %v1452_v7  ;;  %v1175_v4 = vld [vmem:[%s3947_s29 + $0x570] sm:$0xff]  ;;  %v1180_v6 = vld [vmem:[%s3947_s29 + $0x598] sm:$0xff]  ;;  %v1105_v7 = vld [vmem:[%s3947_s29 + $0x340] sm:$0xff] }
 0x38c   : > { %2843 = vmatprep.subr.bf16.mxu0 %v2842_v13  ;;  %3035 = vmatprep.subr.bf16.mxu1 %v3034_v17  ;;  %v1451_v13 = vld [vmem:[%s3947_s29 + $0xe10] sm:$0xff]  ;;  %v1458_v17 = vld [vmem:[%s3947_s29 + $0xe48] sm:$0xff] }
 0x38d   : > { %v2864_v23 = vpack.c.bf16 %v1456_v15, %v1451_v13  ;;  %v1110_v8 = vld [vmem:[%s3947_s29 + $0x368] sm:$0xff]  ;;  %v1025_v13 = vld [vmem:[%s3947_s29 + $0xc0] sm:$0xff] }
 0x38e   : > { %v1030_v15 = vld [vmem:[%s3947_s29 + $0xe8] sm:$0xff] }
 0x38f   : > { %2845 = vmatpush1.bf16.msra.mxu0 %v2844_v24  ;;  %3037 = vmatpush1.bf16.msra.mxu1 %v3036_v25  ;;  %v3056_v24 = vpack.c.bf16 %v1458_v17, %v1453_v16  ;;  %v2866_v25 = vpack.c.bf16 %v1467_v20, %v1462_v19  ;;  %v1185_v16 = vld [vmem:[%s3947_s29 + $0x5c0] sm:$0xff]  ;;  %v1190_v17 = vld [vmem:[%s3947_s29 + $0x5e8] sm:$0xff]  ;;  %v1115_v19 = vld [vmem:[%s3947_s29 + $0x390] sm:$0xff] }
 0x390   : > { %2847 = vmatprep.subr.bf16.mxu0 %v2846_v26  ;;  %3039 = vmatprep.subr.bf16.mxu1 %v3038_v30  ;;  %v1461_v26 = vld [vmem:[%s3947_s29 + $0xe60] sm:$0xff]  ;;  %v1468_v30 = vld [vmem:[%s3947_s29 + $0xe98] sm:$0xff] }
 0x391   : > { %v2868_v34 = vpack.c.bf16 %v1466_v27, %v1461_v26  ;;  %v1120_v20 = vld [vmem:[%s3947_s29 + $0x3b8] sm:$0xff]  ;;  %v1035_v27 = vld [vmem:[%s3947_s29 + $0x110] sm:$0xff] }
 0x392   : > { %v3078_v26 = vpack.c.bf16 %v1120_v20, %v1115_v19  ;;  %v1405_v19 = vld [vmem:[%s3947_s29 + $0xca0] sm:$0xff]  ;;  %v1410_v20 = vld [vmem:[%s3947_s29 + $0xcc8] sm:$0xff] }
 0x393   : > { %2849 = vmatpush1.bf16.msra.mxu0 %v2848_v36  ;;  %3041 = vmatpush1.bf16.msra.mxu1 %v3040_v37  ;;  %v3060_v36 = vpack.c.bf16 %v1468_v30, %v1463_v28  ;;  %v2870_v37 = vpack.c.bf16 %v1477_v14, %v1472_v31  ;;  %v1040_v28 = vld [vmem:[%s3947_s29 + $0x138] sm:$0xff]  ;;  %v1125_v14 = vld [vmem:[%s3947_s29 + $0x3e0] sm:$0xff] }
 0x394   : > { %2851 = vmatprep.subr.bf16.mxu0 %v2850_v38  ;;  %3043 = vmatprep.subr.bf16.mxu1 %v3042_v42  ;;  %v1471_v38 = vld [vmem:[%s3947_s29 + $0xeb0] sm:$0xff]  ;;  %v1478_v42 = vld [vmem:[%s3947_s29 + $0xee8] sm:$0xff]  ;;  %v1200_v31 = vld [vmem:[%s3947_s29 + $0x638] sm:$0xff] }
 0x395   : > { %v2872_v47 = vpack.c.bf16 %v1476_v39, %v1471_v38  ;;  %v1045_v38 = vld [vmem:[%s3947_s29 + $0x160] sm:$0xff]  ;;  %v1050_v39 = vld [vmem:[%s3947_s29 + $0x188] sm:$0xff] }
 0x397   : > { %2853 = vmatpush1.bf16.msra.mxu0 %v2852_v48  ;;  %3045 = vmatpush1.bf16.msra.mxu1 %v3044_v49  ;;  %v3064_v48 = vpack.c.bf16 %v1478_v42, %v1473_v40  ;;  %v3066_v49 = vpack.c.bf16 %v1090_v44, %v1085_v43  ;;  %v1205_v40 = vld [vmem:[%s3947_s29 + $0x660] sm:$0xff]  ;;  %v1210_v42 = vld [vmem:[%s3947_s29 + $0x688] sm:$0xff]  ;;  %v1135_v43 = vld [vmem:[%s3947_s29 + $0x430] sm:$0xff] }
 0x398   : > { %2855 = vmatprep.subr.bf16.mxu0 %v2854_v51  ;;  %3047 = vmatprep.subr.bf16.mxu1 %v3046_v56  ;;  %v1005_v51 = vld [vmem:[%s3947_s29 + $0x20] sm:$0xff]  ;;  %v1170_v56 = vld [vmem:[%s3947_s29 + $0x548] sm:$0xff]  ;;  %v1140_v44 = vld [vmem:[%s3947_s29 + $0x458] sm:$0xff] }
 0x39b   : > { %2857 = vmatpush1.bf16.msra.mxu0 %v2856_v62  ;;  %3049 = vmatpush1.bf16.msra.mxu1 %v3048_v63  ;;  %v3068_v62 = vpack.c.bf16 %v1010_v52, %v1005_v51  ;;  %v3100_v63 = vpack.c.bf16 %v1170_v56, %v1165_v53  ;;  %v1055_v51 = vld [vmem:[%s3947_s29 + $0x1b0] sm:$0xff]  ;;  %v1060_v52 = vld [vmem:[%s3947_s29 + $0x1d8] sm:$0xff] }
 0x39c   : > { %2859 = vmatprep.subr.bf16.mxu0 %v2858_v1  ;;  %3051 = vmatprep.subr.bf16.mxu1 %v3050_v5  ;;  %v3070_v1 = vpack.c.bf16 %v1100_v58, %v1095_v57  ;;  %v3102_v5 = vpack.c.bf16 %v1260_v60, %v1255_v59  ;;  %v1215_v53 = vld [vmem:[%s3947_s29 + $0x6b0] sm:$0xff]  ;;  %v1220_v56 = vld [vmem:[%s3947_s29 + $0x6d8] sm:$0xff]  ;;  %v1145_v57 = vld [vmem:[%s3947_s29 + $0x480] sm:$0xff] }
 0x39d   : > { %v1150_v58 = vld [vmem:[%s3947_s29 + $0x4a8] sm:$0xff]  ;;  %v1305_v59 = vld [vmem:[%s3947_s29 + $0x980] sm:$0xff] }
 0x39e   : > { %v1310_v60 = vld [vmem:[%s3947_s29 + $0x9a8] sm:$0xff] }
 0x39f   : > { %2861 = vmatpush1.bf16.msra.mxu0 %v2860_v10  ;;  %3053 = vmatpush1.bf16.msra.mxu1 %v3052_v11  ;;  %v3072_v10 = vpack.c.bf16 %v1020_v3, %v1015_v2  ;;  %v3104_v11 = vpack.c.bf16 %v1180_v6, %v1175_v4  ;;  %v1065_v2 = vld [vmem:[%s3947_s29 + $0x200] sm:$0xff]  ;;  %v1070_v3 = vld [vmem:[%s3947_s29 + $0x228] sm:$0xff] }
 0x3a0   : > { %2863 = vmatprep.subr.bf16.mxu0 %v2862_v12  ;;  %3055 = vmatprep.subr.bf16.mxu1 %v3054_v18  ;;  %v3074_v12 = vpack.c.bf16 %v1110_v8, %v1105_v7  ;;  %v3106_v18 = vpack.c.bf16 %v1270_v35, %v1265_v9  ;;  %v1225_v4 = vld [vmem:[%s3947_s29 + $0x700] sm:$0xff]  ;;  %v1230_v6 = vld [vmem:[%s3947_s29 + $0x728] sm:$0xff]  ;;  %v1155_v7 = vld [vmem:[%s3947_s29 + $0x4d0] sm:$0xff] }
 0x3a1   : > { %v1160_v8 = vld [vmem:[%s3947_s29 + $0x4f8] sm:$0xff]  ;;  %v1315_v9 = vld [vmem:[%s3947_s29 + $0x9d0] sm:$0xff] }
 0x3a2   : > { %v1320_v35 = vld [vmem:[%s3947_s29 + $0x9f8] sm:$0xff] }
 0x3a3   : > { %2865 = vmatpush1.bf16.msra.mxu0 %v2864_v23  ;;  %3057 = vmatpush1.bf16.msra.mxu1 %v3056_v24  ;;  %v1280_v23 = vld [vmem:[%s3947_s29 + $0x8b8] sm:$0xff]  ;;  %v3076_v24 = vpack.c.bf16 %v1030_v15, %v1025_v13  ;;  %v1075_v13 = vld [vmem:[%s3947_s29 + $0x250] sm:$0xff] }
 0x3a4   : > { %2867 = vmatprep.subr.bf16.mxu0 %v2866_v25  ;;  %3059 = vmatprep.subr.bf16.mxu1 %v3058_v29  ;;  %v3108_v25 = vpack.c.bf16 %v1190_v17, %v1185_v16  ;;  %v1195_v29 = vld [vmem:[%s3947_s29 + $0x610] sm:$0xff]  ;;  %v3110_v30 = vpack.c.bf16 %v1280_v23, %v1275_v22  ;;  %v1080_v15 = vld [vmem:[%s3947_s29 + $0x278] sm:$0xff]  ;;  %v3130_v23 = vpack.c.bf16 %v1410_v20, %v1405_v19 }
 0x3a5   : > { %v1235_v16 = vld [vmem:[%s3947_s29 + $0x750] sm:$0xff]  ;;  %v1240_v17 = vld [vmem:[%s3947_s29 + $0x778] sm:$0xff] }
 0x3a6   : > { %v3128_v22 = vpack.c.bf16 %v1240_v17, %v1235_v16 }
 0x3a7   : > { %2869 = vmatpush1.bf16.msra.mxu0 %v2868_v34  ;;  %3061 = vmatpush1.bf16.msra.mxu1 %v3060_v36  ;;  %v3080_v34 = vpack.c.bf16 %v1040_v28, %v1035_v27  ;;  %v3112_v36 = vpack.c.bf16 %v1200_v31, %v1195_v29  ;;  %v1420_v27 = vld [vmem:[%s3947_s29 + $0xd18] sm:$0xff] }
 0x3a8   : > { %2871 = vmatprep.subr.bf16.mxu0 %v2870_v37  ;;  %3063 = vmatprep.subr.bf16.mxu1 %v3062_v41  ;;  %v3114_v41 = vpack.c.bf16 %v1290_v33, %v1285_v32  ;;  %v1340_v31 = vld [vmem:[%s3947_s29 + $0xa98] sm:$0xff]  ;;  %v3326_v32 = vld [vmem:[#allocation2] sm:$0xff] }
 0x3ab   : > { %2873 = vmatpush1.bf16.msra.mxu0 %v2872_v47  ;;  %3065 = vmatpush1.bf16.msra.mxu1 %v3064_v48  ;;  %v3084_v47 = vpack.c.bf16 %v1050_v39, %v1045_v38  ;;  %v3116_v48 = vpack.c.bf16 %v1210_v42, %v1205_v40  ;;  %v1435_v38 = vld [vmem:[%s3947_s29 + $0xd90] sm:$0xff]  ;;  %v1440_v39 = vld [vmem:[%s3947_s29 + $0xdb8] sm:$0xff] }
 0x3ac   : > { %3067 = vmatprep.subr.bf16.mxu0 %v3066_v49  ;;  %3099 = vmatprep.subr.bf16.mxu1 %v3098_v55  ;;  %v3086_v49 = vpack.c.bf16 %v1140_v44, %v1135_v43  ;;  %v3118_v55 = vpack.c.bf16 %v1300_v46, %v1295_v45  ;;  %v1355_v42 = vld [vmem:[%s3947_s29 + $0xb10] sm:$0xff]  ;;  %v1445_v43 = vld [vmem:[%s3947_s29 + $0xde0] sm:$0xff]  ;;  %v1450_v44 = vld [vmem:[%s3947_s29 + $0xe08] sm:$0xff] }
 0x3ad   : > { %v1365_v46 = vld [vmem:[%s3947_s29 + $0xb60] sm:$0xff] }
 0x3ae   : > { %1715 = vmatmul.mubr.f32.vlgmr.msra.gmra.mrb[0].mxu0 %v4392_v61  ;;  %1928 = vmatmul.mubr.f32.vlgmr.msra.gmra.mrb[0].mxu1 %v4392_v61 }
 0x3af   : > { %3069 = vmatpush3.bf16.msra.mxu0 %v3068_v62  ;;  %3101 = vmatpush3.bf16.msra.mxu1 %v3100_v63  ;;  %v3088_v62 = vpack.c.bf16 %v1060_v52, %v1055_v51  ;;  %v3120_v63 = vpack.c.bf16 %v1220_v56, %v1215_v53  ;;  %v1375_v53 = vld [vmem:[%s3947_s29 + $0xbb0] sm:$0xff]  ;;  %v1465_v56 = vld [vmem:[%s3947_s29 + $0xe80] sm:$0xff] }
 0x3b0   : > { %3071 = vmatprep.subr.bf16.mxu0 %v3070_v1  ;;  %3103 = vmatprep.subr.bf16.mxu1 %v3102_v5  ;;  %v3090_v1 = vpack.c.bf16 %v1150_v58, %v1145_v57  ;;  %v3122_v5 = vpack.c.bf16 %v1310_v60, %v1305_v59  ;;  %v1470_v57 = vld [vmem:[%s3947_s29 + $0xea8] sm:$0xff]  ;;  %v1385_v60 = vld [vmem:[%s3947_s29 + $0xc00] sm:$0xff] }
 0x3b1   : > { %1998 = vmatprep.mubr.f32.mxu0 %v3325_v21  ;;  %2068 = vmatprep.mubr.f32.mxu1 %v4170_v54  ;;  %v1130_v54 = vld [vmem:[%s3947_s29 + $0x408] sm:$0xff]  ;;  %v3096_v21 = vpack.c.bf16 %v1080_v15, %v1075_v13  ;;  %v3154_v59 = vpack.c.bf16 %v1470_v57, %v1465_v56 }
 0x3b2   : > { %v3082_v37 = vpack.c.bf16 %v1130_v54, %v1125_v14  ;;  %v1425_v14 = vld [vmem:[%s3947_s29 + $0xd40] sm:$0xff]  ;;  %v1430_v54 = vld [vmem:[%s3947_s29 + $0xd68] sm:$0xff] }
 0x3b3   : > { %3073 = vmatpush3.bf16.msra.mxu0 %v3072_v10  ;;  %3105 = vmatpush3.bf16.msra.mxu1 %v3104_v11  ;;  %v3092_v10 = vpack.c.bf16 %v1070_v3, %v1065_v2  ;;  %v3124_v11 = vpack.c.bf16 %v1230_v6, %v1225_v4  ;;  %v1395_v4 = vld [vmem:[%s3947_s29 + $0xc50] sm:$0xff] }
 0x3b4   : > { %3075 = vmatprep.subr.bf16.mxu0 %v3074_v12  ;;  %3107 = vmatprep.subr.bf16.mxu1 %v3106_v18  ;;  %v3094_v12 = vpack.c.bf16 %v1160_v8, %v1155_v7  ;;  %v3126_v18 = vpack.c.bf16 %v1320_v35, %v1315_v9  ;;  %v1483_v7 = vlaneseq  ;;  %v1481_v35 = vld [vmem:[%s3955_s22] sm:$0x1f] }
 0x3b6   : > { %v1484_v8 = vshrl.u32 %v1483_v7, 7 }
 0x3b7   : > { %3077 = vmatpush3.bf16.msra.mxu0 %v3076_v24  ;;  %3109 = vmatpush3.bf16.msra.mxu1 %v3108_v25  ;;  %v1325_v24 = vld [vmem:[%s3947_s29 + $0xa20] sm:$0xff]  ;;  %v1330_v25 = vld [vmem:[%s3947_s29 + $0xa48] sm:$0xff] }
 0x3b8   : > { %3079 = vmatprep.subr.bf16.mxu0 %v3078_v26  ;;  %3111 = vmatprep.subr.bf16.mxu1 %v3110_v30  ;;  %v1415_v26 = vld [vmem:[%s3947_s29 + $0xcf0] sm:$0xff]  ;;  %v3132_v28 = vpack.c.bf16 %v1330_v25, %v1325_v24  ;;  %v1485_v9 = vsub.s32 0, %v1484_v8 }
 0x3b9   : > { %v3134_v29 = vpack.c.bf16 %v1420_v27, %v1415_v26  ;;  %v1335_v30 = vld [vmem:[%s3947_s29 + $0xa70] sm:$0xff] }
 0x3ba   : > { %v3136_v33 = vpack.c.bf16 %v1340_v31, %v1335_v30  ;;  %v1486_v13 = vrot.slane %v1481_v35, %v1485_v9 }
 0x3bb   : > { %3081 = vmatpush3.bf16.msra.mxu0 %v3080_v34  ;;  %3113 = vmatpush3.bf16.msra.mxu1 %v3112_v36  ;;  %v3138_v34 = vpack.c.bf16 %v1430_v54, %v1425_v14  ;;  %v1345_v36 = vld [vmem:[%s3947_s29 + $0xac0] sm:$0xff] }
 0x3bc   : > { %3083 = vmatprep.subr.bf16.mxu0 %v3082_v37  ;;  %3115 = vmatprep.subr.bf16.mxu1 %v3114_v41  ;;  %v1350_v37 = vld [vmem:[%s3947_s29 + $0xae8] sm:$0xff]  ;;  %v3142_v41 = vpack.c.bf16 %v1440_v39, %v1435_v38 }
 0x3bd   : > { %v3140_v40 = vpack.c.bf16 %v1350_v37, %v1345_v36  ;;  %v1501_v37 = vsub.s32 4, %v1484_v8 }
 0x3bf   : > { %3085 = vmatpush3.bf16.msra.mxu0 %v3084_v47  ;;  %3117 = vmatpush3.bf16.msra.mxu1 %v3116_v48  ;;  %v1370_v47 = vld [vmem:[%s3947_s29 + $0xb88] sm:$0xff]  ;;  %v1455_v48 = vld [vmem:[%s3947_s29 + $0xe30] sm:$0xff] }
 0x3c0   : > { %3087 = vmatprep.subr.bf16.mxu0 %v3086_v49  ;;  %3119 = vmatprep.subr.bf16.mxu1 %v3118_v55  ;;  %v1460_v49 = vld [vmem:[%s3947_s29 + $0xe58] sm:$0xff]  ;;  %v3148_v51 = vpack.c.bf16 %v1370_v47, %v1365_v46 }
 0x3c1   : > { %v3150_v52 = vpack.c.bf16 %v1460_v49, %v1455_v48  ;;  %v1380_v55 = vld [vmem:[%s3947_s29 + $0xbd8] sm:$0xff] }
 0x3c2   : > { %v3152_v58 = vpack.c.bf16 %v1380_v55, %v1375_v53 }
 0x3c3   : > { %3089 = vmatpush3.bf16.msra.mxu0 %v3088_v62  ;;  %3121 = vmatpush3.bf16.msra.mxu1 %v3120_v63  ;;  %v1390_v62 = vld [vmem:[%s3947_s29 + $0xc28] sm:$0xff]  ;;  %v1475_v63 = vld [vmem:[%s3947_s29 + $0xed0] sm:$0xff] }
 0x3c4   : > { %3091 = vmatprep.subr.bf16.mxu0 %v3090_v1  ;;  %3123 = vmatprep.subr.bf16.mxu1 %v3122_v5  ;;  %v1480_v1 = vld [vmem:[%s3947_s29 + $0xef8] sm:$0xff]  ;;  %v3156_v2 = vpack.c.bf16 %v1390_v62, %v1385_v60 }
 0x3c5   : > { %v3158_v3 = vpack.c.bf16 %v1480_v1, %v1475_v63  ;;  %v1400_v5 = vld [vmem:[%s3947_s29 + $0xc78] sm:$0xff] }
 0x3c6   : > { %v3160_v6 = vpack.c.bf16 %v1400_v5, %v1395_v4 }
 0x3c7   : > { %3093 = vmatpush3.bf16.msra.mxu0 %v3092_v10  ;;  %3125 = vmatpush3.bf16.msra.mxu1 %v3124_v11  ;;  %v1493_v10 = vsub.s32 2, %v1484_v8  ;;  %v1489_v11 = vsub.s32 1, %v1484_v8 }
 0x3c8   : > { %3095 = vmatprep.subr.bf16.mxu0 %v3094_v12  ;;  %3127 = vmatprep.subr.bf16.mxu1 %v3126_v18  ;;  %v1497_v12 = vsub.s32 3, %v1484_v8 }
 0x3c9   : > { %v1494_v15 = vrot.slane %v1481_v35, %v1493_v10  ;;  %v1490_v16 = vrot.slane %v1481_v35, %v1489_v11 }
 0x3ca   : > { %v1498_v18 = vrot.slane %v1481_v35, %v1497_v12 }
 0x3cb   : > { %3097 = vmatpush3.bf16.msra.mxu0 %v3096_v21  ;;  %3129 = vmatpush3.bf16.msra.mxu1 %v3128_v22 }
 0x3cc   : > { %3131 = vmatprep.subr.bf16.mxu0 %v3130_v23 }
 0x3ce   : > { %1999 = vmatmul.mubr.f32.vlgmr.msra.gmra.mrb[2].mxu0 %v3326_v32  ;;  %2069 = vmatmul.mubr.f32.vlgmr.msra.gmra.mrb[2].mxu1 %v4256_v50  ;;  %v1360_v50 = vld [vmem:[%s3947_s29 + $0xb38] sm:$0xff] }
 0x3cf   : > { %3133 = vmatpush3.bf16.msra.mxu0 %v3132_v28  ;;  %2138 = vmatprep.mubr.f32.mxu0 %v4267_v0  ;;  %v3144_v45 = vpack.c.bf16 %v1360_v50, %v1355_v42  ;;  %v3146_v0 = vpack.c.bf16 %v1450_v44, %v1445_v43  ;;  %v1502_v42 = vrot.slane %v1481_v35, %v1501_v37 }
 0x3d0   : > { %3135 = vmatprep.subr.bf16.mxu0 %v3134_v29 }
 0x3d3   : > { %3137 = vmatpush3.bf16.msra.mxu0 %v3136_v33 }
 0x3d4   : > { %3139 = vmatprep.subr.bf16.mxu0 %v3138_v34 }
 0x3d7   : > { %3141 = vmatpush3.bf16.msra.mxu0 %v3140_v40 }
 0x3d8   : > { %3143 = vmatprep.subr.bf16.mxu0 %v3142_v41 }
 0x3db   : > { %3145 = vmatpush3.bf16.msra.mxu0 %v3144_v45 }
 0x3dc   : > { %3147 = vmatprep.subr.bf16.mxu0 %v3146_v0 }
 0x3df   : > { %3149 = vmatpush3.bf16.msra.mxu0 %v3148_v51 }
 0x3e0   : > { %3151 = vmatprep.subr.bf16.mxu0 %v3150_v52 }
 0x3e3   : > { %3153 = vmatpush3.bf16.msra.mxu0 %v3152_v58 }
 0x3e4   : > { %3155 = vmatprep.subr.bf16.mxu0 %v3154_v59 }
 0x3e7   : > { %3157 = vmatpush3.bf16.msra.mxu0 %v3156_v2 }
 0x3e8   : > { %3159 = vmatprep.subr.bf16.mxu0 %v3158_v3 }
 0x3eb   : > { %3161 = vmatpush3.bf16.msra.mxu0 %v3160_v6 }
 0x3ee   : > { %2139 = vmatmul.mubr.f32.vlgmr.msra.gmra.mrb[4].mxu0 %v4392_v61 }
 0x481   : > { %v1716_v17 = vpop.f32.mrb[0].mxu0  ;;  %v1929_v20 = vpop.f32.mrb[0].mxu1 }
 0x482   : > { %v3162_v19 = vadd.f32 %v1716_v17, %v1486_v13  ;;  %v1718_v21 = vpop.f32.mrb[1].mxu0  ;;  %v3164_v22 = vadd.f32 %v1929_v20, %v1494_v15  ;;  %v1931_v24 = vpop.f32.mrb[1].mxu1 }
 0x483   : > { %v3163_v23 = vadd.f32 %v1718_v21, %v1490_v16  ;;  %v3165_v61 = vadd.f32 %v1931_v24, %v1498_v18 }
 0x484   : > { %v2370_v25 = vmul.f32 -1.442695, %v3162_v19  ;;  %v2372_v26 = vmul.f32 -1.442695, %v3164_v22 }
 0x485   : > { %v2371_v27 = vmul.f32 -1.442695, %v3163_v23  ;;  %v2373_v28 = vmul.f32 -1.442695, %v3165_v61 }
 0x486   : > { %3305 = vpow2.f32 %v2370_v25 }
 0x487   : > { %3307 = vpow2.f32 %v2372_v26 }
 0x488   : > { %3309 = vpow2.f32 %v2371_v27 }
 0x489   : > { %3311 = vpow2.f32 %v2373_v28 }
 0x490   : > { %v3306_v29 = vpop.eup %3305 }
 0x491   : > { %v3308_v30 = vpop.eup %3307  ;;  %v2159_v31 = vadd.f32 1.0, %v3306_v29 }
 0x492   : > { %v3310_v14 = vpop.eup %3309  ;;  %v2161_v54 = vadd.f32 1.0, %v3308_v30 }
 0x493   : > { %v3312_v32 = vpop.eup %3311  ;;  %3313 = vrcp.f32 %v2159_v31  ;;  %v2160_v33 = vadd.f32 1.0, %v3310_v14 }
 0x494   : > { %3315 = vrcp.f32 %v2161_v54  ;;  %v2162_v34 = vadd.f32 1.0, %v3312_v32 }
 0x495   : > { %3317 = vrcp.f32 %v2160_v33 }
 0x496   : > { %3319 = vrcp.f32 %v2162_v34 }
 0x49d   : > { %v3314_v36 = vpop.eup %3313 }
 0x49e   : > { %v3316_v38 = vpop.eup %3315  ;;  %2174 = vst [vmem:[%s3957_s13] sm:$0xff] %v3314_v36 }
 0x49f   : > { %v3318_v39 = vpop.eup %3317  ;;  %2176 = vst [vmem:[%s3957_s13 + $0x10] sm:$0xff] %v3316_v38 }
 0x4a0   : > { %v3320_v40 = vpop.eup %3319  ;;  %2175 = vst [vmem:[%s3957_s13 + $0x8] sm:$0xff] %v3318_v39 }
 0x4a1   : > { %2177 = vst [vmem:[%s3957_s13 + $0x18] sm:$0xff] %v3320_v40  ;;  %v2413_v41 = vpop.f32.mrb[2].mxu0  ;;  %v2448_v43 = vpop.f32.mrb[2].mxu1 }
 0x4a2   : > { %v2414_v50 = vpop.f32.mrb[3].mxu0  ;;  %v2449_v45 = vpop.f32.mrb[3].mxu1 }
 0x4a3   : > { %v2415_v44 = vadd.f32 %v2414_v50, %v2413_v41  ;;  %v2450_v0 = vadd.f32 %v2449_v45, %v2448_v43 }
 0x4a5   : > { %v2001_v46 = vadd.f32 %v2415_v44, %v1502_v42 }
 0x4a7   : > { %v2071_v47 = vadd.f32 %v2450_v0, %v2001_v46 }
 0x4c1   : > { %v2483_v48 = vpop.f32.mrb[4].mxu0 }
 0x4c2   : > { %v2484_v49 = vpop.f32.mrb[5].mxu0 }
 0x4c3   : > { %v2485_v51 = vadd.f32 %v2484_v49, %v2483_v48 }
 0x4c5   : > { %v2141_v52 = vadd.f32 %v2485_v51, %v2071_v47 }
 0x4c7   : > { %v2374_v53 = vmul.f32 -1.442695, %v2141_v52 }
 0x4c9   : > { %3321 = vpow2.f32 %v2374_v53 }
 0x4d3   : > { %v3322_v55 = vpop.eup %3321 }
 0x4d4   : > { %v2163_v56 = vadd.f32 1.0, %v3322_v55 }
 0x4d6   : > { %3323 = vrcp.f32 %v2163_v56 }
 0x4e0   : > { %v3324_v57 = vpop.eup %3323 }
 0x4e1   : > { %2178 = vst [vmem:[%s3957_s13 + $0x20] sm:$0xff] %v3324_v57 }
 0x4e2   : > { %3540 = shalt.err (!%p3537_p0)
}
 0x4e3   : > { %s3541_s12 = scalar_lea.hbm %s4494_s21, 640  ;;  %s3545_s11 = scalar_lea.hbm %s4550_s7, 2560 }
 0x4e4   : > { %p3542_p5 = scmp.ne.s32.totalorder %s4494_s21, %s3541_s12  ;;  %p3546_p7 = scmp.lt.u32.totalorder %s4494_s21, %s4550_s7 }
 0x4e5   : > { %p3547_p2 = scmp.lt.u32.totalorder %s3545_s11, %s3541_s12  ;;  %p3549_p12 = scmp.lt.u32.totalorder %s3541_s12, %s4494_s21 }
 0x4e6   : > { %p3543_p9 = pnand %p3542_p5, %p4598_p3 }
 0x4e7   : > { %p3548_p4 = por %p3547_p2, %p3546_p7 }
 0x4e8   : > { %p3544_p1 = pneg %p3543_p9 }
 0x4e9   : > { %p3550_p13 = por %p3549_p12, %p3548_p4 }
 0x4eb   : > { %p3551_p6 = pnand %p3550_p13, %p3544_p1 }
 0x4ed   : > { %3554 = shalt.err (!%p3551_p6)
}
 0x4ee   : > { %3203 = dma.vmem_to_hbm [thread:$0]  (%p4598_p3), %s4496_s9, 640, %s4494_s21, %s2180_s3  }
 0x4ef PF: > { %s4599_s19 = sld [smem:[#allocation22_spill]]  ;;  %s4600_s29 = sld [smem:[#allocation21_spill]] }
 0x4f0   : > { %s4601_s8 = sld [smem:[#allocation23_spill]] }
 0x4f5   : > { %p3243_p10 = scmp.ge.s32.totalorder %s4599_s19, 2  ;;  %s2208_s10 = sand.u32 1, %s4600_s29  }
 0x4f6   : > { %p4602_p11 = scmp.ne.s32.totalorder %s4601_s8, 0  ;;  %s2209_s22 = scalar_lea.sflag [#allocation5], %s2208_s10 }
 0x4f8   : > { %p3229_p8 = pnand %p3243_p10, %p4602_p11 }
 0x4fa   : > { %3596 = dma.done.wait (!%p3229_p8), %s2209_s22, 640  }
 0x4fb   : > { %3598 = vsyncadd (!%p3229_p8), %s2209_s22, 4294966656  ;;  %s26_s29 = sadd.s32 1, %s4599_s19   ;;  %s4603_s20 = sld [smem:[#allocation25_spill]] }
 0x4fc   : > { %p23_p0 = scmp.ge.s32.totalorder %s26_s29, 6   ;;  %s4604_s13 = sld [smem:[#allocation24_spill]] }
 0x4fd   : > { %s4605_s24 = smov %s3605_s25  ;;  %s4606_s25 = smov %s3609_s26 }
 0x4fe   : > { %s4608_s27 = smov %s3617_s28  ;;  %25 = sbr.rel (!%p23_p0) target bundleno = 13 (0xd), region = 130 }
 0x501   : > { %s4607_s26 = smov %s4603_s20 }
 0x502   : > { %s4609_s28 = smov %s4604_s13 }
 0x505   :  { %2214 = vsyncpa [#allocation4], 1 }
 0x506   :  { %2216 = vsyncpa [#allocation4 + $0x1], 1 }
 0x507   :  { %2217 = vsyncpa [#allocation7], 1 }
 0x508   :  { %2218 = vsyncpa [#allocation10], 1 }
 0x509   :  { %2219 = vsyncpa [#allocation13], 1 }
 0x50a   :  { %2221 = vsyncpa [#allocation13 + $0x1], 1 }
 0x50b   :  { %2222 = vsyncpa [#allocation5], 1 }
 0x50c   :  { %2224 = vsyncpa [#allocation5 + $0x1], 1 }

</bundles_post_ra>
